<compile_context>
chip_gen: v6e
topology: v6e:2x2x1
jax: 0.10.0
libtpu: 0.0.40
codegen_flags: <defaults>
</compile_context>

<pallas_src>
import functools

import numpy as np

import jax
import jax.numpy as jnp
from jax import lax
from jax.experimental import pallas as pl
from jax.experimental.pallas import tpu as pltpu


# ----------------------------------------------------------------------------
# Fused residual-block kernel (a strip of `bt` images per grid step)
# ----------------------------------------------------------------------------
def _residual_block_kernel(x_ref, w1_ref, b1_ref, w2_ref, b2_ref, m_ref,
                           o_ref, xg_ref, xs_ref, mg_ref, ms_ref,
                           *, hw, w, guard, neg_slope):
    """conv3x3 -> LeakyReLU -> conv3x3 -> + residual, fully fused on-chip.

    x_ref : (bt, Cin, H*W)   f32   unpadded images, spatial flattened on lanes
    w1_ref: (Cmid, 9*Cin)    bf16  conv1 weights, taps folded into K
    b1_ref: (Cmid, 1)        f32
    w2_ref: (Cin, 9*Cmid)    bf16  conv2 weights, taps folded into K
    b2_ref: (Cin, 1)         f32
    m_ref : (9, bt*H*W)      bf16  per-tap validity masks (row/col/image edges)
    o_ref : (bt, Cin, H*W)   f32   output (residual already added)
    xg_ref: (Cin,  L+2g)     bf16  scratch: guarded bf16 image strip
    xs_ref: (9*Cin,  L)      bf16  scratch: stacked shifted activations (conv1)
    mg_ref: (Cmid, L+2g)     bf16  scratch: guarded bf16 mid strip
    ms_ref: (9*Cmid, L)      bf16  scratch: stacked shifted activations (conv2)
    """
    bt, cin, _ = x_ref.shape
    cmid = mg_ref.shape[0]
    L = bt * hw

    # Tap offsets in the flattened, unpadded row-major layout.
    offs = [(di - 1) * w + (dj - 1) for di in range(3) for dj in range(3)]

    # ---- assemble the bf16 image strip (cast done on-chip), zero guard bands --
    xg_ref[:, :guard] = jnp.zeros((cin, guard), xg_ref.dtype)
    xg_ref[:, guard + L:] = jnp.zeros((cin, guard), xg_ref.dtype)
    for b in range(bt):
        xg_ref[:, guard + b * hw: guard + (b + 1) * hw] = (
            x_ref[b].astype(xg_ref.dtype))

    # ---- conv1: stack 9 shifted (masked) copies, ONE bf16 MXU matmul ----------
    for t, off in enumerate(offs):
        sl = xg_ref[:, guard + off: guard + off + L]          # (Cin, L) bf16
        if off == 0:                                           # center tap: no mask
            xs_ref[t * cin:(t + 1) * cin, :] = sl
        else:
            xs_ref[t * cin:(t + 1) * cin, :] = sl * m_ref[t:t + 1, :]
    y1 = jnp.dot(w1_ref[...], xs_ref[...], preferred_element_type=jnp.float32)
    y1 = y1 + b1_ref[...]
    y1 = jnp.maximum(y1, neg_slope * y1)                       # LeakyReLU(0.2)

    # ---- conv2: mid stays in VMEM (guarded strip), ONE bf16 MXU matmul --------
    mg_ref[:, :guard] = jnp.zeros((cmid, guard), mg_ref.dtype)
    mg_ref[:, guard + L:] = jnp.zeros((cmid, guard), mg_ref.dtype)
    mg_ref[:, guard:guard + L] = y1.astype(mg_ref.dtype)
    for t, off in enumerate(offs):
        sl = mg_ref[:, guard + off: guard + off + L]           # (Cmid, L) bf16
        if off == 0:
            ms_ref[t * cmid:(t + 1) * cmid, :] = sl
        else:
            ms_ref[t * cmid:(t + 1) * cmid, :] = sl * m_ref[t:t + 1, :]
    y2 = jnp.dot(w2_ref[...], ms_ref[...], preferred_element_type=jnp.float32)
    y2 = y2 + b2_ref[...]

    # ---- residual add with the ORIGINAL f32 x, lane-dense stores --------------
    for b in range(bt):
        o_ref[b] = y2[:, b * hw:(b + 1) * hw] + x_ref[b]


# ----------------------------------------------------------------------------
# Host-side helpers (layout-free: only small constants / weight reshapes)
# ----------------------------------------------------------------------------
def _tap_masks(h, w, bt):
    """(9, bt*H*W) bf16 masks: 1 where tap (di,dj) reads inside its own image."""
    hw = h * w
    r = np.arange(hw) // w
    c = np.arange(hw) % w
    rows = []
    for di in (-1, 0, 1):
        for dj in (-1, 0, 1):
            valid = (r + di >= 0) & (r + di < h) & (c + dj >= 0) & (c + dj < w)
            rows.append(valid.astype(np.float32))
    m = np.tile(np.stack(rows, axis=0), (1, bt))               # (9, bt*hw)
    return jnp.asarray(m, dtype=jnp.bfloat16)


def _pick_images_per_step(n, hw, cmid):
    """Fold as many images per grid step as possible while keeping >= 2 grid
    steps (v7x megacore) and the stacked scratch a few MiB at most."""
    max_lanes = 4096
    best = 1
    for bt in range(1, n // 2 + 1):
        if n % bt == 0 and bt * hw <= max_lanes:
            best = bt
    return best


def residual_block_forward(params, x_nchw, neg_slope=0.2, images_per_step=None):
    """Residual_Block forward: out = conv3x3(act(conv3x3(x))) + x  (NCHW in/out)."""
    w1, b1, w2, b2 = params
    n, cin, h, w = x_nchw.shape
    cmid = w1.shape[0]
    hw = h * w

    bt = images_per_step or _pick_images_per_step(n, hw, cmid)
    assert n % bt == 0, (n, bt)
    L = bt * hw
    guard = w + 1                         # max |tap shift| in the flattened layout

    # Free reshape: NCHW -> (N, Cin, H*W). No pad / cast / crop HBM passes.
    x_flat = x_nchw.reshape(n, cin, hw)

    # Fold the 9 taps into the contraction dim: (Cout, Cin, 3, 3) -> (Cout, 9*Cin)
    # with K index ordering t*Cin + ci, t = ki*3 + kj (matches the kernel's stacking).
    w1_f = jnp.transpose(w1, (0, 2, 3, 1)).reshape(cmid, 9 * cin).astype(jnp.bfloat16)
    w2_f = jnp.transpose(w2, (0, 2, 3, 1)).reshape(cin, 9 * cmid).astype(jnp.bfloat16)
    b1_c = b1.reshape(cmid, 1).astype(jnp.float32)
    b2_c = b2.reshape(cin, 1).astype(jnp.float32)

    masks = _tap_masks(h, w, bt)          # baked constant, DMA'd once (resident)

    kernel = functools.partial(_residual_block_kernel, hw=hw, w=w, guard=guard,
                               neg_slope=float(neg_slope))

    out = pl.pallas_call(
        kernel,
        out_shape=jax.ShapeDtypeStruct((n, cin, hw), jnp.float32),
        grid_spec=pltpu.PrefetchScalarGridSpec(
            num_scalar_prefetch=0,
            grid=(n // bt,),                                        # bt images / step
            in_specs=[
                pl.BlockSpec((bt, cin, hw), lambda i: (i, 0, 0)),   # images (streamed)
                pl.BlockSpec((cmid, 9 * cin), lambda i: (0, 0)),    # conv1 W (resident)
                pl.BlockSpec((cmid, 1), lambda i: (0, 0)),
                pl.BlockSpec((cin, 9 * cmid), lambda i: (0, 0)),    # conv2 W (resident)
                pl.BlockSpec((cin, 1), lambda i: (0, 0)),
                pl.BlockSpec((9, L), lambda i: (0, 0)),             # tap masks
            ],
            out_specs=pl.BlockSpec((bt, cin, hw), lambda i: (i, 0, 0)),
            scratch_shapes=[
                pltpu.VMEM((cin, L + 2 * guard), jnp.bfloat16),     # guarded x strip
                pltpu.VMEM((9 * cin, L), jnp.bfloat16),             # stacked taps (conv1)
                pltpu.VMEM((cmid, L + 2 * guard), jnp.bfloat16),    # guarded mid strip
                pltpu.VMEM((9 * cmid, L), jnp.bfloat16),            # stacked taps (conv2)
            ]),
        compiler_params=pltpu.CompilerParams(
            dimension_semantics=("parallel",),       # batch grid -> both TCs on v7x
            vmem_limit_bytes=32 * 1024 * 1024,       # safe on v5e/v6e/v7x
        ),
    )(x_flat, w1_f, b1_c, w2_f, b2_c, masks)

    return out.reshape(n, cin, h, w)                 # free reshape, no crop pass


# ----------------------------------------------------------------------------
# Deterministic parameters + pure-JAX reference (same numerics contract:
# bf16 matmul operands, f32 accumulation/epilogue, f32 residual add)
# ----------------------------------------------------------------------------
def init_params(key, in_dim, mid_dim):
    k1, k2, k3, k4 = jax.random.split(key, 4)
    w1 = 0.1 * jax.random.normal(k1, (mid_dim, in_dim, 3, 3), jnp.float32)
    b1 = 0.05 * jax.random.normal(k2, (mid_dim,), jnp.float32)
    w2 = 0.1 * jax.random.normal(k3, (in_dim, mid_dim, 3, 3), jnp.float32)
    b2 = 0.05 * jax.random.normal(k4, (in_dim,), jnp.float32)
    return w1, b1, w2, b2


def reference_residual_block(params, x, neg_slope=0.2):
    w1, b1, w2, b2 = params
    y = lax.conv_general_dilated(
        x.astype(jnp.bfloat16), w1.astype(jnp.bfloat16), (1, 1), [(1, 1), (1, 1)],
        dimension_numbers=("NCHW", "OIHW", "NCHW"),
        preferred_element_type=jnp.float32)
    y = y + b1[None, :, None, None]
    y = jnp.maximum(y, neg_slope * y)
    z = lax.conv_general_dilated(
        y.astype(jnp.bfloat16), w2.astype(jnp.bfloat16), (1, 1), [(1, 1), (1, 1)],
        dimension_numbers=("NCHW", "OIHW", "NCHW"),
        preferred_element_type=jnp.float32)
    z = z + b2[None, :, None, None]
    return z + x                                   # residual in full f32


if __name__ == "__main__":
    key = jax.random.PRNGKey(0)
    k_param, k_img = jax.random.split(key)

    batch, in_dim, mid_dim, spatial = 4, 16, 32, 16
    params = init_params(k_param, in_dim, mid_dim)
    x = jax.random.normal(k_img, (batch, in_dim, spatial, spatial), jnp.float32)

    fwd = jax.jit(residual_block_forward)
    out = jax.block_until_ready(fwd(params, x))

    ref = reference_residual_block(params, x)
    assert out.shape == (batch, in_dim, spatial, spatial), out.shape
    max_err = float(jnp.max(jnp.abs(out - ref)))
    assert jnp.allclose(out, ref, rtol=2e-3, atol=2e-3), max_err

    print("KERNEL_OK")
</pallas_src>

<mosaic_0001>
module attributes {stable_mosaic.version = 11 : i64} {
  func.func @_residual_block_kernel(%arg0: i32, %arg1: memref<2x16x256xf32, #tpu.memory_space<vmem>>, %arg2: memref<32x144xbf16, #tpu.memory_space<vmem>>, %arg3: memref<32x1xf32, #tpu.memory_space<vmem>>, %arg4: memref<16x288xbf16, #tpu.memory_space<vmem>>, %arg5: memref<16x1xf32, #tpu.memory_space<vmem>>, %arg6: memref<9x512xbf16, #tpu.memory_space<vmem>>, %arg7: memref<2x16x256xf32, #tpu.memory_space<vmem>>, %arg8: memref<16x546xbf16, #tpu.memory_space<vmem>>, %arg9: memref<144x512xbf16, #tpu.memory_space<vmem>>, %arg10: memref<32x546xbf16, #tpu.memory_space<vmem>>, %arg11: memref<288x512xbf16, #tpu.memory_space<vmem>>) attributes {dimension_semantics = [#tpu.dimension_semantics<parallel>], iteration_bounds = array<i64: 2>, scalar_prefetch = 0 : i64, scratch_operands = 4 : i64, tpu.core_type = #tpu.core_type<tc>, window_params = [{transform_indices = @transform_0, window_bounds = array<i64: 2, 16, 256>}, {pipeline_mode = #tpu.pipeline_mode<synchronous>, transform_indices = @transform_1, window_bounds = array<i64: 32, 144>}, {pipeline_mode = #tpu.pipeline_mode<synchronous>, transform_indices = @transform_2, window_bounds = array<i64: 32, 1>}, {pipeline_mode = #tpu.pipeline_mode<synchronous>, transform_indices = @transform_3, window_bounds = array<i64: 16, 288>}, {pipeline_mode = #tpu.pipeline_mode<synchronous>, transform_indices = @transform_4, window_bounds = array<i64: 16, 1>}, {pipeline_mode = #tpu.pipeline_mode<synchronous>, transform_indices = @transform_5, window_bounds = array<i64: 9, 512>}, {transform_indices = @transform_6, window_bounds = array<i64: 2, 16, 256>}]} {
    %cst = arith.constant 0.000000e+00 : bf16
    %0 = vector.broadcast %cst : bf16 to vector<16x17xbf16>
    %c0 = arith.constant 0 : index
    %c0_0 = arith.constant 0 : index
    %1 = vector.load %arg8[%c0, %c0_0] : memref<16x546xbf16, #tpu.memory_space<vmem>>, vector<16x17xbf16>
    tpu.vector_store %arg8[%c0, %c0_0], %0 {strides = array<i32>} : memref<16x546xbf16, #tpu.memory_space<vmem>>, vector<16x17xbf16>,
    %cst_1 = arith.constant 0.000000e+00 : bf16
    %2 = vector.broadcast %cst_1 : bf16 to vector<16x17xbf16>
    %c0_2 = arith.constant 0 : index
    %c529 = arith.constant 529 : index
    %3 = vector.load %arg8[%c0_2, %c529] : memref<16x546xbf16, #tpu.memory_space<vmem>>, vector<16x17xbf16>
    tpu.vector_store %arg8[%c0_2, %c529], %2 {strides = array<i32>} : memref<16x546xbf16, #tpu.memory_space<vmem>>, vector<16x17xbf16>,
    %c0_3 = arith.constant 0 : index
    %c0_4 = arith.constant 0 : index
    %c0_5 = arith.constant 0 : index
    %4 = vector.load %arg1[%c0_3, %c0_4, %c0_5] : memref<2x16x256xf32, #tpu.memory_space<vmem>>, vector<1x16x256xf32>
    %5 = vector.shape_cast %4 : vector<1x16x256xf32> to vector<16x256xf32>
    %6 = arith.truncf %5 : vector<16x256xf32> to vector<16x256xbf16>
    %c0_6 = arith.constant 0 : index
    %c17 = arith.constant 17 : index
    %7 = vector.load %arg8[%c0_6, %c17] : memref<16x546xbf16, #tpu.memory_space<vmem>>, vector<16x256xbf16>
    tpu.vector_store %arg8[%c0_6, %c17], %6 {strides = array<i32>} : memref<16x546xbf16, #tpu.memory_space<vmem>>, vector<16x256xbf16>,
    %c1 = arith.constant 1 : index
    %c0_7 = arith.constant 0 : index
    %c0_8 = arith.constant 0 : index
    %8 = vector.load %arg1[%c1, %c0_7, %c0_8] : memref<2x16x256xf32, #tpu.memory_space<vmem>>, vector<1x16x256xf32>
    %9 = vector.shape_cast %8 : vector<1x16x256xf32> to vector<16x256xf32>
    %10 = arith.truncf %9 : vector<16x256xf32> to vector<16x256xbf16>
    %c0_9 = arith.constant 0 : index
    %c273 = arith.constant 273 : index
    %11 = vector.load %arg8[%c0_9, %c273] : memref<16x546xbf16, #tpu.memory_space<vmem>>, vector<16x256xbf16>
    tpu.vector_store %arg8[%c0_9, %c273], %10 {strides = array<i32>} : memref<16x546xbf16, #tpu.memory_space<vmem>>, vector<16x256xbf16>,
    %c0_10 = arith.constant 0 : index
    %c0_11 = arith.constant 0 : index
    %12 = vector.load %arg8[%c0_10, %c0_11] : memref<16x546xbf16, #tpu.memory_space<vmem>>, vector<16x512xbf16>
    %c0_12 = arith.constant 0 : index
    %c0_13 = arith.constant 0 : index
    %13 = vector.load %arg6[%c0_12, %c0_13] : memref<9x512xbf16, #tpu.memory_space<vmem>>, vector<1x512xbf16>
    %14 = vector.broadcast %13 : vector<1x512xbf16> to vector<16x512xbf16>
    %15 = arith.mulf %12, %14 : vector<16x512xbf16>
    %c0_14 = arith.constant 0 : index
    %c0_15 = arith.constant 0 : index
    %16 = vector.load %arg9[%c0_14, %c0_15] : memref<144x512xbf16, #tpu.memory_space<vmem>>, vector<16x512xbf16>
    tpu.vector_store %arg9[%c0_14, %c0_15], %15 {strides = array<i32>} : memref<144x512xbf16, #tpu.memory_space<vmem>>, vector<16x512xbf16>,
    %c0_16 = arith.constant 0 : index
    %c1_17 = arith.constant 1 : index
    %17 = vector.load %arg8[%c0_16, %c1_17] : memref<16x546xbf16, #tpu.memory_space<vmem>>, vector<16x512xbf16>
    %c1_18 = arith.constant 1 : index
    %c0_19 = arith.constant 0 : index
    %18 = vector.load %arg6[%c1_18, %c0_19] : memref<9x512xbf16, #tpu.memory_space<vmem>>, vector<1x512xbf16>
    %19 = vector.broadcast %18 : vector<1x512xbf16> to vector<16x512xbf16>
    %20 = arith.mulf %17, %19 : vector<16x512xbf16>
    %c16 = arith.constant 16 : index
    %c0_20 = arith.constant 0 : index
    %21 = vector.load %arg9[%c16, %c0_20] : memref<144x512xbf16, #tpu.memory_space<vmem>>, vector<16x512xbf16>
    tpu.vector_store %arg9[%c16, %c0_20], %20 {strides = array<i32>} : memref<144x512xbf16, #tpu.memory_space<vmem>>, vector<16x512xbf16>,
    %c0_21 = arith.constant 0 : index
    %c2 = arith.constant 2 : index
    %22 = vector.load %arg8[%c0_21, %c2] : memref<16x546xbf16, #tpu.memory_space<vmem>>, vector<16x512xbf16>
    %c2_22 = arith.constant 2 : index
    %c0_23 = arith.constant 0 : index
    %23 = vector.load %arg6[%c2_22, %c0_23] : memref<9x512xbf16, #tpu.memory_space<vmem>>, vector<1x512xbf16>
    %24 = vector.broadcast %23 : vector<1x512xbf16> to vector<16x512xbf16>
    %25 = arith.mulf %22, %24 : vector<16x512xbf16>
    %c32 = arith.constant 32 : index
    %c0_24 = arith.constant 0 : index
    %26 = vector.load %arg9[%c32, %c0_24] : memref<144x512xbf16, #tpu.memory_space<vmem>>, vector<16x512xbf16>
    tpu.vector_store %arg9[%c32, %c0_24], %25 {strides = array<i32>} : memref<144x512xbf16, #tpu.memory_space<vmem>>, vector<16x512xbf16>,
    %c0_25 = arith.constant 0 : index
    %c16_26 = arith.constant 16 : index
    %27 = vector.load %arg8[%c0_25, %c16_26] : memref<16x546xbf16, #tpu.memory_space<vmem>>, vector<16x512xbf16>
    %c3 = arith.constant 3 : index
    %c0_27 = arith.constant 0 : index
    %28 = vector.load %arg6[%c3, %c0_27] : memref<9x512xbf16, #tpu.memory_space<vmem>>, vector<1x512xbf16>
    %29 = vector.broadcast %28 : vector<1x512xbf16> to vector<16x512xbf16>
    %30 = arith.mulf %27, %29 : vector<16x512xbf16>
    %c48 = arith.constant 48 : index
    %c0_28 = arith.constant 0 : index
    %31 = vector.load %arg9[%c48, %c0_28] : memref<144x512xbf16, #tpu.memory_space<vmem>>, vector<16x512xbf16>
    tpu.vector_store %arg9[%c48, %c0_28], %30 {strides = array<i32>} : memref<144x512xbf16, #tpu.memory_space<vmem>>, vector<16x512xbf16>,
    %c0_29 = arith.constant 0 : index
    %c17_30 = arith.constant 17 : index
    %32 = vector.load %arg8[%c0_29, %c17_30] : memref<16x546xbf16, #tpu.memory_space<vmem>>, vector<16x512xbf16>
    %c64 = arith.constant 64 : index
    %c0_31 = arith.constant 0 : index
    %33 = vector.load %arg9[%c64, %c0_31] : memref<144x512xbf16, #tpu.memory_space<vmem>>, vector<16x512xbf16>
    tpu.vector_store %arg9[%c64, %c0_31], %32 {strides = array<i32>} : memref<144x512xbf16, #tpu.memory_space<vmem>>, vector<16x512xbf16>,
    %c0_32 = arith.constant 0 : index
    %c18 = arith.constant 18 : index
    %34 = vector.load %arg8[%c0_32, %c18] : memref<16x546xbf16, #tpu.memory_space<vmem>>, vector<16x512xbf16>
    %c5 = arith.constant 5 : index
    %c0_33 = arith.constant 0 : index
    %35 = vector.load %arg6[%c5, %c0_33] : memref<9x512xbf16, #tpu.memory_space<vmem>>, vector<1x512xbf16>
    %36 = vector.broadcast %35 : vector<1x512xbf16> to vector<16x512xbf16>
    %37 = arith.mulf %34, %36 : vector<16x512xbf16>
    %c80 = arith.constant 80 : index
    %c0_34 = arith.constant 0 : index
    %38 = vector.load %arg9[%c80, %c0_34] : memref<144x512xbf16, #tpu.memory_space<vmem>>, vector<16x512xbf16>
    tpu.vector_store %arg9[%c80, %c0_34], %37 {strides = array<i32>} : memref<144x512xbf16, #tpu.memory_space<vmem>>, vector<16x512xbf16>,
    %c0_35 = arith.constant 0 : index
    %c32_36 = arith.constant 32 : index
    %39 = vector.load %arg8[%c0_35, %c32_36] : memref<16x546xbf16, #tpu.memory_space<vmem>>, vector<16x512xbf16>
    %c6 = arith.constant 6 : index
    %c0_37 = arith.constant 0 : index
    %40 = vector.load %arg6[%c6, %c0_37] : memref<9x512xbf16, #tpu.memory_space<vmem>>, vector<1x512xbf16>
    %41 = vector.broadcast %40 : vector<1x512xbf16> to vector<16x512xbf16>
    %42 = arith.mulf %39, %41 : vector<16x512xbf16>
    %c96 = arith.constant 96 : index
    %c0_38 = arith.constant 0 : index
    %43 = vector.load %arg9[%c96, %c0_38] : memref<144x512xbf16, #tpu.memory_space<vmem>>, vector<16x512xbf16>
    tpu.vector_store %arg9[%c96, %c0_38], %42 {strides = array<i32>} : memref<144x512xbf16, #tpu.memory_space<vmem>>, vector<16x512xbf16>,
    %c0_39 = arith.constant 0 : index
    %c33 = arith.constant 33 : index
    %44 = vector.load %arg8[%c0_39, %c33] : memref<16x546xbf16, #tpu.memory_space<vmem>>, vector<16x512xbf16>
    %c7 = arith.constant 7 : index
    %c0_40 = arith.constant 0 : index
    %45 = vector.load %arg6[%c7, %c0_40] : memref<9x512xbf16, #tpu.memory_space<vmem>>, vector<1x512xbf16>
    %46 = vector.broadcast %45 : vector<1x512xbf16> to vector<16x512xbf16>
    %47 = arith.mulf %44, %46 : vector<16x512xbf16>
    %c112 = arith.constant 112 : index
    %c0_41 = arith.constant 0 : index
    %48 = vector.load %arg9[%c112, %c0_41] : memref<144x512xbf16, #tpu.memory_space<vmem>>, vector<16x512xbf16>
    tpu.vector_store %arg9[%c112, %c0_41], %47 {strides = array<i32>} : memref<144x512xbf16, #tpu.memory_space<vmem>>, vector<16x512xbf16>,
    %c0_42 = arith.constant 0 : index
    %c34 = arith.constant 34 : index
    %49 = vector.load %arg8[%c0_42, %c34] : memref<16x546xbf16, #tpu.memory_space<vmem>>, vector<16x512xbf16>
    %c8 = arith.constant 8 : index
    %c0_43 = arith.constant 0 : index
    %50 = vector.load %arg6[%c8, %c0_43] : memref<9x512xbf16, #tpu.memory_space<vmem>>, vector<1x512xbf16>
    %51 = vector.broadcast %50 : vector<1x512xbf16> to vector<16x512xbf16>
    %52 = arith.mulf %49, %51 : vector<16x512xbf16>
    %c128 = arith.constant 128 : index
    %c0_44 = arith.constant 0 : index
    %53 = vector.load %arg9[%c128, %c0_44] : memref<144x512xbf16, #tpu.memory_space<vmem>>, vector<16x512xbf16>
    tpu.vector_store %arg9[%c128, %c0_44], %52 {strides = array<i32>} : memref<144x512xbf16, #tpu.memory_space<vmem>>, vector<16x512xbf16>,
    %c0_45 = arith.constant 0 : index
    %c0_46 = arith.constant 0 : index
    %54 = vector.load %arg2[%c0_45, %c0_46] : memref<32x144xbf16, #tpu.memory_space<vmem>>, vector<32x144xbf16>
    %c0_47 = arith.constant 0 : index
    %c0_48 = arith.constant 0 : index
    %55 = vector.load %arg9[%c0_47, %c0_48] : memref<144x512xbf16, #tpu.memory_space<vmem>>, vector<144x512xbf16>
    %cst_49 = arith.constant dense<0.000000e+00> : vector<32x512xf32>
    %56 = tpu.matmul %54, %55, %cst_49 {dimension_numbers = #tpu.dot_dimension_numbers<[1], [0], [0], [1], [0, 0, 1, 1], [], []>} : vector<32x144xbf16>, vector<144x512xbf16>, vector<32x512xf32> -> vector<32x512xf32>
    %c0_50 = arith.constant 0 : index
    %c0_51 = arith.constant 0 : index
    %57 = vector.load %arg3[%c0_50, %c0_51] : memref<32x1xf32, #tpu.memory_space<vmem>>, vector<32x1xf32>
    %58 = vector.broadcast %57 : vector<32x1xf32> to vector<32x512xf32>
    %59 = arith.addf %56, %58 : vector<32x512xf32>
    %cst_52 = arith.constant 2.000000e-01 : f32
    %60 = vector.broadcast %cst_52 : f32 to vector<32x512xf32>
    %61 = arith.mulf %60, %59 : vector<32x512xf32>
    %62 = arith.maximumf %59, %61 : vector<32x512xf32>
    %cst_53 = arith.constant 0.000000e+00 : bf16
    %63 = vector.broadcast %cst_53 : bf16 to vector<32x17xbf16>
    %c0_54 = arith.constant 0 : index
    %c0_55 = arith.constant 0 : index
    %64 = vector.load %arg10[%c0_54, %c0_55] : memref<32x546xbf16, #tpu.memory_space<vmem>>, vector<32x17xbf16>
    tpu.vector_store %arg10[%c0_54, %c0_55], %63 {strides = array<i32>} : memref<32x546xbf16, #tpu.memory_space<vmem>>, vector<32x17xbf16>,
    %cst_56 = arith.constant 0.000000e+00 : bf16
    %65 = vector.broadcast %cst_56 : bf16 to vector<32x17xbf16>
    %c0_57 = arith.constant 0 : index
    %c529_58 = arith.constant 529 : index
    %66 = vector.load %arg10[%c0_57, %c529_58] : memref<32x546xbf16, #tpu.memory_space<vmem>>, vector<32x17xbf16>
    tpu.vector_store %arg10[%c0_57, %c529_58], %65 {strides = array<i32>} : memref<32x546xbf16, #tpu.memory_space<vmem>>, vector<32x17xbf16>,
    %67 = arith.truncf %62 : vector<32x512xf32> to vector<32x512xbf16>
    %c0_59 = arith.constant 0 : index
    %c17_60 = arith.constant 17 : index
    %68 = vector.load %arg10[%c0_59, %c17_60] : memref<32x546xbf16, #tpu.memory_space<vmem>>, vector<32x512xbf16>
    tpu.vector_store %arg10[%c0_59, %c17_60], %67 {strides = array<i32>} : memref<32x546xbf16, #tpu.memory_space<vmem>>, vector<32x512xbf16>,
    %c0_61 = arith.constant 0 : index
    %c0_62 = arith.constant 0 : index
    %69 = vector.load %arg10[%c0_61, %c0_62] : memref<32x546xbf16, #tpu.memory_space<vmem>>, vector<32x512xbf16>
    %c0_63 = arith.constant 0 : index
    %c0_64 = arith.constant 0 : index
    %70 = vector.load %arg6[%c0_63, %c0_64] : memref<9x512xbf16, #tpu.memory_space<vmem>>, vector<1x512xbf16>
    %71 = vector.broadcast %70 : vector<1x512xbf16> to vector<32x512xbf16>
    %72 = arith.mulf %69, %71 : vector<32x512xbf16>
    %c0_65 = arith.constant 0 : index
    %c0_66 = arith.constant 0 : index
    %73 = vector.load %arg11[%c0_65, %c0_66] : memref<288x512xbf16, #tpu.memory_space<vmem>>, vector<32x512xbf16>
    tpu.vector_store %arg11[%c0_65, %c0_66], %72 {strides = array<i32>} : memref<288x512xbf16, #tpu.memory_space<vmem>>, vector<32x512xbf16>,
    %c0_67 = arith.constant 0 : index
    %c1_68 = arith.constant 1 : index
    %74 = vector.load %arg10[%c0_67, %c1_68] : memref<32x546xbf16, #tpu.memory_space<vmem>>, vector<32x512xbf16>
    %c1_69 = arith.constant 1 : index
    %c0_70 = arith.constant 0 : index
    %75 = vector.load %arg6[%c1_69, %c0_70] : memref<9x512xbf16, #tpu.memory_space<vmem>>, vector<1x512xbf16>
    %76 = vector.broadcast %75 : vector<1x512xbf16> to vector<32x512xbf16>
    %77 = arith.mulf %74, %76 : vector<32x512xbf16>
    %c32_71 = arith.constant 32 : index
    %c0_72 = arith.constant 0 : index
    %78 = vector.load %arg11[%c32_71, %c0_72] : memref<288x512xbf16, #tpu.memory_space<vmem>>, vector<32x512xbf16>
    tpu.vector_store %arg11[%c32_71, %c0_72], %77 {strides = array<i32>} : memref<288x512xbf16, #tpu.memory_space<vmem>>, vector<32x512xbf16>,
    %c0_73 = arith.constant 0 : index
    %c2_74 = arith.constant 2 : index
    %79 = vector.load %arg10[%c0_73, %c2_74] : memref<32x546xbf16, #tpu.memory_space<vmem>>, vector<32x512xbf16>
    %c2_75 = arith.constant 2 : index
    %c0_76 = arith.constant 0 : index
    %80 = vector.load %arg6[%c2_75, %c0_76] : memref<9x512xbf16, #tpu.memory_space<vmem>>, vector<1x512xbf16>
    %81 = vector.broadcast %80 : vector<1x512xbf16> to vector<32x512xbf16>
    %82 = arith.mulf %79, %81 : vector<32x512xbf16>
    %c64_77 = arith.constant 64 : index
    %c0_78 = arith.constant 0 : index
    %83 = vector.load %arg11[%c64_77, %c0_78] : memref<288x512xbf16, #tpu.memory_space<vmem>>, vector<32x512xbf16>
    tpu.vector_store %arg11[%c64_77, %c0_78], %82 {strides = array<i32>} : memref<288x512xbf16, #tpu.memory_space<vmem>>, vector<32x512xbf16>,
    %c0_79 = arith.constant 0 : index
    %c16_80 = arith.constant 16 : index
    %84 = vector.load %arg10[%c0_79, %c16_80] : memref<32x546xbf16, #tpu.memory_space<vmem>>, vector<32x512xbf16>
    %c3_81 = arith.constant 3 : index
    %c0_82 = arith.constant 0 : index
    %85 = vector.load %arg6[%c3_81, %c0_82] : memref<9x512xbf16, #tpu.memory_space<vmem>>, vector<1x512xbf16>
    %86 = vector.broadcast %85 : vector<1x512xbf16> to vector<32x512xbf16>
    %87 = arith.mulf %84, %86 : vector<32x512xbf16>
    %c96_83 = arith.constant 96 : index
    %c0_84 = arith.constant 0 : index
    %88 = vector.load %arg11[%c96_83, %c0_84] : memref<288x512xbf16, #tpu.memory_space<vmem>>, vector<32x512xbf16>
    tpu.vector_store %arg11[%c96_83, %c0_84], %87 {strides = array<i32>} : memref<288x512xbf16, #tpu.memory_space<vmem>>, vector<32x512xbf16>,
    %c0_85 = arith.constant 0 : index
    %c17_86 = arith.constant 17 : index
    %89 = vector.load %arg10[%c0_85, %c17_86] : memref<32x546xbf16, #tpu.memory_space<vmem>>, vector<32x512xbf16>
    %c128_87 = arith.constant 128 : index
    %c0_88 = arith.constant 0 : index
    %90 = vector.load %arg11[%c128_87, %c0_88] : memref<288x512xbf16, #tpu.memory_space<vmem>>, vector<32x512xbf16>
    tpu.vector_store %arg11[%c128_87, %c0_88], %89 {strides = array<i32>} : memref<288x512xbf16, #tpu.memory_space<vmem>>, vector<32x512xbf16>,
    %c0_89 = arith.constant 0 : index
    %c18_90 = arith.constant 18 : index
    %91 = vector.load %arg10[%c0_89, %c18_90] : memref<32x546xbf16, #tpu.memory_space<vmem>>, vector<32x512xbf16>
    %c5_91 = arith.constant 5 : index
    %c0_92 = arith.constant 0 : index
    %92 = vector.load %arg6[%c5_91, %c0_92] : memref<9x512xbf16, #tpu.memory_space<vmem>>, vector<1x512xbf16>
    %93 = vector.broadcast %92 : vector<1x512xbf16> to vector<32x512xbf16>
    %94 = arith.mulf %91, %93 : vector<32x512xbf16>
    %c160 = arith.constant 160 : index
    %c0_93 = arith.constant 0 : index
    %95 = vector.load %arg11[%c160, %c0_93] : memref<288x512xbf16, #tpu.memory_space<vmem>>, vector<32x512xbf16>
    tpu.vector_store %arg11[%c160, %c0_93], %94 {strides = array<i32>} : memref<288x512xbf16, #tpu.memory_space<vmem>>, vector<32x512xbf16>,
    %c0_94 = arith.constant 0 : index
    %c32_95 = arith.constant 32 : index
    %96 = vector.load %arg10[%c0_94, %c32_95] : memref<32x546xbf16, #tpu.memory_space<vmem>>, vector<32x512xbf16>
    %c6_96 = arith.constant 6 : index
    %c0_97 = arith.constant 0 : index
    %97 = vector.load %arg6[%c6_96, %c0_97] : memref<9x512xbf16, #tpu.memory_space<vmem>>, vector<1x512xbf16>
    %98 = vector.broadcast %97 : vector<1x512xbf16> to vector<32x512xbf16>
    %99 = arith.mulf %96, %98 : vector<32x512xbf16>
    %c192 = arith.constant 192 : index
    %c0_98 = arith.constant 0 : index
    %100 = vector.load %arg11[%c192, %c0_98] : memref<288x512xbf16, #tpu.memory_space<vmem>>, vector<32x512xbf16>
    tpu.vector_store %arg11[%c192, %c0_98], %99 {strides = array<i32>} : memref<288x512xbf16, #tpu.memory_space<vmem>>, vector<32x512xbf16>,
    %c0_99 = arith.constant 0 : index
    %c33_100 = arith.constant 33 : index
    %101 = vector.load %arg10[%c0_99, %c33_100] : memref<32x546xbf16, #tpu.memory_space<vmem>>, vector<32x512xbf16>
    %c7_101 = arith.constant 7 : index
    %c0_102 = arith.constant 0 : index
    %102 = vector.load %arg6[%c7_101, %c0_102] : memref<9x512xbf16, #tpu.memory_space<vmem>>, vector<1x512xbf16>
    %103 = vector.broadcast %102 : vector<1x512xbf16> to vector<32x512xbf16>
    %104 = arith.mulf %101, %103 : vector<32x512xbf16>
    %c224 = arith.constant 224 : index
    %c0_103 = arith.constant 0 : index
    %105 = vector.load %arg11[%c224, %c0_103] : memref<288x512xbf16, #tpu.memory_space<vmem>>, vector<32x512xbf16>
    tpu.vector_store %arg11[%c224, %c0_103], %104 {strides = array<i32>} : memref<288x512xbf16, #tpu.memory_space<vmem>>, vector<32x512xbf16>,
    %c0_104 = arith.constant 0 : index
    %c34_105 = arith.constant 34 : index
    %106 = vector.load %arg10[%c0_104, %c34_105] : memref<32x546xbf16, #tpu.memory_space<vmem>>, vector<32x512xbf16>
    %c8_106 = arith.constant 8 : index
    %c0_107 = arith.constant 0 : index
    %107 = vector.load %arg6[%c8_106, %c0_107] : memref<9x512xbf16, #tpu.memory_space<vmem>>, vector<1x512xbf16>
    %108 = vector.broadcast %107 : vector<1x512xbf16> to vector<32x512xbf16>
    %109 = arith.mulf %106, %108 : vector<32x512xbf16>
    %c256 = arith.constant 256 : index
    %c0_108 = arith.constant 0 : index
    %110 = vector.load %arg11[%c256, %c0_108] : memref<288x512xbf16, #tpu.memory_space<vmem>>, vector<32x512xbf16>
    tpu.vector_store %arg11[%c256, %c0_108], %109 {strides = array<i32>} : memref<288x512xbf16, #tpu.memory_space<vmem>>, vector<32x512xbf16>,
    %c0_109 = arith.constant 0 : index
    %c0_110 = arith.constant 0 : index
    %111 = vector.load %arg4[%c0_109, %c0_110] : memref<16x288xbf16, #tpu.memory_space<vmem>>, vector<16x288xbf16>
    %c0_111 = arith.constant 0 : index
    %c0_112 = arith.constant 0 : index
    %112 = vector.load %arg11[%c0_111, %c0_112] : memref<288x512xbf16, #tpu.memory_space<vmem>>, vector<288x512xbf16>
    %cst_113 = arith.constant dense<0.000000e+00> : vector<16x512xf32>
    %113 = tpu.matmul %111, %112, %cst_113 {dimension_numbers = #tpu.dot_dimension_numbers<[1], [0], [0], [1], [0, 0, 1, 1], [], []>} : vector<16x288xbf16>, vector<288x512xbf16>, vector<16x512xf32> -> vector<16x512xf32>
    %c0_114 = arith.constant 0 : index
    %c0_115 = arith.constant 0 : index
    %114 = vector.load %arg5[%c0_114, %c0_115] : memref<16x1xf32, #tpu.memory_space<vmem>>, vector<16x1xf32>
    %115 = vector.broadcast %114 : vector<16x1xf32> to vector<16x512xf32>
    %116 = arith.addf %113, %115 : vector<16x512xf32>
    %117 = vector.extract_strided_slice %116 {offsets = [0, 0], sizes = [16, 256], strides = [1, 1]} : vector<16x512xf32> to vector<16x256xf32>
    %c0_116 = arith.constant 0 : index
    %c0_117 = arith.constant 0 : index
    %c0_118 = arith.constant 0 : index
    %118 = vector.load %arg1[%c0_116, %c0_117, %c0_118] : memref<2x16x256xf32, #tpu.memory_space<vmem>>, vector<1x16x256xf32>
    %119 = vector.shape_cast %118 : vector<1x16x256xf32> to vector<16x256xf32>
    %120 = arith.addf %117, %119 : vector<16x256xf32>
    %c0_119 = arith.constant 0 : index
    %c0_120 = arith.constant 0 : index
    %c0_121 = arith.constant 0 : index
    %121 = vector.load %arg7[%c0_119, %c0_120, %c0_121] : memref<2x16x256xf32, #tpu.memory_space<vmem>>, vector<1x16x256xf32>
    %122 = vector.shape_cast %121 : vector<1x16x256xf32> to vector<16x256xf32>
    %123 = vector.shape_cast %120 : vector<16x256xf32> to vector<1x16x256xf32>
    tpu.vector_store %arg7[%c0_119, %c0_120, %c0_121], %123 {strides = array<i32>} : memref<2x16x256xf32, #tpu.memory_space<vmem>>, vector<1x16x256xf32>,
    %124 = vector.extract_strided_slice %116 {offsets = [0, 256], sizes = [16, 256], strides = [1, 1]} : vector<16x512xf32> to vector<16x256xf32>
    %c1_122 = arith.constant 1 : index
    %c0_123 = arith.constant 0 : index
    %c0_124 = arith.constant 0 : index
    %125 = vector.load %arg1[%c1_122, %c0_123, %c0_124] : memref<2x16x256xf32, #tpu.memory_space<vmem>>, vector<1x16x256xf32>
    %126 = vector.shape_cast %125 : vector<1x16x256xf32> to vector<16x256xf32>
    %127 = arith.addf %124, %126 : vector<16x256xf32>
    %c1_125 = arith.constant 1 : index
    %c0_126 = arith.constant 0 : index
    %c0_127 = arith.constant 0 : index
    %128 = vector.load %arg7[%c1_125, %c0_126, %c0_127] : memref<2x16x256xf32, #tpu.memory_space<vmem>>, vector<1x16x256xf32>
    %129 = vector.shape_cast %128 : vector<1x16x256xf32> to vector<16x256xf32>
    %130 = vector.shape_cast %127 : vector<16x256xf32> to vector<1x16x256xf32>
    tpu.vector_store %arg7[%c1_125, %c0_126, %c0_127], %130 {strides = array<i32>} : memref<2x16x256xf32, #tpu.memory_space<vmem>>, vector<1x16x256xf32>,
    return
  }
  func.func @transform_0(%arg0: i32) -> (i32, i32, i32) {
    %c0_i32 = arith.constant 0 : i32
    %c0_i32_0 = arith.constant 0 : i32
    %c0_i32_1 = arith.constant 0 : i32
    return %arg0, %c0_i32, %c0_i32_0 : i32, i32, i32
  }
  func.func @transform_1(%arg0: i32) -> (i32, i32) {
    %c0_i32 = arith.constant 0 : i32
    %c0_i32_0 = arith.constant 0 : i32
    %c0_i32_1 = arith.constant 0 : i32
    return %c0_i32, %c0_i32_0 : i32, i32
  }
  func.func @transform_2(%arg0: i32) -> (i32, i32) {
    %c0_i32 = arith.constant 0 : i32
    %c0_i32_0 = arith.constant 0 : i32
    %c0_i32_1 = arith.constant 0 : i32
    return %c0_i32, %c0_i32_0 : i32, i32
  }
  func.func @transform_3(%arg0: i32) -> (i32, i32) {
    %c0_i32 = arith.constant 0 : i32
    %c0_i32_0 = arith.constant 0 : i32
    %c0_i32_1 = arith.constant 0 : i32
    return %c0_i32, %c0_i32_0 : i32, i32
  }
  func.func @transform_4(%arg0: i32) -> (i32, i32) {
    %c0_i32 = arith.constant 0 : i32
    %c0_i32_0 = arith.constant 0 : i32
    %c0_i32_1 = arith.constant 0 : i32
    return %c0_i32, %c0_i32_0 : i32, i32
  }
  func.func @transform_5(%arg0: i32) -> (i32, i32) {
    %c0_i32 = arith.constant 0 : i32
    %c0_i32_0 = arith.constant 0 : i32
    %c0_i32_1 = arith.constant 0 : i32
    return %c0_i32, %c0_i32_0 : i32, i32
  }
  func.func @transform_6(%arg0: i32) -> (i32, i32, i32) {
    %c0_i32 = arith.constant 0 : i32
    %c0_i32_0 = arith.constant 0 : i32
    %c0_i32_1 = arith.constant 0 : i32
    return %arg0, %c0_i32, %c0_i32_0 : i32, i32, i32
  }
}

</mosaic_0001>

<bundles_post_ra>
// kernel: residual_block_forward.1
= control target key start
LH: loop header
LB: loop body
LE: loop exit
PB: predicated region body
PF: predicated region fallthrough
CT: control target
= control target key end

     0   :  { %s4284_s21 = smov 0   ;;  %s5903_s0 = inlined_call_operand.vmem [shape: f32[4,16,256], index: 0, kind: input, shape index: {}]   ;;  %s5904_s1 = inlined_call_operand.vmem [shape: bf16[32,144], index: 1, kind: input, shape index: {}]   ;;  %s5905_s2 = inlined_call_operand.vmem [shape: f32[32,1], index: 2, kind: input, shape index: {}]   ;;  %s5906_s3 = inlined_call_operand.vmem [shape: bf16[16,288], index: 3, kind: input, shape index: {}]   ;;  %s5907_s4 = inlined_call_operand.vmem [shape: f32[16,1], index: 4, kind: input, shape index: {}]   ;;  %s5908_s5 = inlined_call_operand.vmem [shape: bf16[9,512], index: 5, kind: input, shape index: {}]   ;;  %s5909_s6 = inlined_call_operand.vmem [shape: f32[4,16,256], index: 6, kind: output, shape index: {}]  }
   0x1 LB: > { %s3855_s22 = sadd.s32 4294967295, %s4230_s21   ;;  %p3859_p0 = scmp.ge.s32.totalorder %s4230_s21, 1  ;;  %s4230_s21 = sphi %s4284_s21, %s16_s21  }
   0x2   : > { %p214_p1 = scmp.lt.s32.totalorder %s4230_s21, 3 }
   0x4   : > { %p215_p2 = pnand %p3859_p0, %p214_p1 }
   0x6   : > { %218 = sbr.rel (%p215_p2) target bundleno = 1215 (0x4bf), region = 44 }
   0xb   : > { %s3860_s23 = sshll.u32 %s3855_s22, 1  ;;  %v351_v0 = vlaneseq  ;;  %v1043_v1 = vld [vmem:[%s5908_s5 + $0x8] sm:$0x88]  ;;  %v1042_v2 = vld [vmem:[%s5908_s5] sm:$0x88]  ;;  %s4232_s18 = smov 17  }
   0xc   : > { %p247_p3 = scmp.lt.s32.totalorder %s3860_s23, 3  ;;  %v3912_v3 = vcombine.low %v1043_v1, %v1043_v1  ;;  %v3913_v4 = vcombine.high %v1043_v1, %v1043_v1  ;;  %v3910_v5 = vcombine.low %v1042_v2, %v1042_v2  ;;  %v3911_v6 = vcombine.high %v1042_v2, %v1042_v2  ;;  %v927_v7 = vld [vmem:[%s5908_s5 + $0x8] sm:$0x88]  ;;  %v926_v8 = vld [vmem:[%s5908_s5] sm:$0x88]  ;;  %s4233_s27 = smov 33  }
   0xd   : > { %v4304_v9 = vshrl.u32 %v351_v0, 7  ;;  %v3906_v10 = vcombine.low %v927_v7, %v927_v7  ;;  %v3907_v11 = vcombine.high %v927_v7, %v927_v7  ;;  %v3904_v12 = vcombine.low %v926_v8, %v926_v8  ;;  %v807_v26 = vld [vmem:[%s5908_s5 + $0x8] sm:$0x44]  ;;  %v806_v27 = vld [vmem:[%s5908_s5] sm:$0x44]  ;;  %s4234_s9 = smov 32  }
   0xe   : > { %s6031_s23 = smov (!%p247_p3, %s3860_s23), 3  ;;  %v1071_v13 = vshrl.u32 %v3912_v3, 16  ;;  %v1079_v14 = vshrl.u32 %v3913_v4, 16  ;;  %v1055_v15 = vshrl.u32 %v3910_v5, 16  ;;  %v1063_v16 = vshrl.u32 %v3911_v6, 16  ;;  %s4235_s15 = smov 18  }
   0xf   : > { %v4309_v17 = vsub.s32 3, %v4304_v9  ;;  %v953_v18 = vpack.i.b16 %v3906_v10, %v3906_v10  ;;  %v960_v19 = vpack.i.b16 %v3907_v11, %v3907_v11  ;;  %s5910_s8 = sshll.u32 %s6031_s23, 5  ;;  %v3905_v24 = vcombine.high %v926_v8, %v926_v8  ;;  %v640_v48 = vld [vmem:[%s5908_s5 + $0x8] sm:$0x22]  ;;  %v639_v53 = vld [vmem:[%s5908_s5] sm:$0x22] }
  0x10   : > { %v1072_v20 = vpack.i.b16 %v1071_v13, %v1071_v13  ;;  %v1080_v21 = vpack.i.b16 %v1079_v14, %v1079_v14  ;;  %v1056_v22 = vpack.i.b16 %v1055_v15, %v1055_v15  ;;  %v1064_v23 = vpack.i.b16 %v1063_v16, %v1063_v16  ;;  %s4317_s11 = scalar_lea.vmem %s5903_s0, %s5910_s8  ;;  %v524_v11 = vld [vmem:[%s5908_s5 + $0x8] sm:$0x22]  ;;  %s4236_s16 = smov 16  }
  0x11   : > { %v939_v25 = vpack.i.b16 %v3904_v12, %v3904_v12  ;;  %v3868_v28 = vld [vmem:[%s4317_s11 + $0x20] sm:$0xff]  ;;  %v3869_v29 = vld [vmem:[%s4317_s11 + $0x28] sm:$0xff]  ;;  %v3870_v37 = vld [vmem:[%s4317_s11 + $0x30] sm:$0xff]  ;;  %v4338_v39 = vrot.slane %v953_v18, %v4309_v17  ;;  %v4341_v40 = vrot.slane %v960_v19, %v4309_v17  ;;  %v946_v41 = vpack.i.b16 %v3905_v24, %v3905_v24  ;;  %s4238_s17 = smov 2   ;;  %s4239_s19 = smov 1  }
  0x12   : > { %v267_v30 = vld [vmem:[%s4317_s11] sm:$0xff]  ;;  %v1077_v31 = vrot.slane %v1072_v20, %v4309_v17  ;;  %v1085_v32 = vrot.slane %v1080_v21, %v4309_v17  ;;  %v4331_v33 = vrot.slane %v1056_v22, %v4309_v17  ;;  %v1069_v34 = vrot.slane %v1064_v23, %v4309_v17  ;;  %v268_v36 = vld [vmem:[%s4317_s11 + $0x8] sm:$0xff]  ;;  %v3871_v38 = vld [vmem:[%s4317_s11 + $0x38] sm:$0xff]  ;;  %s4240_s20 = smov 34   ;;  %s5911_s28 = smov 111  }
  0x13   : > { %v4113_v35 = vpack.c.bf16 %v3869_v29, %v3868_v28  ;;  %v4111_v42 = vpack.c.bf16 %v268_v36, %v267_v30  ;;  %v4114_v43 = vpack.c.bf16 %v3871_v38, %v3870_v37  ;;  %v269_v44 = vld [vmem:[%s4317_s11 + $0x10] sm:$0xff]  ;;  %v270_v45 = vld [vmem:[%s4317_s11 + $0x18] sm:$0xff]  ;;  %v4346_v47 = vrot.slane %v939_v25, %v4309_v17  ;;  %v523_v21 = vld [vmem:[%s5908_s5] sm:$0x22]  ;;  %s5917_s29 = smov 95   ;;  %s5915_s30 = smov 96  }
  0x14   : > { %v3915_v46 = vcombine.low %v1077_v31, %v1085_v32  ;;  %v4112_v49 = vpack.c.bf16 %v270_v45, %v269_v44  ;;  %v3914_v50 = vcombine.low %v4331_v33, %v1069_v34  ;;  %v3900_v51 = vcombine.low %v807_v26, %v807_v26  ;;  %v402_v34 = vld [vmem:[%s5908_s5] sm:$0x11]  ;;  %s5913_s7 = smov 110   ;;  %s4245_s10 = smov 112  }
  0x15   : > { %316 = vrot.lane.b32.xlu1 %v4113_v35, %s4232_s18  ;;  %v3901_v52 = vcombine.high %v807_v26, %v807_v26  ;;  %281 = vrot.lane.b32.xlu0 %v4111_v42, %s4232_s18  ;;  %v4358_v54 = vsub.s32 2, %v4304_v9  ;;  %v3898_v55 = vcombine.low %v806_v27, %v806_v27  ;;  %v3899_v56 = vcombine.high %v806_v27, %v806_v27  ;;  %s4246_s12 = smov 126   ;;  %s5919_s13 = smov 127  }
  0x16   : > { %v4361_v57 = vsub.s32 1, %v4304_v9  ;;  %v951_v58 = vrot.slane %v946_v41, %v4309_v17  ;;  %v835_v59 = vshrl.u32 %v3900_v51, 16  ;;  %v3894_v61 = vcombine.low %v640_v48, %v640_v48  ;;  %s4248_s14 = smov 94  }
  0x17   : > { %v843_v60 = vshrl.u32 %v3901_v52, 16  ;;  %v819_v62 = vshrl.u32 %v3898_v55, 16  ;;  %v827_v63 = vshrl.u32 %v3899_v56, 16  ;;  %v3895_v0 = vcombine.high %v640_v48, %v640_v48  ;;  %v1162_v52 = vld [vmem:[%s5908_s5 + $0x10] sm:$0x11] }
  0x18   : > { %v3892_v1 = vcombine.low %v639_v53, %v639_v53  ;;  %v836_v2 = vpack.i.b16 %v835_v59, %v835_v59  ;;  %v668_v4 = vshrl.u32 %v3894_v61, 16  ;;  %v3893_v5 = vcombine.high %v639_v53, %v639_v53 }
  0x19   : > { %318 = vrot.lane.b32.xlu1 %v4114_v43, %s4232_s18  ;;  %v844_v3 = vpack.i.b16 %v843_v60, %v843_v60  ;;  %283 = vrot.lane.b32.xlu0 %v4112_v49, %s4232_s18  ;;  %v820_v6 = vpack.i.b16 %v819_v62, %v819_v62  ;;  %v828_v7 = vpack.i.b16 %v827_v63, %v827_v63  ;;  %v676_v8 = vshrl.u32 %v3895_v0, 16  ;;  %v1163_v43 = vld [vmem:[%s5908_s5 + $0x18] sm:$0x11] }
  0x1a   : > { %v652_v10 = vshrl.u32 %v3892_v1, 16  ;;  %v841_v12 = vrot.slane %v836_v2, %v4358_v54  ;;  %v669_v14 = vpack.i.b16 %v668_v4, %v668_v4  ;;  %v660_v15 = vshrl.u32 %v3893_v5, 16 }
  0x1b   : > { %v849_v13 = vrot.slane %v844_v3, %v4358_v54  ;;  %v4372_v16 = vsub.s32 0, %v4304_v9  ;;  %v825_v18 = vrot.slane %v820_v6, %v4358_v54  ;;  %v833_v19 = vrot.slane %v828_v7, %v4358_v54  ;;  %v403_v9 = vld [vmem:[%s5908_s5 + $0x8] sm:$0x11] }
  0x1c   : > { %v677_v20 = vpack.i.b16 %v676_v8, %v676_v8  ;;  %v3909_v22 = vcombine.low %v4338_v39, %v4341_v40  ;;  %v653_v23 = vpack.i.b16 %v652_v10, %v652_v10  ;;  %v661_v24 = vpack.i.b16 %v660_v15, %v660_v15 }
  0x1d   : > { %1098 = vrot.lane.b32.xlu1 %v3915_v46, %s4233_s27  ;;  %v3888_v25 = vcombine.low %v524_v11, %v524_v11  ;;  %1096 = vrot.lane.b32.xlu0 %v3914_v50, %s4233_s27  ;;  %v3908_v26 = vcombine.low %v4346_v47, %v951_v58  ;;  %v3903_v27 = vcombine.low %v841_v12, %v849_v13  ;;  %vm261_vm0 = vcmask 134144  }
  0x1e   : > { %v674_v28 = vrot.slane %v669_v14, %v4361_v57  ;;  %v3889_v29 = vcombine.high %v524_v11, %v524_v11  ;;  %v3902_v30 = vcombine.low %v825_v18, %v833_v19  ;;  %v3886_v32 = vcombine.low %v523_v21, %v523_v21 }
  0x1f   : > { %v550_v31 = vpack.i.b16 %v3888_v25, %v3888_v25  ;;  %v3887_v33 = vcombine.high %v523_v21, %v523_v21  ;;  %v682_v35 = vrot.slane %v677_v20, %v4361_v57  ;;  %v3882_v37 = vcombine.low %v403_v9, %v403_v9  ;;  %v336_v25 = vld [vmem:[%s5908_s5] sm:$0x11] }
  0x20   : > { %v557_v36 = vpack.i.b16 %v3889_v29, %v3889_v29  ;;  %v3883_v38 = vcombine.high %v403_v9, %v403_v9  ;;  %v658_v39 = vrot.slane %v653_v23, %v4361_v57  ;;  %v666_v40 = vrot.slane %v661_v24, %v4361_v57 }
  0x21   : > { %978 = vrot.lane.b32.xlu1 %v3909_v22, %s4234_s9  ;;  %v536_v41 = vpack.i.b16 %v3886_v32, %v3886_v32  ;;  %v543_v42 = vpack.i.b16 %v3887_v33, %v3887_v33  ;;  %976 = vrot.lane.b32.xlu0 %v3908_v26, %s4234_s9  ;;  %v555_v44 = vrot.slane %v550_v31, %v4361_v57  ;;  %v431_v45 = vshrl.u32 %v3882_v37, 16  ;;  %v337_v32 = vld [vmem:[%s5908_s5 + $0x8] sm:$0x11] }
  0x22   : > { %v439_v46 = vshrl.u32 %v3883_v38, 16  ;;  %v3880_v47 = vcombine.low %v402_v34, %v402_v34  ;;  %v562_v48 = vrot.slane %v557_v36, %v4361_v57  ;;  %v3881_v51 = vcombine.high %v402_v34, %v402_v34 }
  0x23   : > { %v541_v49 = vrot.slane %v536_v41, %v4361_v57  ;;  %v548_v50 = vrot.slane %v543_v42, %v4361_v57  ;;  %v432_v53 = vpack.i.b16 %v431_v45, %v431_v45  ;;  %v3918_v58 = vcombine.low %v1163_v43, %v1163_v43 }
  0x24   : > { %v440_v55 = vpack.i.b16 %v439_v46, %v439_v46  ;;  %v415_v56 = vshrl.u32 %v3880_v47, 16  ;;  %v3897_v59 = vcombine.low %v674_v28, %v682_v35  ;;  %v423_v60 = vshrl.u32 %v3881_v51, 16 }
  0x25   : > { %862 = vrot.lane.b32.xlu1 %v3903_v27, %s4235_s15  ;;  %v3919_v61 = vcombine.high %v1163_v43, %v1163_v43  ;;  %860 = vrot.lane.b32.xlu0 %v3902_v30, %s4235_s15  ;;  %v3896_v62 = vcombine.low %v658_v39, %v666_v40  ;;  %v3916_v0 = vcombine.low %v1162_v52, %v1162_v52  ;;  %vm264_vm1 = vcmask 273544  }
  0x26   : > { %v416_v63 = vpack.i.b16 %v415_v56, %v415_v56  ;;  %v3891_v1 = vcombine.low %v555_v44, %v562_v48  ;;  %v424_v2 = vpack.i.b16 %v423_v60, %v423_v60  ;;  %v3917_v3 = vcombine.high %v1162_v52, %v1162_v52 }
  0x27   : > { %v3890_v4 = vcombine.low %v541_v49, %v548_v50  ;;  %v437_v5 = vrot.slane %v432_v53, %v4372_v16  ;;  %v445_v6 = vrot.slane %v440_v55, %v4372_v16  ;;  %v1189_v7 = vpack.i.b16 %v3918_v58, %v3918_v58 }
  0x28   : > { %v421_v8 = vrot.slane %v416_v63, %v4372_v16  ;;  %v1196_v10 = vpack.i.b16 %v3919_v61, %v3919_v61  ;;  %v429_v11 = vrot.slane %v424_v2, %v4372_v16  ;;  %v1175_v12 = vpack.i.b16 %v3916_v0, %v3916_v0 }
  0x29   : > { %695 = vrot.lane.b32.xlu1 %v3897_v59, %s4236_s16  ;;  %693 = vrot.lane.b32.xlu0 %v3896_v62, %s4236_s16  ;;  %v1182_v13 = vpack.i.b16 %v3917_v3, %v3917_v3  ;;  %v5924_v14 = vmov 0   ;;  %v3885_v15 = vcombine.low %v437_v5, %v445_v6  ;;  %v1194_v18 = vrot.slane %v1189_v7, %v4372_v16 }
  0x2a   : > { %262 = vst.msk [vmem:[#allocation2] sm:$0xf] %vm261_vm0, %v5924_v14  ;;  %263 = vst.msk [vmem:[#allocation2 + $0x14] sm:$0xf] %vm261_vm0, %v5924_v14  ;;  %4149 = vset.pattern.permute.xlu1 %v5924_v14  ;;  %4148 = vset.pattern.permute.xlu0 %v5924_v14  ;;  %v1201_v19 = vrot.slane %v1196_v10, %v4372_v16  ;;  %v3884_v20 = vcombine.low %v421_v8, %v429_v11  ;;  %vm294_vm2 = vcmask 1043592   ;;  %vm295_vm3 = vcmask 1047556  }
  0x2b   : > { %1679 = vst.msk [vmem:[#allocation4] sm:$0xf] %vm261_vm0, %v5924_v14  ;;  %1680 = vst.msk [vmem:[#allocation4 + $0x14] sm:$0xf] %vm261_vm0, %v5924_v14  ;;  %v1180_v21 = vrot.slane %v1175_v12, %v4372_v16  ;;  %v1187_v22 = vrot.slane %v1182_v13, %v4372_v16  ;;  %vm287_vm4 = vcmask 138240   ;;  %v3874_v30 = vcombine.low %v336_v25, %v336_v25 }
  0x2c   : > { %1681 = vst.msk [vmem:[#allocation4 + $0x28] sm:$0xf] %vm261_vm0, %v5924_v14  ;;  %1682 = vst.msk [vmem:[#allocation4 + $0x3c] sm:$0xf] %vm261_vm0, %v5924_v14  ;;  %v3921_v23 = vcombine.low %v1194_v18, %v1201_v19  ;;  %v3875_v31 = vcombine.high %v336_v25, %v336_v25  ;;  %v3876_v38 = vcombine.low %v337_v32, %v337_v32  ;;  %vm464_vm6 = vcmask 1043456  }
  0x2d   : > { %265 = vst.msk [vmem:[#allocation2 + $0x10] sm:$0xf] %vm264_vm1, %v5924_v14  ;;  %266 = vst.msk [vmem:[#allocation2 + $0x24] sm:$0xf] %vm264_vm1, %v5924_v14  ;;  %575 = vrot.lane.b32.xlu1 %v3891_v1, %s4238_s17  ;;  %573 = vrot.lane.b32.xlu0 %v3890_v4, %s4238_s17  ;;  %v3920_v24 = vcombine.low %v1180_v21, %v1187_v22  ;;  %v3877_v39 = vcombine.high %v337_v32, %v337_v32  ;;  %vm1102_vm7 = vcmask 269312   ;;  %vm982_vm8 = vcmask 261120  }
  0x2e   : > { %1683 = vst.msk [vmem:[#allocation4 + $0x10] sm:$0xf] %vm264_vm1, %v5924_v14  ;;  %1684 = vst.msk [vmem:[#allocation4 + $0x24] sm:$0xf] %vm264_vm1, %v5924_v14  ;;  %v349_v41 = vpack.i.b16 %v3874_v30, %v3874_v30  ;;  %v356_v42 = vpack.i.b16 %v3875_v31, %v3875_v31  ;;  %v363_v46 = vpack.i.b16 %v3876_v38, %v3876_v38  ;;  %vm866_vm9 = vcmask 146432  }
  0x2f   : > { %1685 = vst.msk [vmem:[#allocation4 + $0x38] sm:$0xf] %vm264_vm1, %v5924_v14  ;;  %1686 = vst.msk [vmem:[#allocation4 + $0x4c] sm:$0xf] %vm264_vm1, %v5924_v14  ;;  %v370_v47 = vpack.i.b16 %v3877_v39, %v3877_v39  ;;  %vm699_vm10 = vcmask 130048   ;;  %vm579_vm11 = vcmask 15360  }
  0x30   : > { %vm4447_vm5 = vmor %vm295_vm3, %vm294_vm2  ;;  %v354_v49 = vrot.slane %v349_v41, %v4372_v16  ;;  %v361_v50 = vrot.slane %v356_v42, %v4372_v16  ;;  %v368_v53 = vrot.slane %v363_v46, %v4372_v16  ;;  %vm462_vm12 = vcmask 7168  }
  0x31   : > { %458 = vrot.lane.b32.xlu1 %v3885_v15, %s4239_s19  ;;  %456 = vrot.lane.b32.xlu0 %v3884_v20, %s4239_s19  ;;  %v375_v55 = vrot.slane %v370_v47, %v4372_v16  ;;  %vm1218_vm13 = vcmask 277504   ;;  %vm1140_vm14 = vcmask 777216   ;;  %vm5923_vm15 = vcmask 785408  }
  0x32   : > { %v3878_v58 = vcombine.low %v354_v49, %v361_v50  ;;  %vm5921_vm1 = vcmask 908288   ;;  %vm5922_vm2 = vcmask 900096   ;;  %vm737_vm3 = vcmask 916480  }
  0x33   : > { %v3879_v63 = vcombine.low %v368_v53, %v375_v55 }
  0x35   : > { %1214 = vrot.lane.b32.xlu1 %v3921_v23, %s4240_s20  ;;  %1212 = vrot.lane.b32.xlu0 %v3920_v24, %s4240_s20 }
  0x87   : > { %v317_v9 = vpop.permute.xlu1 %316  ;;  %v282_v27 = vpop.permute.xlu0 %281 }
  0x88   : > { %v320_v26 = vrot.slane %v317_v9, 4  ;;  %v285_v29 = vrot.slane %v282_v27, 4 }
  0x8a   : > { %v322_v33 = vsel %vm287_vm4, %v320_v26, %v317_v9  ;;  %329 = vst.msk [vmem:[#allocation2 + $0x10] sm:$0xf] %vm261_vm0, %v320_v26  ;;  %v288_v34 = vsel %vm287_vm4, %v285_v29, %v282_v27  ;;  %298 = vst.msk [vmem:[#allocation2 + $0x8] sm:$0xf] %vm261_vm0, %v285_v29 }
  0x8b   : > { %v319_v35 = vpop.permute.xlu1 %318  ;;  %297 = vst.msk [vmem:[#allocation2] sm:$0xff] %vm4447_vm5, %v288_v34  ;;  %328 = vst.msk [vmem:[#allocation2 + $0x8] sm:$0xff] %vm4447_vm5, %v322_v33  ;;  %v284_v37 = vpop.permute.xlu0 %283 }
  0x8c   : > { %v321_v36 = vrot.slane %v319_v35, 4  ;;  %v286_v40 = vrot.slane %v284_v37, 4 }
  0x8e   : > { %v323_v43 = vsel %vm287_vm4, %v321_v36, %v319_v35  ;;  %331 = vst.msk [vmem:[#allocation2 + $0x24] sm:$0xf] %vm261_vm0, %v321_v36  ;;  %v289_v44 = vsel %vm287_vm4, %v286_v40, %v284_v37  ;;  %300 = vst.msk [vmem:[#allocation2 + $0x1c] sm:$0xf] %vm261_vm0, %v286_v40 }
  0x8f   : > { %v4466_v45 = vpop.permute.xlu1 %1098  ;;  %299 = vst.msk [vmem:[#allocation2 + $0x14] sm:$0xff] %vm4447_vm5, %v289_v44  ;;  %330 = vst.msk [vmem:[#allocation2 + $0x1c] sm:$0xff] %vm4447_vm5, %v323_v43  ;;  %v1097_v34 = vpop.permute.xlu0 %1096 }
  0x90   : > { %v4487_v60 = vrot.slane %v4466_v45, 4  ;;  %v1100_v41 = vrot.slane %v1097_v34, 4 }
  0x91   : > { %v755_v48 = vld [vmem:[#allocation2 + $0x10] sm:$0xf] }
  0x92   : > { %769 = vrot.lane.b32.xlu0 %v755_v48, %s5911_s28  ;;  %v4477_v52 = vld [vmem:[#allocation2] sm:$0xff]  ;;  %v4493_v0 = vld [vmem:[#allocation2 + $0x8] sm:$0xff]  ;;  %v1038_v1 = vld [vmem:[#allocation2 + $0x10] sm:$0xf]  ;;  %v1104_v48 = vsel %vm464_vm6, %v1100_v41, %v4487_v60 }
  0x93   : > { %v4475_v51 = vpop.permute.xlu1 %978  ;;  %v4496_v2 = vmul.bf16 %v3878_v58, %v4477_v52  ;;  %v1111_v7 = vmul.bf16 %v4487_v60, %v1038_v1  ;;  %v4515_v8 = vmul.bf16 %v3879_v63, %v4493_v0  ;;  %v922_v13 = vld [vmem:[#allocation2 + $0x10] sm:$0xf]  ;;  %v977_v49 = vpop.permute.xlu0 %976 }
  0x94   : > { %v4511_v6 = vrot.slane %v4475_v51, 4  ;;  %v802_v24 = vld [vmem:[#allocation2 + $0x10] sm:$0xf]  ;;  %v980_v1 = vrot.slane %v977_v49, 4 }
  0x95   : > { %v758_v56 = vld [vmem:[#allocation2 + $0x24] sm:$0xf]  ;;  %v635_v29 = vld [vmem:[#allocation2 + $0x10] sm:$0xf] }
  0x96   : > { %775 = vrot.lane.b32.xlu1 %v758_v56, %s5911_s28  ;;  %765 = vrot.lane.b32.xlu0 %v4477_v52, %s5911_s28  ;;  %v4489_v61 = vld [vmem:[#allocation2 + $0x1c] sm:$0xff]  ;;  %v4491_v62 = vld [vmem:[#allocation2 + $0x14] sm:$0xff]  ;;  %v1041_v10 = vld [vmem:[#allocation2 + $0x24] sm:$0xf]  ;;  %v991_v20 = vmul.bf16 %v4511_v6, %v922_v13 }
  0x97   : > { %v4484_v59 = vpop.permute.xlu1 %862  ;;  %v4505_v4 = vmul.bf16 %v3878_v58, %v4491_v62  ;;  %v4508_v5 = vmul.bf16 %v3879_v63, %v4489_v61  ;;  %v1114_v21 = vmul.bf16 %v4487_v60, %v1041_v10  ;;  %v925_v23 = vld [vmem:[#allocation2 + $0x24] sm:$0xf]  ;;  %v519_v35 = vld [vmem:[#allocation2 + $0x10] sm:$0xf]  ;;  %v1103_v58 = vsel %vm1102_vm7, %v1100_v41, %v1097_v34  ;;  %v861_v13 = vpop.permute.xlu0 %860 }
  0x98   : > { %v4529_v19 = vrot.slane %v4484_v59, 4  ;;  %v994_v26 = vmul.bf16 %v4511_v6, %v925_v23  ;;  %v805_v30 = vld [vmem:[#allocation2 + $0x24] sm:$0xf]  ;;  %v398_v42 = vld [vmem:[#allocation2 + $0x10] sm:$0xf]  ;;  %v1105_v63 = vsel %vm1102_vm7, %v1104_v48, %v4466_v45  ;;  %v984_v10 = vsel %vm464_vm6, %v980_v1, %v4511_v6 }
  0x99   : > { %v3927_v11 = vcombine.high %v4496_v2, %v4505_v4  ;;  %v3929_v12 = vcombine.high %v4515_v8, %v4508_v5  ;;  %v3926_v15 = vcombine.low %v4496_v2, %v4505_v4  ;;  %v3928_v18 = vcombine.low %v4515_v8, %v4508_v5  ;;  %v638_v36 = vld [vmem:[#allocation2 + $0x24] sm:$0xf]  ;;  %v1158_v50 = vld [vmem:[#allocation2 + $0x10] sm:$0xf]  ;;  %v4185_v5 = vld [vmem:[%s5904_s1 + $0x14] ss:$8 sps:$4 sm:$0xff]  }
  0x9a   : > { %767 = vrot.lane.b32.xlu1 %v4493_v0, %s5911_s28  ;;  %773 = vrot.lane.b32.xlu0 %v4489_v61, %s5911_s28  ;;  %v875_v9 = vmul.bf16 %v4529_v19, %v802_v24  ;;  %v878_v33 = vmul.bf16 %v4529_v19, %v805_v30  ;;  %v522_v43 = vld [vmem:[#allocation2 + $0x24] sm:$0xf]  ;;  %v1110_v60 = vmul.bf16 %v1105_v63, %v4493_v0  ;;  %v864_v24 = vrot.slane %v861_v13, 4 }
  0x9b   : > { %v4502_v3 = vpop.permute.xlu1 %695  ;;  %v401_v53 = vld [vmem:[#allocation2 + $0x24] sm:$0xf]  ;;  %v1112_v45 = vmul.bf16 %v1103_v58, %v4491_v62  ;;  %v985_v23 = vsel %vm982_vm8, %v984_v10, %v4475_v51 }
  0x9c   : > { %v4538_v25 = vrot.slane %v4502_v3, 4  ;;  %v868_v6 = vsel %vm464_vm6, %v864_v24, %v4529_v19  ;;  %v993_v30 = vmul.bf16 %v985_v23, %v4489_v61 }
  0x9e   : > { %1125 = vrot.lane.b32.xlu0 %v1111_v7, %s5917_s29  ;;  %771 = vrot.lane.b32.xlu1 %v4491_v62, %s5911_s28  ;;  %v708_v32 = vmul.bf16 %v4538_v25, %v635_v29  ;;  %v711_v39 = vmul.bf16 %v4538_v25, %v638_v36  ;;  %v1109_v7 = vmul.bf16 %v1103_v58, %v4477_v52  ;;  %v694_v29 = vpop.permute.xlu0 %693  ;;  %s6029_s28 = sshll.u32 %s6031_s23, 5 }
  0x9f   : > { %v4533_v22 = vpop.permute.xlu1 %575  ;;  %v697_v34 = vrot.slane %v694_v29, 4 }
  0xa0   : > { %v4547_v31 = vrot.slane %v4533_v22, 4 }
  0xa1   : > { %v701_v19 = vsel %vm464_vm6, %v697_v34, %v4538_v25  ;;  %v700_v41 = vsel %vm699_vm10, %v697_v34, %v694_v29  ;;  %v1315_v29 = vld [vmem:[%s5905_s2 + $0x18] sm:$0xff] }
  0xa2   : > { %1005 = vrot.lane.b32.xlu0 %v991_v20, %s5915_s30  ;;  %1131 = vrot.lane.b32.xlu1 %v1114_v21, %s5917_s29  ;;  %v588_v38 = vmul.bf16 %v4547_v31, %v519_v35  ;;  %v591_v47 = vmul.bf16 %v4547_v31, %v522_v43  ;;  %v1113_v20 = vmul.bf16 %v1105_v63, %v4489_v61 }
  0xa3   : > { %v4544_v27 = vpop.permute.xlu1 %458  ;;  %v983_v21 = vsel %vm982_vm8, %v980_v1, %v977_v49 }
  0xa4   : > { %v4554_v37 = vrot.slane %v4544_v27, 4  ;;  %v992_v51 = vmul.bf16 %v983_v21, %v4491_v62 }
  0xa6   : > { %889 = vrot.lane.b32.xlu0 %v875_v9, %s5913_s7  ;;  %1011 = vrot.lane.b32.xlu1 %v994_v26, %s5915_s30  ;;  %v472_v46 = vmul.bf16 %v4554_v37, %v398_v42  ;;  %v475_v56 = vmul.bf16 %v4554_v37, %v401_v53  ;;  %v990_v9 = vmul.bf16 %v985_v23, %v4493_v0 }
  0xa7   : > { %v4558_v40 = vpop.permute.xlu1 %1214  ;;  %v989_v26 = vmul.bf16 %v983_v21, %v4477_v52  ;;  %v702_v42 = vsel %vm699_vm10, %v701_v19, %v4502_v3  ;;  %v709_v3 = vmul.bf16 %v4491_v62, %v700_v41  ;;  %v2212_v19 = vld [vmem:[%s5908_s5 + $0x8] sm:$0x22] }
  0xa8   : > { %v4563_v44 = vrot.slane %v4558_v40, 4  ;;  %v710_v49 = vmul.bf16 %v4489_v61, %v702_v42 }
  0xaa   : > { %722 = vrot.lane.b32.xlu0 %v708_v32, %s4245_s10  ;;  %895 = vrot.lane.b32.xlu1 %v878_v33, %s5913_s7  ;;  %v1227_v55 = vmul.bf16 %v4563_v44, %v1158_v50  ;;  %v867_v32 = vsel %vm866_vm9, %v864_v24, %v861_v13  ;;  %v869_v33 = vsel %vm866_vm9, %v868_v6, %v4484_v59 }
  0xab   : > { %v874_v35 = vmul.bf16 %v869_v33, %v4493_v0  ;;  %v873_v36 = vmul.bf16 %v867_v32, %v4477_v52  ;;  %v876_v59 = vmul.bf16 %v867_v32, %v4491_v62 }
  0xae   : > { %602 = vrot.lane.b32.xlu0 %v588_v38, %s4246_s12  ;;  %728 = vrot.lane.b32.xlu1 %v711_v39, %s4245_s10  ;;  %v574_v38 = vpop.permute.xlu0 %573  ;;  %v877_v39 = vmul.bf16 %v869_v33, %v4489_v61 }
  0xaf   : > { %v577_v43 = vrot.slane %v574_v38, 4 }
  0xb1   : > { %v581_v25 = vsel %vm464_vm6, %v577_v43, %v4547_v31  ;;  %v580_v50 = vsel %vm579_vm11, %v577_v43, %v574_v38 }
  0xb2   : > { %486 = vrot.lane.b32.xlu0 %v472_v46, %s5919_s13  ;;  %608 = vrot.lane.b32.xlu1 %v591_v47, %s4246_s12  ;;  %v707_v46 = vmul.bf16 %v4493_v0, %v702_v42  ;;  %v706_v47 = vmul.bf16 %v4477_v52, %v700_v41  ;;  %v457_v48 = vpop.permute.xlu0 %456  ;;  %v582_v53 = vsel %vm579_vm11, %v581_v25, %v4533_v22 }
  0xb3   : > { %v586_v58 = vmul.bf16 %v4477_v52, %v580_v50  ;;  %v589_v22 = vmul.bf16 %v4491_v62, %v580_v50  ;;  %v590_v1 = vmul.bf16 %v4489_v61, %v582_v53  ;;  %v3995_v41 = vcombine.high %v2212_v19, %v2212_v19  ;;  %v2045_v50 = vld [vmem:[%s5908_s5] sm:$0x22] }
  0xb6   : > { %1241 = vrot.lane.b32.xlu0 %v1227_v55, %s4248_s14  ;;  %492 = vrot.lane.b32.xlu1 %v475_v56, %s5919_s13  ;;  %v460_v55 = vrot.slane %v457_v48, 4  ;;  %v587_v56 = vmul.bf16 %v4493_v0, %v582_v53  ;;  %v1213_v63 = vpop.permute.xlu0 %1212 }
  0xb7   : > { %v1216_v10 = vrot.slane %v1213_v63, 4 }
  0xb8   : > { %v465_v31 = vsel %vm464_vm6, %v460_v55, %v4554_v37 }
  0xb9   : > { %v1220_v37 = vsel %vm464_vm6, %v1216_v10, %v4563_v44  ;;  %v1219_v21 = vsel %vm1218_vm13, %v1216_v10, %v1213_v63 }
  0xba   : > { %1123 = vrot.lane.b32.xlu1 %v1110_v60, %s5917_s29  ;;  %1121 = vrot.lane.b32.xlu0 %v1109_v7, %s5917_s29  ;;  %v463_v60 = vsel %vm462_vm12, %v460_v55, %v457_v48  ;;  %v466_v7 = vsel %vm462_vm12, %v465_v31, %v4544_v27  ;;  %v1221_v23 = vsel %vm1218_vm13, %v1220_v37, %v4558_v40  ;;  %v1875_v37 = vld [vmem:[%s5908_s5] sm:$0x11] }
  0xbb   : > { %v471_v13 = vmul.bf16 %v4493_v0, %v466_v7  ;;  %v474_v27 = vmul.bf16 %v4489_v61, %v466_v7  ;;  %v1226_v24 = vmul.bf16 %v1221_v23, %v4493_v0  ;;  %v1228_v40 = vmul.bf16 %v1219_v21, %v4491_v62 }
  0xbc   : > { %v1229_v6 = vmul.bf16 %v1221_v23, %v4489_v61  ;;  %v1312_v61 = vld [vmem:[%s5905_s2] sm:$0xff] }
  0xbe   : > { %1127 = vrot.lane.b32.xlu1 %v1112_v45, %s5917_s29  ;;  %1129 = vrot.lane.b32.xlu0 %v1113_v20, %s5917_s29  ;;  %v470_v45 = vmul.bf16 %v4477_v52, %v463_v60  ;;  %v473_v20 = vmul.bf16 %v4491_v62, %v463_v60  ;;  %v2979_v62 = vld [vmem:[%s5908_s5 + $0x10] sm:$0x11]  ;;  %v2046_v60 = vld [vmem:[%s5908_s5 + $0x8] sm:$0x22]  ;;  %s5954_s29 = smov 110  }
  0xbf   : > { %v4016_v32 = vcombine.low %v2979_v62, %v2979_v62  ;;  %v4017_v33 = vcombine.high %v2979_v62, %v2979_v62 }
  0xc1   : > { %v2992_v42 = vpack.i.b16 %v4016_v32, %v4016_v32  ;;  %v2999_v43 = vpack.i.b16 %v4017_v33, %v4017_v33 }
  0xc2   : > { %1003 = vrot.lane.b32.xlu1 %v990_v9, %s5915_s30  ;;  %1001 = vrot.lane.b32.xlu0 %v989_v26, %s5915_s30  ;;  %v1225_v9 = vmul.bf16 %v1219_v21, %v4477_v52  ;;  %v4184_v26 = vld [vmem:[%s5904_s1 + $0x4] ss:$8 sps:$4 sm:$0xff]  }
  0xc3   : > { %3962 = vmatprep.mubr.msk.bf16.mxu0 %vm699_vm10, %v4184_v26  ;;  %3964 = vmatprep.mubr.msk.bf16.mxu1 %vm699_vm10, %v4184_v26  ;;  %v1161_v52 = vld [vmem:[#allocation2 + $0x24] sm:$0xf]  ;;  %v2997_v53 = vrot.slane %v2992_v42, %v4372_v16  ;;  %v3004_v55 = vrot.slane %v2999_v43, %v4372_v16  ;;  %v3988_v26 = vcombine.low %v2046_v60, %v2046_v60 }
  0xc4   : > { %v1230_v0 = vmul.bf16 %v4563_v44, %v1161_v52  ;;  %v2980_v44 = vld [vmem:[%s5908_s5 + $0x18] sm:$0x11] }
  0xc5   : > { %v4018_v34 = vcombine.low %v2980_v44, %v2980_v44  ;;  %v4020_v7 = vcombine.low %v2997_v53, %v3004_v55  ;;  %v2072_v62 = vpack.i.b16 %v3988_v26, %v3988_v26 }
  0xc6   : > { %1007 = vrot.lane.b32.xlu1 %v992_v51, %s5915_s30  ;;  %1009 = vrot.lane.b32.xlu0 %v993_v30, %s5915_s30  ;;  %v1314_v51 = vld [vmem:[%s5905_s2 + $0x10] sm:$0xff]  ;;  %v1313_v30 = vld [vmem:[%s5905_s2 + $0x8] sm:$0xff] }
  0xca   : > { %887 = vrot.lane.b32.xlu1 %v874_v35, %s5913_s7  ;;  %885 = vrot.lane.b32.xlu0 %v873_v36, %s5913_s7  ;;  %v4019_v35 = vcombine.high %v2980_v44, %v2980_v44  ;;  %v2211_v36 = vld [vmem:[%s5908_s5] sm:$0x22]  ;;  %v3981_v44 = vcombine.high %v1875_v37, %v1875_v37 }
  0xcb   : > { %v3992_v38 = vcombine.low %v2211_v36, %v2211_v36 }
  0xcd   : > { %v2224_v25 = vshrl.u32 %v3992_v38, 16 }
  0xce   : > { %891 = vrot.lane.b32.xlu1 %v876_v59, %s5913_s7  ;;  %893 = vrot.lane.b32.xlu0 %v877_v39, %s5913_s7  ;;  %v3993_v59 = vcombine.high %v2211_v36, %v2211_v36  ;;  %v3994_v39 = vcombine.low %v2212_v19, %v2212_v19  ;;  %v2809_v36 = vld [vmem:[%s5908_s5] sm:$0x88]  ;;  %v2810_v19 = vld [vmem:[%s5908_s5 + $0x8] sm:$0x88] }
  0xcf   : > { %v2225_v31 = vpack.i.b16 %v2224_v25, %v2224_v25  ;;  %v4010_v25 = vcombine.low %v2809_v36, %v2809_v36 }
  0xd0   : > { %v2232_v48 = vshrl.u32 %v3993_v59, 16  ;;  %v2077_v59 = vrot.slane %v2072_v62, %v4361_v57 }
  0xd2   : > { %720 = vrot.lane.b32.xlu1 %v707_v46, %s4245_s10  ;;  %718 = vrot.lane.b32.xlu0 %v706_v47, %s4245_s10  ;;  %v3006_v46 = vpack.i.b16 %v4018_v34, %v4018_v34  ;;  %v3013_v47 = vpack.i.b16 %v4019_v35, %v4019_v35  ;;  %v2233_v63 = vpack.i.b16 %v2232_v48, %v2232_v48 }
  0xd3   : > { %v4011_v48 = vcombine.high %v2809_v36, %v2809_v36 }
  0xd6   : > { %724 = vrot.lane.b32.xlu1 %v709_v3, %s4245_s10  ;;  %726 = vrot.lane.b32.xlu0 %v710_v49, %s4245_s10  ;;  %v2240_v3 = vshrl.u32 %v3994_v39, 16  ;;  %v2248_v49 = vshrl.u32 %v3995_v41, 16  ;;  %v1896_v39 = vshrl.u32 %v3981_v44, 16 }
  0xda   : > { %600 = vrot.lane.b32.xlu1 %v587_v56, %s4246_s12  ;;  %598 = vrot.lane.b32.xlu0 %v586_v58, %s4246_s12  ;;  %v3011_v56 = vrot.slane %v3006_v46, %v4372_v16  ;;  %v3018_v58 = vrot.slane %v3013_v47, %v4372_v16  ;;  %v1897_v47 = vpack.i.b16 %v1896_v39, %v1896_v39 }
  0xdc   : > { %v4021_v10 = vcombine.low %v3011_v56, %v3018_v58 }
  0xde   : > { %604 = vrot.lane.b32.xlu1 %v589_v22, %s4246_s12  ;;  %606 = vrot.lane.b32.xlu0 %v590_v1, %s4246_s12  ;;  %v2241_v22 = vpack.i.b16 %v2240_v3, %v2240_v3  ;;  %v2249_v1 = vpack.i.b16 %v2248_v49, %v2248_v49  ;;  %v4012_v3 = vcombine.low %v2810_v19, %v2810_v19 }
  0xe0   : > { %v2246_v21 = vrot.slane %v2241_v22, %v4361_v57  ;;  %v2254_v23 = vrot.slane %v2249_v1, %v4361_v57  ;;  %v2830_v1 = vshrl.u32 %v4011_v48, 16 }
  0xe2   : > { %484 = vrot.lane.b32.xlu1 %v471_v13, %s5919_s13  ;;  %482 = vrot.lane.b32.xlu0 %v470_v45, %s5919_s13  ;;  %v3986_v13 = vcombine.low %v2045_v50, %v2045_v50  ;;  %v3987_v45 = vcombine.high %v2045_v50, %v2045_v50  ;;  %v3997_v52 = vcombine.low %v2246_v21, %v2254_v23 }
  0xe6   : > { %488 = vrot.lane.b32.xlu1 %v473_v20, %s5919_s13  ;;  %490 = vrot.lane.b32.xlu0 %v474_v27, %s5919_s13  ;;  %v2230_v20 = vrot.slane %v2225_v31, %v4361_v57  ;;  %v2238_v27 = vrot.slane %v2233_v63, %v4361_v57  ;;  %v2822_v31 = vshrl.u32 %v4010_v25, 16 }
  0xea   : > { %1239 = vrot.lane.b32.xlu1 %v1226_v24, %s4248_s14  ;;  %1237 = vrot.lane.b32.xlu0 %v1225_v9, %s4248_s14  ;;  %v2058_v24 = vpack.i.b16 %v3986_v13, %v3986_v13  ;;  %v2065_v9 = vpack.i.b16 %v3987_v45, %v3987_v45  ;;  %v2838_v13 = vshrl.u32 %v4012_v3, 16 }
  0xee   : > { %1243 = vrot.lane.b32.xlu1 %v1228_v40, %s4248_s14  ;;  %1245 = vrot.lane.b32.xlu0 %v1229_v6, %s4248_s14  ;;  %v1876_v40 = vld [vmem:[%s5908_s5 + $0x8] sm:$0x11]  ;;  %v3996_v6 = vcombine.low %v2230_v20, %v2238_v27  ;;  %v2831_v27 = vpack.i.b16 %v2830_v1, %v2830_v1 }
  0xef   : > { %v3982_v34 = vcombine.low %v1876_v40, %v1876_v40  ;;  %v3983_v35 = vcombine.high %v1876_v40, %v1876_v40 }
  0xf1   : > { %v1904_v43 = vshrl.u32 %v3982_v34, 16  ;;  %v1912_v46 = vshrl.u32 %v3983_v35, 16 }
  0xf2   : > { %1247 = vrot.lane.b32.xlu1 %v1230_v0, %s4248_s14  ;;  %1328 = vperm.xlu0 %4148, %v1314_v51   ;;  %v3989_v0 = vcombine.high %v2046_v60, %v2046_v60  ;;  %v2063_v51 = vrot.slane %v2058_v24, %v4361_v57  ;;  %v4013_v60 = vcombine.high %v2810_v19, %v2810_v19 }
  0xf3   : > { %v1905_v56 = vpack.i.b16 %v1904_v43, %v1904_v43  ;;  %v1913_v58 = vpack.i.b16 %v1912_v46, %v1912_v46  ;;  %v2839_v24 = vpack.i.b16 %v2838_v13, %v2838_v13 }
  0xf4   : > { %v2079_v32 = vpack.i.b16 %v3989_v0, %v3989_v0  ;;  %v2846_v21 = vshrl.u32 %v4013_v60, 16 }
  0xf5   : > { %v1910_v63 = vrot.slane %v1905_v56, %v4372_v16  ;;  %v1918_v22 = vrot.slane %v1913_v58, %v4372_v16  ;;  %v2844_v0 = vrot.slane %v2839_v24, %v4309_v17 }
  0xf6   : > { %1333 = vperm.xlu1 %4149, %v1315_v29   ;;  %1323 = vperm.xlu0 %4148, %v1313_v30   ;;  %v3980_v29 = vcombine.low %v1875_v37, %v1875_v37  ;;  %v2084_v41 = vrot.slane %v2079_v32, %v4361_v57  ;;  %v2847_v26 = vpack.i.b16 %v2846_v21, %v2846_v21 }
  0xf7   : > { %v3985_v20 = vcombine.low %v1910_v63, %v1918_v22 }
  0xf8   : > { %v1888_v33 = vshrl.u32 %v3980_v29, 16  ;;  %v3991_v53 = vcombine.low %v2077_v59, %v2084_v41  ;;  %v2852_v29 = vrot.slane %v2847_v26, %v4309_v17 }
  0xfa   : > { %1318 = vperm.xlu1 %4149, %v1312_v61   ;;  %3031 = vrot.lane.b32.xlu0 %v4021_v10, %s4240_s20  ;;  %v2070_v61 = vrot.slane %v2065_v9, %v4361_v57  ;;  %v1889_v42 = vpack.i.b16 %v1888_v33, %v1888_v33  ;;  %v1902_v57 = vrot.slane %v1897_v47, %v4372_v16 }
  0xfb   : > { %v2823_v10 = vpack.i.b16 %v2822_v31, %v2822_v31  ;;  %v2836_v9 = vrot.slane %v2831_v27, %v4309_v17  ;;  %v4015_v62 = vcombine.low %v2844_v0, %v2852_v29 }
  0xfc   : > { %v3990_v38 = vcombine.low %v2063_v51, %v2070_v61  ;;  %v1894_v55 = vrot.slane %v1889_v42, %v4372_v16 }
  0xfd   : > { %v2828_v23 = vrot.slane %v2823_v10, %v4309_v17 }
  0xfe   : > { %3029 = vrot.lane.b32.xlu1 %v4020_v7, %s4240_s20  ;;  %2267 = vrot.lane.b32.xlu0 %v3997_v52, %s4236_s16  ;;  %v3984_v7 = vcombine.low %v1894_v55, %v1902_v57 }
  0xff   : > { %v4014_v52 = vcombine.low %v2828_v23, %v2836_v9 }
 0x102   : > { %2265 = vrot.lane.b32.xlu1 %v3996_v6, %s4236_s16  ;;  %2097 = vrot.lane.b32.xlu0 %v3991_v53, %s4238_s17 }
 0x104   : > { %v4719_v30 = vpop.permute.xlu0 %769 }
 0x106   : > { %2095 = vrot.lane.b32.xlu1 %v3990_v38, %s4238_s17  ;;  %1931 = vrot.lane.b32.xlu0 %v3985_v20, %s4239_s19 }
 0x108   : > { %v4731_v49 = vpop.permute.xlu1 %775  ;;  %v4733_v50 = vpop.permute.xlu0 %765 }
 0x10a   : > { %1929 = vrot.lane.b32.xlu1 %v3984_v7, %s4239_s19  ;;  %2865 = vrot.lane.b32.xlu0 %v4015_v62, %s4233_s27 }
 0x10c   : > { %v4741_v45 = vpop.permute.xlu1 %767  ;;  %v4743_v37 = vpop.permute.xlu0 %773 }
 0x10e   : > { %2863 = vrot.lane.b32.xlu1 %v4014_v52, %s4233_s27 }
 0x110   : > { %v4749_v40 = vpop.permute.xlu1 %771  ;;  %v1126_v6 = vpop.permute.xlu0 %1125 }
 0x111   : > { %v1135_v47 = vrot.slane %v1126_v6, 4 }
 0x114   : > { %v1132_v51 = vpop.permute.xlu1 %1131  ;;  %v1006_v61 = vpop.permute.xlu0 %1005 }
 0x115   : > { %v1138_v25 = vrot.slane %v1132_v51, 4  ;;  %v1015_v9 = vrot.slane %v1006_v61, 4  ;;  %v781_v61 = vrot.slane %v4743_v37, 4 }
 0x118   : > { %v1012_v44 = vpop.permute.xlu1 %1011  ;;  %v4755_v32 = vpop.permute.xlu0 %889 }
 0x119   : > { %v1018_v26 = vrot.slane %v1012_v44, 4 }
 0x11c   : > { %v4757_v33 = vpop.permute.xlu1 %895  ;;  %v4759_v34 = vpop.permute.xlu0 %722 }
 0x120   : > { %v4761_v35 = vpop.permute.xlu1 %728  ;;  %v4763_v36 = vpop.permute.xlu0 %602 }
 0x124   : > { %v4765_v19 = vpop.permute.xlu1 %608  ;;  %v4767_v38 = vpop.permute.xlu0 %486 }
 0x128   : > { %v4769_v59 = vpop.permute.xlu1 %492  ;;  %v4771_v39 = vpop.permute.xlu0 %1241 }
 0x12c   : > { %v1124_v41 = vpop.permute.xlu1 %1123  ;;  %v1122_v42 = vpop.permute.xlu0 %1121 }
 0x12d   : > { %v1134_v43 = vrot.slane %v1124_v41, 4  ;;  %v1133_v46 = vrot.slane %v1122_v42, 4 }
 0x12f   : > { %v1139_v56 = vsel %vm464_vm6, %v1133_v46, %v1134_v43  ;;  %v1142_v58 = vsel %vm464_vm6, %v1134_v43, %v1135_v47  ;;  %v780_v43 = vrot.slane %v4749_v40, 4 }
 0x130   : > { %v1128_v48 = vpop.permute.xlu1 %1127  ;;  %v1130_v3 = vpop.permute.xlu0 %1129  ;;  %v1141_v1 = vsel %vm1140_vm14, %v1122_v42, %v1139_v56  ;;  %v1143_v7 = vsel %vm1140_vm14, %v1124_v41, %v1142_v58  ;;  %v779_v41 = vrot.slane %v4719_v30, 4  ;;  %v778_v42 = vrot.slane %v4741_v45, 4 }
 0x131   : > { %v1136_v53 = vrot.slane %v1128_v48, 4  ;;  %v1137_v55 = vrot.slane %v1130_v3, 4 }
 0x133   : > { %v1144_v57 = vsel %vm464_vm6, %v1136_v53, %v1137_v55  ;;  %v1146_v31 = vsel %vm464_vm6, %v1137_v55, %v1138_v25 }
 0x134   : > { %v1004_v63 = vpop.permute.xlu1 %1003  ;;  %v1002_v22 = vpop.permute.xlu0 %1001  ;;  %v1145_v60 = vsel %vm1140_vm14, %v1128_v48, %v1144_v57  ;;  %v1147_v10 = vsel %vm1140_vm14, %v1130_v3, %v1146_v31  ;;  %v782_v31 = vrot.slane %v4731_v49, 4 }
 0x135   : > { %v1014_v13 = vrot.slane %v1004_v63, 4  ;;  %v1013_v20 = vrot.slane %v1002_v22, 4  ;;  %v3955_v27 = vcombine.high %v1141_v1, %v1145_v60  ;;  %v3957_v21 = vcombine.high %v1143_v7, %v1147_v10 }
 0x136   : > { %v3954_v23 = vcombine.low %v1141_v1, %v1145_v60  ;;  %v3956_v24 = vcombine.low %v1143_v7, %v1147_v10  ;;  %v786_v7 = vsel %vm464_vm6, %v778_v42, %v779_v41  ;;  %v790_v10 = vsel %vm464_vm6, %v781_v61, %v782_v31 }
 0x137   : > { %1541 = vmatprep.subr.bf16.mxu0 %v3955_v27  ;;  %1594 = vmatprep.subr.bf16.mxu1 %v3957_v21  ;;  %v1022_v0 = vsel %vm464_vm6, %v1014_v13, %v1015_v9  ;;  %v1019_v29 = vsel %vm464_vm6, %v1013_v20, %v1014_v13  ;;  %v788_v13 = vsel %vm464_vm6, %v780_v43, %v781_v61  ;;  %v902_v20 = vrot.slane %v4757_v33, 4 }
 0x138   : > { %v1008_v6 = vpop.permute.xlu1 %1007  ;;  %1542 = vmatpush1.bf16.msra.mxu0 %v3954_v23  ;;  %1595 = vmatpush1.bf16.msra.mxu1 %v3956_v24  ;;  %v1010_v52 = vpop.permute.xlu0 %1009  ;;  %v1023_v47 = vsel %vm5923_vm15, %v1004_v63, %v1022_v0  ;;  %v1021_v25 = vsel %vm5923_vm15, %v1002_v22, %v1019_v29  ;;  %v899_v63 = vrot.slane %v4755_v32, 4  ;;  %v777_v22 = vrot.slane %v4733_v50, 4 }
 0x139   : > { %v1016_v51 = vrot.slane %v1008_v6, 4  ;;  %v1017_v62 = vrot.slane %v1010_v52, 4  ;;  %v787_v9 = vsel %vm5921_vm1, %v4741_v45, %v786_v7  ;;  %v789_v33 = vsel %vm5921_vm1, %v4749_v40, %v788_v13 }
 0x13a   : > { %v732_v40 = vrot.slane %v4759_v34, 4 }
 0x13b   : > { %v1026_v44 = vsel %vm464_vm6, %v1017_v62, %v1018_v26  ;;  %v1024_v46 = vsel %vm464_vm6, %v1016_v51, %v1017_v62  ;;  %v783_v26 = vsel %vm464_vm6, %v777_v22, %v778_v42 }
 0x13c   : > { %v1027_v48 = vsel %vm5923_vm15, %v1010_v52, %v1026_v44  ;;  %v888_v3 = vpop.permute.xlu1 %887  ;;  %v886_v53 = vpop.permute.xlu0 %885  ;;  %v1025_v30 = vsel %vm5923_vm15, %v1008_v6, %v1024_v46  ;;  %v791_v6 = vsel %vm5921_vm1, %v4743_v37, %v790_v10  ;;  %vm1256_vm15 = vcmask 769024  }
 0x13d   : > { %v898_v55 = vrot.slane %v888_v3, 4  ;;  %v897_v56 = vrot.slane %v886_v53, 4  ;;  %v3951_v58 = vcombine.high %v1021_v25, %v1025_v30  ;;  %v3953_v57 = vcombine.high %v1023_v47, %v1027_v48 }
 0x13e   : > { %v3950_v1 = vcombine.low %v1021_v25, %v1025_v30  ;;  %v3952_v60 = vcombine.low %v1023_v47, %v1027_v48  ;;  %v785_v25 = vsel %vm5921_vm1, %v4733_v50, %v783_v26  ;;  %v3944_v31 = vcombine.low %v787_v9, %v791_v6 }
 0x13f   : > { %1543 = vmatprep.subr.bf16.mxu0 %v3951_v58  ;;  %1596 = vmatprep.subr.bf16.mxu1 %v3953_v57  ;;  %v906_v21 = vsel %vm464_vm6, %v898_v55, %v899_v63  ;;  %v903_v23 = vsel %vm464_vm6, %v897_v56, %v898_v55  ;;  %v3943_v48 = vcombine.high %v785_v25, %v789_v33  ;;  %v735_v56 = vrot.slane %v4761_v35, 4 }
 0x140   : > { %v892_v27 = vpop.permute.xlu1 %891  ;;  %1544 = vmatpush1.bf16.msra.mxu0 %v3950_v1  ;;  %1597 = vmatpush1.bf16.msra.mxu1 %v3952_v60  ;;  %v894_v49 = vpop.permute.xlu0 %893  ;;  %v907_v29 = vsel %vm5922_vm2, %v888_v3, %v906_v21  ;;  %v905_v51 = vsel %vm5922_vm2, %v886_v53, %v903_v23  ;;  %v3945_v3 = vcombine.high %v787_v9, %v791_v6  ;;  %v615_v9 = vrot.slane %v4765_v19, 4 }
 0x141   : > { %v900_v32 = vrot.slane %v892_v27, 4  ;;  %v901_v24 = vrot.slane %v894_v49, 4  ;;  %v3942_v50 = vcombine.low %v785_v25, %v789_v33  ;;  %vm617_vm1 = vcmask 1031168  }
 0x142   : > { %v496_v25 = vrot.slane %v4767_v38, 4 }
 0x143   : > { %v910_v52 = vsel %vm464_vm6, %v901_v24, %v902_v20  ;;  %v908_v0 = vsel %vm464_vm6, %v900_v32, %v901_v24  ;;  %v612_v24 = vrot.slane %v4763_v36, 4 }
 0x144   : > { %v911_v62 = vsel %vm5922_vm2, %v894_v49, %v910_v52  ;;  %v721_v41 = vpop.permute.xlu1 %720  ;;  %v719_v45 = vpop.permute.xlu0 %718  ;;  %v909_v42 = vsel %vm5922_vm2, %v892_v27, %v908_v0  ;;  %vm501_vm2 = vcmask 1039360  }
 0x145   : > { %v731_v61 = vrot.slane %v721_v41, 4  ;;  %v730_v43 = vrot.slane %v719_v45, 4  ;;  %v3947_v37 = vcombine.high %v905_v51, %v909_v42  ;;  %v3949_v44 = vcombine.high %v907_v29, %v911_v62 }
 0x146   : > { %v3946_v46 = vcombine.low %v905_v51, %v909_v42  ;;  %v3948_v47 = vcombine.low %v907_v29, %v911_v62 }
 0x147   : > { %1545 = vmatprep.subr.bf16.mxu0 %v3947_v37  ;;  %1598 = vmatprep.subr.bf16.mxu1 %v3949_v44  ;;  %v739_v53 = vsel %vm464_vm6, %v731_v61, %v732_v40  ;;  %v736_v34 = vsel %vm464_vm6, %v730_v43, %v731_v61 }
 0x148   : > { %v725_v30 = vpop.permute.xlu1 %724  ;;  %1546 = vmatpush1.bf16.msra.mxu0 %v3946_v46  ;;  %1599 = vmatpush1.bf16.msra.mxu1 %v3948_v47  ;;  %v727_v55 = vpop.permute.xlu0 %726  ;;  %v740_v1 = vsel %vm737_vm3, %v721_v41, %v739_v53  ;;  %v738_v63 = vsel %vm737_vm3, %v719_v45, %v736_v34 }
 0x149   : > { %v733_v58 = vrot.slane %v725_v30, 4  ;;  %v734_v57 = vrot.slane %v727_v55, 4  ;;  %1547 = vmatprep.subr.bf16.mxu0 %v3943_v48  ;;  %1600 = vmatprep.subr.bf16.mxu1 %v3945_v3  ;;  %v499_v48 = vrot.slane %v4769_v59, 4 }
 0x14b   : > { %v743_v60 = vsel %vm464_vm6, %v734_v57, %v735_v56  ;;  %v741_v7 = vsel %vm464_vm6, %v733_v58, %v734_v57 }
 0x14c   : > { %v744_v22 = vsel %vm737_vm3, %v727_v55, %v743_v60  ;;  %v601_v10 = vpop.permute.xlu1 %600  ;;  %1548 = vmatpush1.bf16.msra.mxu0 %v3942_v50  ;;  %1601 = vmatpush1.bf16.msra.mxu1 %v3944_v31  ;;  %v599_v35 = vpop.permute.xlu0 %598  ;;  %v742_v13 = vsel %vm737_vm3, %v725_v30, %v741_v7 }
 0x14d   : > { %v611_v20 = vrot.slane %v601_v10, 4  ;;  %v610_v27 = vrot.slane %v599_v35, 4  ;;  %v3939_v49 = vcombine.high %v738_v63, %v742_v13  ;;  %v3941_v21 = vcombine.high %v740_v1, %v744_v22 }
 0x14e   : > { %v3938_v23 = vcombine.low %v738_v63, %v742_v13  ;;  %v3940_v32 = vcombine.low %v740_v1, %v744_v22 }
 0x14f   : > { %1549 = vmatprep.subr.bf16.mxu0 %v3939_v49  ;;  %1602 = vmatprep.subr.bf16.mxu1 %v3941_v21  ;;  %v619_v33 = vsel %vm464_vm6, %v611_v20, %v612_v24  ;;  %v616_v52 = vsel %vm464_vm6, %v610_v27, %v611_v20 }
 0x150   : > { %v605_v26 = vpop.permute.xlu1 %604  ;;  %1550 = vmatpush1.bf16.msra.mxu0 %v3938_v23  ;;  %1603 = vmatpush1.bf16.msra.mxu1 %v3940_v32  ;;  %v607_v6 = vpop.permute.xlu0 %606  ;;  %v620_v36 = vsel %vm617_vm1, %v601_v10, %v619_v33  ;;  %v618_v41 = vsel %vm617_vm1, %v599_v35, %v616_v52  ;;  %v1251_v32 = vrot.slane %v4771_v39, 4 }
 0x151   : > { %v613_v0 = vrot.slane %v605_v26, 4  ;;  %v614_v29 = vrot.slane %v607_v6, 4 }
 0x153   : > { %v623_v51 = vsel %vm464_vm6, %v614_v29, %v615_v9  ;;  %v621_v62 = vsel %vm464_vm6, %v613_v0, %v614_v29  ;;  %v4182_v0 = vld [vmem:[%s5904_s1] ss:$8 sps:$4 sm:$0xff]  }
 0x154   : > { %v624_v19 = vsel %vm617_vm1, %v607_v6, %v623_v51  ;;  %v485_v45 = vpop.permute.xlu1 %484  ;;  %v483_v42 = vpop.permute.xlu0 %482  ;;  %v622_v61 = vsel %vm617_vm1, %v605_v26, %v621_v62  ;;  %v2643_v29 = vld [vmem:[%s5908_s5] sm:$0x88] }
 0x155   : > { %v495_v43 = vrot.slane %v485_v45, 4  ;;  %v494_v37 = vrot.slane %v483_v42, 4  ;;  %v3935_v44 = vcombine.high %v618_v41, %v622_v61  ;;  %v3937_v40 = vcombine.high %v620_v36, %v624_v19 }
 0x156   : > { %v3934_v46 = vcombine.low %v618_v41, %v622_v61  ;;  %v3936_v47 = vcombine.low %v620_v36, %v624_v19  ;;  %v4004_v51 = vcombine.low %v2643_v29, %v2643_v29  ;;  %v4005_v62 = vcombine.high %v2643_v29, %v2643_v29  ;;  %v2644_v36 = vld [vmem:[%s5908_s5 + $0x8] sm:$0x88] }
 0x157   : > { %1551 = vmatprep.subr.bf16.mxu0 %v3935_v44  ;;  %1604 = vmatprep.subr.bf16.mxu1 %v3937_v40  ;;  %v503_v30 = vsel %vm464_vm6, %v495_v43, %v496_v25  ;;  %v500_v55 = vsel %vm464_vm6, %v494_v37, %v495_v43  ;;  %v4006_v41 = vcombine.low %v2644_v36, %v2644_v36  ;;  %v2474_v44 = vld [vmem:[%s5908_s5 + $0x8] sm:$0x44] }
 0x158   : > { %v489_v3 = vpop.permute.xlu1 %488  ;;  %1552 = vmatpush1.bf16.msra.mxu0 %v3934_v46  ;;  %1605 = vmatpush1.bf16.msra.mxu1 %v3936_v47  ;;  %v491_v53 = vpop.permute.xlu0 %490  ;;  %v504_v38 = vsel %vm501_vm2, %v485_v45, %v503_v30  ;;  %v502_v50 = vsel %vm501_vm2, %v483_v42, %v500_v55  ;;  %v4007_v19 = vcombine.high %v2644_v36, %v2644_v36  ;;  %v2473_v45 = vld [vmem:[%s5908_s5] sm:$0x44] }
 0x159   : > { %v497_v56 = vrot.slane %v489_v3, 4  ;;  %v498_v34 = vrot.slane %v491_v53, 4  ;;  %v2656_v42 = vpack.i.b16 %v4004_v51, %v4004_v51  ;;  %v2663_v61 = vpack.i.b16 %v4005_v62, %v4005_v62 }
 0x15a   : > { %v3998_v43 = vcombine.low %v2473_v45, %v2473_v45  ;;  %v3999_v37 = vcombine.high %v2473_v45, %v2473_v45  ;;  %v2670_v40 = vpack.i.b16 %v4006_v41, %v4006_v41  ;;  %v2677_v46 = vpack.i.b16 %v4007_v19, %v4007_v19 }
 0x15b   : > { %v507_v58 = vsel %vm464_vm6, %v498_v34, %v499_v48  ;;  %v505_v57 = vsel %vm464_vm6, %v497_v56, %v498_v34  ;;  %v4000_v47 = vcombine.low %v2474_v44, %v2474_v44  ;;  %v4001_v25 = vcombine.high %v2474_v44, %v2474_v44 }
 0x15c   : > { %v508_v59 = vsel %vm501_vm2, %v491_v53, %v507_v58  ;;  %v1240_v31 = vpop.permute.xlu1 %1239  ;;  %v1238_v1 = vpop.permute.xlu0 %1237  ;;  %v506_v60 = vsel %vm501_vm2, %v489_v3, %v505_v57  ;;  %v2661_v48 = vrot.slane %v2656_v42, %v4309_v17  ;;  %v2668_v3 = vrot.slane %v2663_v61, %v4309_v17 }
 0x15d   : > { %v1250_v7 = vrot.slane %v1240_v31, 4  ;;  %v1249_v63 = vrot.slane %v1238_v1, 4  ;;  %v3931_v22 = vcombine.high %v502_v50, %v506_v60  ;;  %v3933_v10 = vcombine.high %v504_v38, %v508_v59 }
 0x15e   : > { %v3930_v35 = vcombine.low %v502_v50, %v506_v60  ;;  %v3932_v13 = vcombine.low %v504_v38, %v508_v59  ;;  %v2486_v53 = vshrl.u32 %v3998_v43, 16  ;;  %v2494_v30 = vshrl.u32 %v3999_v37, 16 }
 0x15f   : > { %1553 = vmatprep.subr.bf16.mxu0 %v3931_v22  ;;  %1606 = vmatprep.subr.bf16.mxu1 %v3933_v10  ;;  %v1255_v49 = vsel %vm464_vm6, %v1249_v63, %v1250_v7  ;;  %v1258_v6 = vsel %vm464_vm6, %v1250_v7, %v1251_v32  ;;  %v2675_v55 = vrot.slane %v2670_v40, %v4309_v17  ;;  %v2502_v34 = vshrl.u32 %v4000_v47, 16 }
 0x160   : > { %v1244_v20 = vpop.permute.xlu1 %1243  ;;  %1554 = vmatpush1.bf16.msra.mxu0 %v3930_v35  ;;  %1607 = vmatpush1.bf16.msra.mxu1 %v3932_v13  ;;  %v1246_v27 = vpop.permute.xlu0 %1245  ;;  %v1257_v9 = vsel %vm1256_vm15, %v1238_v1, %v1255_v49  ;;  %v1259_v2 = vsel %vm1256_vm15, %v1240_v31, %v1258_v6  ;;  %v2682_v56 = vrot.slane %v2677_v46, %v4309_v17  ;;  %v2510_v58 = vshrl.u32 %v4001_v25, 16 }
 0x161   : > { %v1252_v21 = vrot.slane %v1244_v20, 4  ;;  %v1253_v23 = vrot.slane %v1246_v27, 4  ;;  %1555 = vmatprep.subr.bf16.mxu0 %v3927_v11  ;;  %1608 = vmatprep.subr.bf16.mxu1 %v3929_v12  ;;  %v4008_v57 = vcombine.low %v2661_v48, %v2668_v3  ;;  %v2487_v38 = vpack.i.b16 %v2486_v53, %v2486_v53 }
 0x162   : > { %v2495_v50 = vpack.i.b16 %v2494_v30, %v2494_v30  ;;  %v4009_v59 = vcombine.low %v2675_v55, %v2682_v56  ;;  %v2503_v31 = vpack.i.b16 %v2502_v34, %v2502_v34  ;;  %v2511_v1 = vpack.i.b16 %v2510_v58, %v2510_v58 }
 0x163   : > { %v1260_v24 = vsel %vm464_vm6, %v1252_v21, %v1253_v23  ;;  %2693 = vrot.lane.b32.xlu1 %v4008_v57, %s4234_s9  ;;  %v2492_v60 = vrot.slane %v2487_v38, %v4358_v54 }
 0x164   : > { %v1248_v26 = vpop.permute.xlu1 %1247  ;;  %1556 = vmatpush1.bf16.msra.mxu0 %v3926_v15  ;;  %1609 = vmatpush1.bf16.msra.mxu1 %v3928_v18  ;;  %v1261_v11 = vsel %vm1256_vm15, %v1244_v20, %v1260_v24  ;;  %v4187_v18 = vld [vmem:[%s5904_s1 + $0x10] ss:$8 sps:$4 sm:$0xff]   ;;  %v2500_v7 = vrot.slane %v2495_v50, %v4358_v54  ;;  %v2508_v63 = vrot.slane %v2503_v31, %v4358_v54 }
 0x165   : > { %v1254_v12 = vrot.slane %v1248_v26, 4  ;;  %v3959_v33 = vcombine.high %v1257_v9, %v1261_v11  ;;  %v3958_v39 = vcombine.low %v1257_v9, %v1261_v11  ;;  %2695 = vrot.lane.b32.xlu0 %v4009_v59, %s4234_s9  ;;  %v2516_v17 = vrot.slane %v2511_v1, %v4358_v54  ;;  %s5952_s9 = smov 95  }
 0x166   : > { %v4002_v22 = vcombine.low %v2492_v60, %v2500_v7 }
 0x167   : > { %v1262_v52 = vsel %vm464_vm6, %v1253_v23, %v1254_v12  ;;  %1571 = vmatprep.subr.bf16.mxu0 %v3959_v33  ;;  %v4003_v10 = vcombine.low %v2508_v63, %v2516_v17 }
 0x168   : > { %1572 = vmatpush2.bf16.msra.mxu0 %v3958_v39  ;;  %v1263_v4 = vsel %vm1256_vm15, %v1246_v27, %v1262_v52  ;;  %2527 = vrot.lane.b32.xlu1 %v4002_v22, %s4235_s15 }
 0x169   : > { %v3961_v8 = vcombine.high %v1259_v2, %v1263_v4  ;;  %v3960_v15 = vcombine.low %v1259_v2, %v1263_v4  ;;  %2529 = vrot.lane.b32.xlu0 %v4003_v10, %s4235_s15  ;;  %s5953_s15 = smov 96  }
 0x16b   : > { %1574 = vmatmul.mubr.bf16.vlgmr.msra.gmra.mxu0 %v4182_v0  ;;  %1624 = vmatprep.subr.bf16.mxu1 %v3961_v8 }
 0x16c   : > { %1625 = vmatpush2.bf16.msra.mxu1 %v3960_v15  ;;  %3963 = vmatprep.mubr.msk.bf16.mxu0 %vm699_vm10, %v4185_v5 }
 0x16d   : > { %v1329_v13 = vpop.permute.xlu0 %1328 }
 0x16f   : > { %1627 = vmatmul.mubr.bf16.vlgmr.msra.gmra.mxu1 %v4182_v0 }
 0x170   : > { %3965 = vmatprep.mubr.msk.bf16.mxu1 %vm699_vm10, %v4185_v5 }
 0x171   : > { %v4904_v35 = vpop.permute.xlu1 %1333  ;;  %v1324_v23 = vpop.permute.xlu0 %1323 }
 0x173   : > { %1584 = vmatmul.mubr.bf16.gmra.mxu0 %v4187_v18 }
 0x175   : > { %v1319_v20 = vpop.permute.xlu1 %1318 }
 0x177   : > { %1637 = vmatmul.mubr.bf16.gmra.mxu1 %v4187_v18 }
 0x178   : > { %3675 = vmatprep.mubr.bf16.mxu1 %v5924_v14  ;;  %v3210_v14 = vld [vmem:[%s5907_s4 + $0x8] sm:$0xff] }
 0x22b   : > { %v1575_v27 = vpop.f32.mrf.mxu0 }
 0x22c   : > { %v1576_v49 = vadd.f32 %v1575_v27, %v1319_v20 }
 0x22d   : > { %v1577_v21 = vpop.f32.mrf.mxu0 }
 0x22e   : > { %v1578_v32 = vadd.f32 %v1577_v21, %v1319_v20  ;;  %v1647_v24 = vmul.f32 0.2, %v1576_v49 }
 0x22f   : > { %v1579_v9 = vpop.f32.mrf.mxu0  ;;  %v1628_v26 = vpop.f32.mrf.mxu1 }
 0x230   : > { %v1648_v11 = vmul.f32 0.2, %v1578_v32  ;;  %v1629_v54 = vadd.f32 %v1628_v26, %v1319_v20  ;;  %v1580_v6 = vadd.f32 %v1579_v9, %v1324_v23  ;;  %v1663_v2 = vmax.f32 %v1576_v49, %v1647_v24 }
 0x231   : > { %v1581_v12 = vpop.f32.mrf.mxu0  ;;  %v1630_v33 = vpop.f32.mrf.mxu1 }
 0x232   : > { %v1664_v39 = vmax.f32 %v1578_v32, %v1648_v11  ;;  %v1582_v52 = vadd.f32 %v1581_v12, %v1324_v23  ;;  %v1631_v0 = vadd.f32 %v1630_v33, %v1319_v20  ;;  %v1649_v4 = vmul.f32 0.2, %v1629_v54 }
 0x233   : > { %v1585_v5 = vpop.f32.mrf.mxu0  ;;  %v1632_v8 = vpop.f32.mrf.mxu1  ;;  %v1651_v15 = vmul.f32 0.2, %v1580_v6 }
 0x234   : > { %v1652_v18 = vmul.f32 0.2, %v1582_v52  ;;  %v1650_v29 = vmul.f32 0.2, %v1631_v0  ;;  %v1586_v51 = vadd.f32 %v1585_v5, %v1329_v13  ;;  %v1633_v62 = vadd.f32 %v1632_v8, %v1324_v23 }
 0x235   : > { %v1587_v36 = vpop.f32.mrf.mxu0  ;;  %v1634_v41 = vpop.f32.mrf.mxu1  ;;  %v4115_v19 = vpack.c.bf16 %v1664_v39, %v1663_v2  ;;  %v1667_v45 = vmax.f32 %v1580_v6, %v1651_v15  ;;  %v1665_v44 = vmax.f32 %v1629_v54, %v1649_v4 }
 0x236   : > { %v1668_v42 = vmax.f32 %v1582_v52, %v1652_v18  ;;  %v1666_v61 = vmax.f32 %v1631_v0, %v1650_v29  ;;  %v1655_v43 = vmul.f32 0.2, %v1586_v51  ;;  %v1588_v37 = vadd.f32 %v1587_v36, %v1329_v13  ;;  %v4918_v39 = vpop.permute.xlu1 %3029 }
 0x237   : > { %v1653_v40 = vmul.f32 0.2, %v1633_v62  ;;  %v1635_v46 = vadd.f32 %v1634_v41, %v1324_v23  ;;  %1727 = vrot.lane.b32.xlu1 %v4115_v19, %s4232_s18  ;;  %v1589_v47 = vpop.f32.mrf.mxu0  ;;  %v1638_v25 = vpop.f32.mrf.mxu1  ;;  %v3033_v19 = vrot.slane %v4918_v39, 4 }
 0x238   : > { %v1656_v48 = vmul.f32 0.2, %v1588_v37  ;;  %v1590_v3 = vadd.f32 %v1589_v47, %v4904_v35  ;;  %v1639_v53 = vadd.f32 %v1638_v25, %v1329_v13  ;;  %v1671_v30 = vmax.f32 %v1586_v51, %v1655_v43 }
 0x239   : > { %v1654_v55 = vmul.f32 0.2, %v1635_v46  ;;  %v1591_v56 = vpop.f32.mrf.mxu0  ;;  %v1640_v34 = vpop.f32.mrf.mxu1  ;;  %v4116_v58 = vpack.c.bf16 %v1666_v61, %v1665_v44  ;;  %v4117_v57 = vpack.c.bf16 %v1668_v42, %v1667_v45  ;;  %v1669_v1 = vmax.f32 %v1633_v62, %v1653_v40 }
 0x23a   : > { %v1672_v38 = vmax.f32 %v1588_v37, %v1656_v48  ;;  %v1659_v50 = vmul.f32 0.2, %v1590_v3  ;;  %v1657_v59 = vmul.f32 0.2, %v1639_v53  ;;  %v1592_v31 = vadd.f32 %v1591_v56, %v4904_v35  ;;  %v4920_v52 = vpop.permute.xlu1 %2265 }
 0x23b   : > { %v1670_v60 = vmax.f32 %v1635_v46, %v1654_v55  ;;  %v1641_v7 = vadd.f32 %v1640_v34, %v1329_v13  ;;  %1729 = vrot.lane.b32.xlu0 %v4116_v58, %s4232_s18  ;;  %1731 = vrot.lane.b32.xlu1 %v4117_v57, %s4232_s18  ;;  %v1642_v63 = vpop.f32.mrf.mxu1  ;;  %v2269_v43 = vrot.slane %v4920_v52, 4 }
 0x23c   : > { %v1660_v17 = vmul.f32 0.2, %v1592_v31  ;;  %v1643_v22 = vadd.f32 %v1642_v63, %v4904_v35  ;;  %v1673_v10 = vmax.f32 %v1639_v53, %v1657_v59  ;;  %v4119_v21 = vpack.c.bf16 %v1672_v38, %v1671_v30 }
 0x23d   : > { %v1658_v20 = vmul.f32 0.2, %v1641_v7  ;;  %v1644_v27 = vpop.f32.mrf.mxu1  ;;  %v4118_v49 = vpack.c.bf16 %v1670_v60, %v1669_v1  ;;  %v1675_v23 = vmax.f32 %v1590_v3, %v1659_v50 }
 0x23e   : > { %v1676_v32 = vmax.f32 %v1592_v31, %v1660_v17  ;;  %v1661_v24 = vmul.f32 0.2, %v1643_v22  ;;  %v1645_v9 = vadd.f32 %v1644_v27, %v4904_v35  ;;  %v3032_v35 = vpop.permute.xlu0 %3031  ;;  %v4922_v2 = vpop.permute.xlu1 %2095 }
 0x23f   : > { %v1674_v26 = vmax.f32 %v1641_v7, %v1658_v20  ;;  %1733 = vrot.lane.b32.xlu0 %v4118_v49, %s4232_s18  ;;  %1735 = vrot.lane.b32.xlu1 %v4119_v21, %s4232_s18  ;;  %v4941_v45 = vrot.slane %v3032_v35, 4  ;;  %v2099_v55 = vrot.slane %v4922_v2, 4 }
 0x240   : > { %v1662_v13 = vmul.f32 0.2, %v1645_v9  ;;  %v4121_v11 = vpack.c.bf16 %v1676_v32, %v1675_v23  ;;  %v1677_v6 = vmax.f32 %v1643_v22, %v1661_v24 }
 0x241   : > { %v4120_v54 = vpack.c.bf16 %v1674_v26, %v1673_v10  ;;  %v3036_v46 = vsel %vm464_vm6, %v3033_v19, %v4941_v45 }
 0x242   : > { %v1678_v12 = vmax.f32 %v1645_v9, %v1662_v13  ;;  %v2268_v0 = vpop.permute.xlu0 %2267  ;;  %v4924_v5 = vpop.permute.xlu1 %1929  ;;  %v4957_v53 = vsel %vm1218_vm13, %v3036_v46, %v3032_v35 }
 0x243   : > { %1737 = vrot.lane.b32.xlu0 %v4120_v54, %s4232_s18  ;;  %1739 = vrot.lane.b32.xlu1 %v4121_v11, %s4232_s18  ;;  %v4945_v37 = vrot.slane %v2268_v0, 4  ;;  %v1933_v7 = vrot.slane %v4924_v5, 4 }
 0x244   : > { %v4122_v33 = vpack.c.bf16 %v1678_v12, %v1677_v6 }
 0x245   : > { %v2272_v30 = vsel %vm464_vm6, %v2269_v43, %v4945_v37 }
 0x246   : > { %v2098_v4 = vpop.permute.xlu0 %2097  ;;  %v4928_v15 = vpop.permute.xlu1 %2863  ;;  %v4979_v60 = vsel %vm699_vm10, %v2272_v30, %v2268_v0 }
 0x247   : > { %1741 = vrot.lane.b32.xlu0 %v4122_v33, %s4232_s18  ;;  %v4969_v57 = vrot.slane %v2098_v4, 4  ;;  %v2867_v12 = vrot.slane %v4928_v15, 4  ;;  %s5951_s18 = smov 127  }
 0x249   : > { %v2102_v20 = vsel %vm464_vm6, %v2099_v55, %v4969_v57 }
 0x24a   : > { %v4926_v8 = vpop.permute.xlu0 %1931  ;;  %v4932_v29 = vpop.permute.xlu1 %2693  ;;  %v5003_v26 = vsel %vm579_vm11, %v2102_v20, %v2098_v4 }
 0x24b   : > { %v4983_v63 = vrot.slane %v4926_v8, 4 }
 0x24d   : > { %v1936_v13 = vsel %vm464_vm6, %v1933_v7, %v4983_v63 }
 0x24e   : > { %v4930_v18 = vpop.permute.xlu0 %2865  ;;  %v4936_v62 = vpop.permute.xlu1 %2527 }
 0x24f   : > { %v5016_v33 = vrot.slane %v4930_v18, 4 }
 0x252   : > { %v4934_v51 = vpop.permute.xlu0 %2695 }
 0x253   : > { %v5039_v46 = vrot.slane %v4934_v51, 4 }
 0x256   : > { %v4938_v36 = vpop.permute.xlu0 %2529 }
 0x2a9   : > { %v1728_v41 = vpop.permute.xlu1 %1727 }
 0x2aa   : > { %v1743_v42 = vrot.slane %v1728_v41, 4 }
 0x2ac   : > { %v1751_v61 = vsel %vm287_vm4, %v1743_v42, %v1728_v41  ;;  %v5028_v41 = vsel %vm462_vm12, %v1936_v13, %v4926_v8 }
 0x2ad   : > { %1775 = vst.msk [vmem:[#allocation4] sm:$0xff] %vm4447_vm5, %v1751_v61  ;;  %v1732_v44 = vpop.permute.xlu1 %1731  ;;  %v1730_v40 = vpop.permute.xlu0 %1729 }
 0x2ae   : > { %v1745_v47 = vrot.slane %v1732_v44, 4  ;;  %v1744_v25 = vrot.slane %v1730_v40, 4 }
 0x2b0   : > { %v1754_v48 = vsel %vm287_vm4, %v1745_v47, %v1732_v44  ;;  %v1752_v3 = vsel %vm464_vm6, %v1743_v42, %v1744_v25  ;;  %1777 = vst.msk [vmem:[#allocation4 + $0x10] sm:$0xf] %vm261_vm0, %v1744_v25  ;;  %v2870_v44 = vsel %vm464_vm6, %v2867_v12, %v5016_v33 }
 0x2b1   : > { %1778 = vst.msk [vmem:[#allocation4 + $0x14] sm:$0xff] %vm4447_vm5, %v1754_v48  ;;  %v4967_v56 = vsel %vm287_vm4, %v1752_v3, %v1730_v40  ;;  %v1736_v34 = vpop.permute.xlu1 %1735  ;;  %v1734_v58 = vpop.permute.xlu0 %1733  ;;  %v2697_v40 = vrot.slane %v4932_v29, 4  ;;  %v5049_v25 = vsel %vm1102_vm7, %v2870_v44, %v4930_v18 }
 0x2b2   : > { %1776 = vst [vmem:[#allocation4 + $0x8] sm:$0xff] %v4967_v56  ;;  %v1747_v38 = vrot.slane %v1736_v34, 4  ;;  %v1746_v50 = vrot.slane %v1734_v58, 4  ;;  %v3042_v59 = vmul.bf16 %v4957_v53, %v4967_v56  ;;  %v2278_v21 = vmul.bf16 %v4979_v60, %v4967_v56 }
 0x2b3   : > { %v2108_v0 = vmul.bf16 %v5003_v26, %v4967_v56  ;;  %v1942_v8 = vmul.bf16 %v5028_v41, %v4967_v56  ;;  %v2700_v3 = vsel %vm464_vm6, %v2697_v40, %v5039_v46  ;;  %v2876_v30 = vmul.bf16 %v5049_v25, %v4967_v56 }
 0x2b4   : > { %v1757_v31 = vsel %vm287_vm4, %v1747_v38, %v1736_v34  ;;  %v1755_v1 = vsel %vm464_vm6, %v1745_v47, %v1746_v50  ;;  %1780 = vst.msk [vmem:[#allocation4 + $0x24] sm:$0xf] %vm261_vm0, %v1746_v50  ;;  %3067 = vrot.lane.b32.xlu0 %v3042_v59, %s4248_s14  ;;  %v5129_v13 = vsel %vm982_vm8, %v2697_v40, %v4932_v29 }
 0x2b5   : > { %1781 = vst.msk [vmem:[#allocation4 + $0x28] sm:$0xff] %vm4447_vm5, %v1757_v31  ;;  %v4988_v17 = vsel %vm287_vm4, %v1755_v1, %v1734_v58  ;;  %v1740_v22 = vpop.permute.xlu1 %1739  ;;  %v1738_v10 = vpop.permute.xlu0 %1737  ;;  %v5060_v58 = vsel %vm982_vm8, %v2700_v3, %v4934_v51  ;;  %v5067_v31 = vld [vmem:[#allocation4] sm:$0xff]  ;;  %v5075_v51 = vsel %vm1218_vm13, %v3033_v19, %v4918_v39  ;;  %vm5996_vm13 = vcmask 900096  }
 0x2b6   : > { %1779 = vst [vmem:[#allocation4 + $0x1c] sm:$0xff] %v4988_v17  ;;  %v1749_v27 = vrot.slane %v1740_v22, 4  ;;  %v1748_v49 = vrot.slane %v1738_v10, 4  ;;  %v2706_v18 = vmul.bf16 %v5060_v58, %v4967_v56  ;;  %v2111_v29 = vmul.bf16 %v5003_v26, %v4988_v17 }
 0x2b7   : > { %v2201_v23 = vld [vmem:[#allocation4 + $0x10] sm:$0xf]  ;;  %v2709_v44 = vmul.bf16 %v5060_v58, %v4988_v17 }
 0x2b8   : > { %v1760_v32 = vsel %vm287_vm4, %v1749_v27, %v1740_v22  ;;  %v1758_v24 = vsel %vm464_vm6, %v1747_v38, %v1748_v49  ;;  %1783 = vst.msk [vmem:[#allocation4 + $0x38] sm:$0xf] %vm261_vm0, %v1748_v49  ;;  %v2279_v9 = vmul.bf16 %v4945_v37, %v2201_v23  ;;  %2303 = vrot.lane.b32.xlu0 %v2278_v21, %s4245_s10  ;;  %v2035_v6 = vld [vmem:[#allocation4 + $0x10] sm:$0xf] }
 0x2b9   : > { %1784 = vst.msk [vmem:[#allocation4 + $0x3c] sm:$0xff] %vm4447_vm5, %v1760_v32  ;;  %v5012_v11 = vsel %vm287_vm4, %v1758_v24, %v1738_v10  ;;  %v1742_v54 = vpop.permute.xlu0 %1741  ;;  %v2109_v4 = vmul.bf16 %v4969_v57, %v2035_v6  ;;  %v1865_v61 = vld [vmem:[#allocation4 + $0x10] sm:$0xf]  ;;  %v3041_v10 = vmul.bf16 %v5075_v51, %v5067_v31  ;;  %v5097_v21 = vsel %vm579_vm11, %v2099_v55, %v4922_v2 }
 0x2ba   : > { %1782 = vst [vmem:[#allocation4 + $0x30] sm:$0xff] %v5012_v11  ;;  %v1750_v35 = vrot.slane %v1742_v54, 4  ;;  %2305 = vrot.lane.b32.xlu1 %v2279_v9, %s4245_s10  ;;  %v1943_v47 = vmul.bf16 %v4983_v63, %v1865_v61  ;;  %v2799_v48 = vld [vmem:[#allocation4 + $0x10] sm:$0xf]  ;;  %v5108_v32 = vsel %vm462_vm12, %v1933_v7, %v4924_v5  ;;  %v5119_v9 = vsel %vm1102_vm7, %v2867_v12, %v4928_v15  ;;  %v5134_v15 = vld [vmem:[#allocation4 + $0x14] sm:$0xff] }
 0x2bb   : > { %v2877_v34 = vmul.bf16 %v5016_v33, %v2799_v48  ;;  %v2633_v38 = vld [vmem:[#allocation4 + $0x10] sm:$0xf]  ;;  %v2204_v50 = vld [vmem:[#allocation4 + $0x24] sm:$0xf]  ;;  %v1941_v2 = vmul.bf16 %v5067_v31, %v5108_v32  ;;  %v2875_v5 = vmul.bf16 %v5067_v31, %v5119_v9  ;;  %v3045_v7 = vmul.bf16 %v4957_v53, %v4988_v17 }
 0x2bc   : > { %v1761_v28 = vsel %vm464_vm6, %v1749_v27, %v1750_v35  ;;  %1786 = vst.msk [vmem:[#allocation4 + $0x4c] sm:$0xf] %vm261_vm0, %v1750_v35  ;;  %2133 = vrot.lane.b32.xlu0 %v2108_v0, %s4246_s12  ;;  %v2707_v59 = vmul.bf16 %v5039_v46, %v2633_v38  ;;  %v2282_v1 = vmul.bf16 %v4945_v37, %v2204_v50  ;;  %v2038_v22 = vld [vmem:[#allocation4 + $0x24] sm:$0xf]  ;;  %vm5956_vm0 = vcmask 785408  }
 0x2bd   : > { %v5031_v42 = vsel %vm287_vm4, %v1761_v28, %v1742_v54  ;;  %v2112_v20 = vmul.bf16 %v4969_v57, %v2038_v22  ;;  %v5086_v27 = vsel %vm699_vm10, %v2269_v43, %v4920_v52  ;;  %v1868_v49 = vld [vmem:[#allocation4 + $0x24] sm:$0xf]  ;;  %v2107_v52 = vmul.bf16 %v5067_v31, %v5097_v21  ;;  %vm5960_vm4 = vmmov %vm5956_vm0 }
 0x2be   : > { %1785 = vst [vmem:[#allocation4 + $0x44] sm:$0xff] %v5031_v42  ;;  %2135 = vrot.lane.b32.xlu1 %v2109_v4, %s4246_s12  ;;  %v2277_v39 = vmul.bf16 %v5067_v31, %v5086_v27  ;;  %v1946_v19 = vmul.bf16 %v4983_v63, %v1868_v49  ;;  %v2802_v23 = vld [vmem:[#allocation4 + $0x24] sm:$0xf]  ;;  %v2705_v54 = vmul.bf16 %v5067_v31, %v5129_v13  ;;  %vm5963_vm5 = vmmov %vm5956_vm0 }
 0x2bf   : > { %v2880_v43 = vmul.bf16 %v5016_v33, %v2802_v23  ;;  %v2636_v24 = vld [vmem:[#allocation4 + $0x24] sm:$0xf]  ;;  %v2281_v6 = vmul.bf16 %v4979_v60, %v4988_v17  ;;  %v3044_v12 = vmul.bf16 %v5075_v51, %v5134_v15  ;;  %v2280_v35 = vmul.bf16 %v5134_v15, %v5086_v27  ;;  %v2207_v48 = vld [vmem:[#allocation4 + $0x38] sm:$0xf]  ;;  %vm5966_vm7 = vmmov %vm5956_vm0 }
 0x2c0   : > { %1967 = vrot.lane.b32.xlu0 %v1942_v8, %s5951_s18  ;;  %v2710_v55 = vmul.bf16 %v5039_v46, %v2636_v24  ;;  %v1945_v0 = vmul.bf16 %v5028_v41, %v4988_v17  ;;  %v2110_v28 = vmul.bf16 %v5134_v15, %v5097_v21  ;;  %v2879_v4 = vmul.bf16 %v5049_v25, %v4988_v17  ;;  %v1871_v50 = vld [vmem:[#allocation4 + $0x38] sm:$0xf]  ;;  %vm5987_vm10 = vmmov %vm5956_vm0 }
 0x2c1   : > { %v1944_v61 = vmul.bf16 %v5134_v15, %v5108_v32  ;;  %v2878_v40 = vmul.bf16 %v5134_v15, %v5119_v9  ;;  %v3048_v8 = vmul.bf16 %v4957_v53, %v5012_v11  ;;  %v2284_v3 = vmul.bf16 %v4979_v60, %v5012_v11  ;;  %v2805_v22 = vld [vmem:[#allocation4 + $0x38] sm:$0xf]  ;;  %vm5989_vm11 = vmmov %vm5956_vm0 }
 0x2c2   : > { %1969 = vrot.lane.b32.xlu1 %v1943_v47, %s5951_s18  ;;  %v2708_v47 = vmul.bf16 %v5134_v15, %v5129_v13  ;;  %v2114_v38 = vmul.bf16 %v5003_v26, %v5012_v11  ;;  %v2882_v49 = vmul.bf16 %v5049_v25, %v5012_v11  ;;  %vm5990_vm12 = vmmov %vm5956_vm0 }
 0x2c4   : > { %2901 = vrot.lane.b32.xlu0 %v2876_v30, %s5952_s9  ;;  %v2285_v30 = vmul.bf16 %v4945_v37, %v2207_v48 }
 0x2c6   : > { %2903 = vrot.lane.b32.xlu1 %v2877_v34, %s5952_s9  ;;  %v2041_v34 = vld [vmem:[#allocation4 + $0x38] sm:$0xf] }
 0x2c8   : > { %2731 = vrot.lane.b32.xlu0 %v2706_v18, %s5953_s15  ;;  %v2115_v18 = vmul.bf16 %v4969_v57, %v2041_v34 }
 0x2ca   : > { %2733 = vrot.lane.b32.xlu1 %v2707_v59, %s5953_s15  ;;  %v1948_v59 = vmul.bf16 %v5028_v41, %v5012_v11 }
 0x2cc   : > { %2311 = vrot.lane.b32.xlu0 %v2282_v1, %s4245_s10  ;;  %v1949_v1 = vmul.bf16 %v4983_v63, %v1871_v50 }
 0x2ce   : > { %3065 = vrot.lane.b32.xlu1 %v3041_v10, %s4248_s14  ;;  %v2531_v10 = vrot.slane %v4936_v62, 4 }
 0x2d0   : > { %2141 = vrot.lane.b32.xlu0 %v2112_v20, %s4246_s12  ;;  %v5189_v20 = vrot.slane %v4938_v36, 4 }
 0x2d2   : > { %2301 = vrot.lane.b32.xlu1 %v2277_v39, %s4245_s10  ;;  %v2883_v39 = vmul.bf16 %v5016_v33, %v2805_v22  ;;  %v2534_v23 = vsel %vm464_vm6, %v2531_v10, %v5189_v20 }
 0x2d3   : > { %v5205_v24 = vsel %vm866_vm9, %v2534_v23, %v4938_v36 }
 0x2d4   : > { %1975 = vrot.lane.b32.xlu0 %v1946_v19, %s5951_s18  ;;  %v2639_v19 = vld [vmem:[#allocation4 + $0x38] sm:$0xf] }
 0x2d6   : > { %2131 = vrot.lane.b32.xlu1 %v2107_v52, %s4246_s12  ;;  %v2712_v52 = vmul.bf16 %v5060_v58, %v5012_v11 }
 0x2d8   : > { %2909 = vrot.lane.b32.xlu0 %v2880_v43, %s5952_s9  ;;  %v2713_v43 = vmul.bf16 %v5039_v46, %v2639_v19 }
 0x2da   : > { %1965 = vrot.lane.b32.xlu1 %v1941_v2, %s5951_s18  ;;  %v5207_v2 = vld [vmem:[#allocation4 + $0x28] sm:$0xff] }
 0x2db   : > { %v2283_v36 = vmul.bf16 %v5207_v2, %v5086_v27 }
 0x2dc   : > { %2739 = vrot.lane.b32.xlu0 %v2710_v55, %s5953_s15  ;;  %v2546_v55 = vmul.bf16 %v5205_v24, %v5012_v11 }
 0x2de   : > { %2899 = vrot.lane.b32.xlu1 %v2875_v5, %s5952_s9  ;;  %v2210_v5 = vld [vmem:[#allocation4 + $0x4c] sm:$0xf] }
 0x2e0   : > { %3073 = vrot.lane.b32.xlu0 %v3045_v7, %s4248_s14  ;;  %v3047_v7 = vmul.bf16 %v5075_v51, %v5207_v2 }
 0x2e2   : > { %2729 = vrot.lane.b32.xlu1 %v2705_v54, %s5953_s15  ;;  %v2288_v54 = vmul.bf16 %v4945_v37, %v2210_v5 }
 0x2e4   : > { %2309 = vrot.lane.b32.xlu0 %v2281_v6, %s4245_s10  ;;  %v2044_v6 = vld [vmem:[#allocation4 + $0x4c] sm:$0xf] }
 0x2e6   : > { %3071 = vrot.lane.b32.xlu1 %v3044_v12, %s4248_s14  ;;  %v2118_v12 = vmul.bf16 %v4969_v57, %v2044_v6 }
 0x2e8   : > { %2139 = vrot.lane.b32.xlu0 %v2111_v29, %s4246_s12  ;;  %v1874_v29 = vld [vmem:[#allocation4 + $0x4c] sm:$0xf] }
 0x2e9   : > { %v1952_v37 = vmul.bf16 %v4983_v63, %v1874_v29 }
 0x2ea   : > { %2307 = vrot.lane.b32.xlu1 %v2280_v35, %s4245_s10  ;;  %v2113_v35 = vmul.bf16 %v5207_v2, %v5097_v21 }
 0x2ec   : > { %1973 = vrot.lane.b32.xlu0 %v1945_v0, %s5951_s18  ;;  %v2808_v0 = vld [vmem:[#allocation4 + $0x4c] sm:$0xf] }
 0x2ed   : > { %v2886_v57 = vmul.bf16 %v5016_v33, %v2808_v0  ;;  %v3051_v33 = vmul.bf16 %v4957_v53, %v5031_v42  ;;  %v2472_v0 = vld [vmem:[#allocation4 + $0x4c] sm:$0xf] }
 0x2ee   : > { %2137 = vrot.lane.b32.xlu1 %v2110_v28, %s4246_s12  ;;  %v1947_v28 = vmul.bf16 %v5207_v2, %v5108_v32 }
 0x2f0   : > { %2907 = vrot.lane.b32.xlu0 %v2879_v4, %s5952_s9  ;;  %v2642_v4 = vld [vmem:[#allocation4 + $0x4c] sm:$0xf] }
 0x2f1   : > { %v2716_v63 = vmul.bf16 %v5039_v46, %v2642_v4  ;;  %v5252_v46 = vld [vmem:[#allocation4 + $0x3c] sm:$0xff] }
 0x2f2   : > { %1971 = vrot.lane.b32.xlu1 %v1944_v61, %s5951_s18  ;;  %v2881_v61 = vmul.bf16 %v5207_v2, %v5119_v9  ;;  %v3050_v53 = vmul.bf16 %v5075_v51, %v5252_v46 }
 0x2f4   : > { %2737 = vrot.lane.b32.xlu0 %v2709_v44, %s5953_s15  ;;  %v2711_v44 = vmul.bf16 %v5207_v2, %v5129_v13 }
 0x2f6   : > { %2905 = vrot.lane.b32.xlu1 %v2878_v40, %s5952_s9 }
 0x2f8   : > { %3079 = vrot.lane.b32.xlu0 %v3048_v8, %s4248_s14  ;;  %v5247_v8 = vsel %vm866_vm9, %v2531_v10, %v4936_v62  ;;  %vm5968_vm9 = vmmov %vm5956_vm0 }
 0x2fa   : > { %2735 = vrot.lane.b32.xlu1 %v2708_v47, %s5953_s15  ;;  %v2545_v47 = vmul.bf16 %v5207_v2, %v5247_v8 }
 0x2fc   : > { %2315 = vrot.lane.b32.xlu0 %v2284_v3, %s4245_s10  ;;  %v2287_v3 = vmul.bf16 %v4979_v60, %v5031_v42  ;;  %v2286_v60 = vmul.bf16 %v5252_v46, %v5086_v27  ;;  %v2539_v27 = vmul.bf16 %v5067_v31, %v5247_v8 }
 0x2fe   : > { %2317 = vrot.lane.b32.xlu1 %v2285_v30, %s4245_s10 }
 0x300   : > { %2145 = vrot.lane.b32.xlu0 %v2114_v38, %s4246_s12 }
 0x302   : > { %2147 = vrot.lane.b32.xlu1 %v2115_v18, %s4246_s12  ;;  %v2540_v18 = vmul.bf16 %v5205_v24, %v4967_v56 }
 0x304   : > { %1979 = vrot.lane.b32.xlu0 %v1948_v59, %s5951_s18 }
 0x306   : > { %1981 = vrot.lane.b32.xlu1 %v1949_v1, %s5951_s18 }
 0x308   : > { %2913 = vrot.lane.b32.xlu0 %v2882_v49, %s5952_s9  ;;  %v2117_v49 = vmul.bf16 %v5003_v26, %v5031_v42  ;;  %v2543_v26 = vmul.bf16 %v5205_v24, %v4988_v17 }
 0x30a   : > { %2915 = vrot.lane.b32.xlu1 %v2883_v39, %s5952_s9 }
 0x30c   : > { %2743 = vrot.lane.b32.xlu0 %v2712_v52, %s5953_s15 }
 0x30e   : > { %2745 = vrot.lane.b32.xlu1 %v2713_v43, %s5953_s15 }
 0x310   : > { %2577 = vrot.lane.b32.xlu0 %v2546_v55, %s5954_s29 }
 0x312   : > { %3077 = vrot.lane.b32.xlu1 %v3047_v7, %s4248_s14 }
 0x314   : > { %2323 = vrot.lane.b32.xlu0 %v2288_v54, %s4245_s10  ;;  %v2116_v54 = vmul.bf16 %v5252_v46, %v5097_v21 }
 0x316   : > { %2313 = vrot.lane.b32.xlu1 %v2283_v36, %s4245_s10 }
 0x318   : > { %2153 = vrot.lane.b32.xlu0 %v2118_v12, %s4246_s12 }
 0x31a   : > { %2143 = vrot.lane.b32.xlu1 %v2113_v35, %s4246_s12  ;;  %v1951_v35 = vmul.bf16 %v5028_v41, %v5031_v42  ;;  %v2550_v41 = vmul.bf16 %v5189_v20, %v2472_v0 }
 0x31c   : > { %1987 = vrot.lane.b32.xlu0 %v1952_v37, %s5951_s18 }
 0x31e   : > { %1977 = vrot.lane.b32.xlu1 %v1947_v28, %s5951_s18  ;;  %v1950_v28 = vmul.bf16 %v5252_v46, %v5108_v32  ;;  %v2884_v32 = vmul.bf16 %v5252_v46, %v5119_v9 }
 0x320   : > { %2921 = vrot.lane.b32.xlu0 %v2886_v57, %s5952_s9 }
 0x322   : > { %2911 = vrot.lane.b32.xlu1 %v2881_v61, %s5952_s9 }
 0x324   : > { %2751 = vrot.lane.b32.xlu0 %v2716_v63, %s5953_s15 }
 0x326   : > { %2741 = vrot.lane.b32.xlu1 %v2711_v44, %s5953_s15  ;;  %v5241_v40 = vpop.permute.xlu0 %3067 }
 0x327   : > { %5955 = vst [vmem:[#allocation6_spill] sm:$0xff] %v5241_v40  ;;  %v5925_v0 = vrot.slane %v5241_v40, 4 }
 0x328   : > { %3085 = vrot.lane.b32.xlu0 %v3051_v33, %s4248_s14 }
 0x32a   : > { %2575 = vrot.lane.b32.xlu1 %v2545_v47, %s5954_s29  ;;  %v5255_v48 = vpop.permute.xlu0 %2303 }
 0x32b   : > { %v2326_v34 = vrot.slane %v5255_v48, 4 }
 0x32c   : > { %v2306_v30 = vpop.permute.xlu1 %2305  ;;  %2321 = vrot.lane.b32.xlu0 %v2287_v3, %s4245_s10 }
 0x32d   : > { %v2327_v62 = vrot.slane %v2306_v30, 4  ;;  %v2714_v30 = vmul.bf16 %v5252_v46, %v5129_v13 }
 0x32e   : > { %3083 = vrot.lane.b32.xlu1 %v3050_v53, %s4248_s14  ;;  %v5264_v38 = vpop.permute.xlu0 %2133 }
 0x32f   : > { %v2339_v50 = vsel %vm464_vm6, %v2326_v34, %v2327_v62  ;;  %v2156_v22 = vrot.slane %v5264_v38, 4 }
 0x330   : > { %v2136_v59 = vpop.permute.xlu1 %2135  ;;  %v5273_v51 = vsel %vm737_vm3, %v5255_v48, %v2339_v50  ;;  %2565 = vrot.lane.b32.xlu0 %v2540_v18, %s5954_s29  ;;  %v2548_v50 = vmul.bf16 %v5252_v46, %v5247_v8 }
 0x331   : > { %v2157_v1 = vrot.slane %v2136_v59, 4  ;;  %v2885_v59 = vmul.bf16 %v5049_v25, %v5031_v42 }
 0x332   : > { %2319 = vrot.lane.b32.xlu1 %v2286_v60, %s4245_s10  ;;  %v5278_v10 = vpop.permute.xlu0 %1967  ;;  %s5958_s10 = smov 111   ;;  %v2466_v60 = vld [vmem:[#allocation4 + $0x24] sm:$0xf] }
 0x333   : > { %v2169_v39 = vsel %vm464_vm6, %v2156_v22, %v2157_v1  ;;  %v1990_v43 = vrot.slane %v5278_v10, 4  ;;  %v2544_v25 = vmul.bf16 %v5189_v20, %v2466_v60 }
 0x334   : > { %v1970_v19 = vpop.permute.xlu1 %1969  ;;  %v5287_v23 = vsel %vm617_vm1, %v5264_v38, %v2169_v39  ;;  %2151 = vrot.lane.b32.xlu0 %v2117_v49, %s4246_s12  ;;  %v2542_v49 = vmul.bf16 %v5134_v15, %v5247_v8 }
 0x335   : > { %v1991_v52 = vrot.slane %v1970_v19, 4  ;;  %v2469_v19 = vld [vmem:[#allocation4 + $0x38] sm:$0xf] }
 0x336   : > { %2563 = vrot.lane.b32.xlu1 %v2539_v27, %s5954_s29  ;;  %v5292_v55 = vpop.permute.xlu0 %2901 }
 0x337   : > { %v2003_v5 = vsel %vm464_vm6, %v1990_v43, %v1991_v52  ;;  %v2924_v12 = vrot.slane %v5292_v55, 4 }
 0x338   : > { %v2904_v7 = vpop.permute.xlu1 %2903  ;;  %v5301_v6 = vsel %vm501_vm2, %v5278_v10, %v2003_v5  ;;  %2571 = vrot.lane.b32.xlu0 %v2543_v26, %s5954_s29  ;;  %v2547_v26 = vmul.bf16 %v5189_v20, %v2469_v19 }
 0x339   : > { %v2925_v36 = vrot.slane %v2904_v7, 4  ;;  %v2715_v7 = vmul.bf16 %v5060_v58, %v5031_v42 }
 0x33a   : > { %2149 = vrot.lane.b32.xlu1 %v2116_v54, %s4246_s12  ;;  %v5306_v29 = vpop.permute.xlu0 %2731 }
 0x33b   : > { %v2937_v37 = vsel %vm464_vm6, %v2924_v12, %v2925_v36  ;;  %v2754_v61 = vrot.slane %v5306_v29, 4 }
 0x33c   : > { %v2734_v21 = vpop.permute.xlu1 %2733  ;;  %v5315_v57 = vsel %vm1140_vm14, %v5292_v55, %v2937_v37  ;;  %1985 = vrot.lane.b32.xlu0 %v1951_v35, %s5951_s18 }
 0x33d   : > { %v2755_v4 = vrot.slane %v2734_v21, 4 }
 0x33e   : > { %1983 = vrot.lane.b32.xlu1 %v1950_v28, %s5951_s18  ;;  %v5320_v63 = vpop.permute.xlu0 %2311 }
 0x33f   : > { %v2767_v44 = vsel %vm464_vm6, %v2754_v61, %v2755_v4  ;;  %v2330_v21 = vrot.slane %v5320_v63, 4 }
 0x340   : > { %v5324_v33 = vpop.permute.xlu1 %3065  ;;  %v5330_v47 = vsel %vm5956_vm0, %v5306_v29, %v2767_v44  ;;  %2585 = vrot.lane.b32.xlu0 %v2550_v41, %s5954_s29 }
 0x341   : > { %5957 = vst [vmem:[#allocation7_spill] sm:$0xff] %v5330_v47  ;;  %v3089_v29 = vrot.slane %v5324_v33, 4 }
 0x342   : > { %2917 = vrot.lane.b32.xlu1 %v2884_v32, %s5952_s9  ;;  %v5334_v48 = vpop.permute.xlu0 %2141 }
 0x343   : > { %v3101_v41 = vsel %vm464_vm6, %v3089_v29, %v5925_v0 }
 0x344   : > { %v2302_v3 = vpop.permute.xlu1 %2301  ;;  %2407 = vrot.lane.b32.xlu0 %v5012_v11, %s5958_s10 }
 0x345   : > { %v2325_v53 = vrot.slane %v2302_v3, 4 }
 0x346   : > { %2747 = vrot.lane.b32.xlu1 %v2714_v30, %s5953_s15  ;;  %v5341_v9 = vpop.permute.xlu0 %1975 }
 0x347   : > { %v2337_v62 = vsel %vm464_vm6, %v2325_v53, %v2326_v34 }
 0x348   : > { %v5345_v38 = vsel %vm737_vm3, %v2302_v3, %v2337_v62  ;;  %v2132_v18 = vpop.permute.xlu1 %2131  ;;  %2413 = vrot.lane.b32.xlu0 %v5031_v42, %s5958_s10  ;;  %v2463_v3 = vld [vmem:[#allocation4 + $0x10] sm:$0xf] }
 0x349   : > { %v2155_v13 = vrot.slane %v2132_v18, 4 }
 0x34a   : > { %2581 = vrot.lane.b32.xlu1 %v2548_v50, %s5954_s29  ;;  %v5352_v11 = vpop.permute.xlu0 %2909 }
 0x34b   : > { %v2167_v34 = vsel %vm464_vm6, %v2155_v13, %v2156_v22  ;;  %v5416_v13 = vsel %vm1256_vm15, %v5324_v33, %v3101_v41  ;;  %v1994_v33 = vrot.slane %v5341_v9, 4  ;;  %v2928_v29 = vrot.slane %v5352_v11, 4  ;;  %v2978_v41 = vld [vmem:[#allocation4 + $0x4c] sm:$0xf] }
 0x34c   : > { %v5358_v1 = vsel %vm617_vm1, %v2132_v18, %v2167_v34  ;;  %v1966_v10 = vpop.permute.xlu1 %1965  ;;  %2919 = vrot.lane.b32.xlu0 %v2885_v59, %s5952_s9  ;;  %v2541_v34 = vmul.bf16 %v5189_v20, %v2463_v3  ;;  %s5883_s9 = scalar_lea.vmem %s5909_s6, %s6029_s28 }
 0x34d   : > { %v1989_v39 = vrot.slane %v1966_v10, 4 }
 0x34e   : > { %2569 = vrot.lane.b32.xlu1 %v2542_v49, %s5954_s29  ;;  %v5364_v27 = vpop.permute.xlu0 %2739 }
 0x34f   : > { %v2001_v22 = vsel %vm464_vm6, %v1989_v39, %v1990_v43 }
 0x350   : > { %v5369_v52 = vsel %vm501_vm2, %v1966_v10, %v2001_v22  ;;  %v2900_v55 = vpop.permute.xlu1 %2899  ;;  %2573 = vrot.lane.b32.xlu0 %v2544_v25, %s5954_s29 }
 0x351   : > { %v2923_v8 = vrot.slane %v2900_v55, 4 }
 0x352   : > { %2579 = vrot.lane.b32.xlu1 %v2547_v26, %s5954_s29  ;;  %v5374_v5 = vpop.permute.xlu0 %3073 }
 0x353   : > { %5959 = vst [vmem:[#allocation8_spill] sm:$0xff] %v5374_v5  ;;  %v2935_v54 = vsel %vm464_vm6, %v2923_v8, %v2924_v12  ;;  %v5926_v32 = vrot.slane %v5374_v5, 4 }
 0x354   : > { %v5380_v43 = vsel %vm1140_vm14, %v2900_v55, %v2935_v54  ;;  %v2730_v36 = vpop.permute.xlu1 %2729  ;;  %2749 = vrot.lane.b32.xlu0 %v2715_v7, %s5953_s15 }
 0x355   : > { %v2753_v35 = vrot.slane %v2730_v36, 4 }
 0x356   : > { %2405 = vrot.lane.b32.xlu1 %v5207_v2, %s5958_s10  ;;  %v2310_v37 = vpop.permute.xlu0 %2309 }
 0x357   : > { %v2765_v58 = vsel %vm464_vm6, %v2753_v35, %v2754_v61  ;;  %v2329_v12 = vrot.slane %v2310_v37, 4  ;;  %v2160_v61 = vrot.slane %v5334_v48, 4 }
 0x358   : > { %v5390_v28 = vsel %vm5960_vm4, %v2730_v36, %v2765_v58  ;;  %v3072_v4 = vpop.permute.xlu1 %3071  ;;  %2395 = vrot.lane.b32.xlu0 %v4967_v56, %s5958_s10  ;;  %v2549_v56 = vmul.bf16 %v5205_v24, %v5031_v42  ;;  %vm6010_vm4 = vcmask 908288  }
 0x359   : > { %5961 = vst [vmem:[#allocation9_spill] sm:$0xff] %v5390_v28  ;;  %v3092_v44 = vrot.slane %v3072_v4, 4  ;;  %v2343_v63 = vsel %vm464_vm6, %v2329_v12, %v2330_v21 }
 0x35a   : > { %2411 = vrot.lane.b32.xlu1 %v5252_v46, %s5958_s10  ;;  %v5403_v30 = vsel %vm737_vm3, %v2310_v37, %v2343_v63  ;;  %v2140_v53 = vpop.permute.xlu0 %2139 }
 0x35b   : > { %v3105_v62 = vsel %vm464_vm6, %v3092_v44, %v5926_v32  ;;  %v2159_v50 = vrot.slane %v2140_v53, 4 }
 0x35c   : > { %v2308_v59 = vpop.permute.xlu1 %2307  ;;  %2583 = vrot.lane.b32.xlu0 %v2549_v56, %s5954_s29  ;;  %v5421_v42 = vsel %vm1256_vm15, %v3072_v4, %v3105_v62  ;;  %v2380_v4 = vld [vmem:[#allocation4 + $0x4c] sm:$0xf] }
 0x35d   : > { %v2328_v24 = vrot.slane %v2308_v59, 4  ;;  %v2173_v60 = vsel %vm464_vm6, %v2159_v50, %v2160_v61 }
 0x35e   : > { %2567 = vrot.lane.b32.xlu1 %v2541_v34, %s5954_s29  ;;  %v5431_v20 = vsel %vm617_vm1, %v2140_v53, %v2173_v60  ;;  %v1974_v39 = vpop.permute.xlu0 %1973  ;;  %v2758_v53 = vrot.slane %v5364_v27, 4 }
 0x35f   : > { %v2341_v19 = vsel %vm464_vm6, %v2328_v24, %v2329_v12  ;;  %v1993_v55 = vrot.slane %v1974_v39, 4 }
 0x360   : > { %v2138_v26 = vpop.permute.xlu1 %2137  ;;  %2401 = vrot.lane.b32.xlu0 %v4988_v17, %s5958_s10  ;;  %v5441_v9 = vsel %vm737_vm3, %v2308_v59, %v2341_v19  ;;  %v2975_v19 = vld [vmem:[#allocation4 + $0x38] sm:$0xf] }
 0x361   : > { %v2158_v8 = vrot.slane %v2138_v26, 4  ;;  %v2007_v7 = vsel %vm464_vm6, %v1993_v55, %v1994_v33 }
 0x362   : > { %2393 = vrot.lane.b32.xlu1 %v5067_v31, %s5958_s10  ;;  %v5452_v35 = vsel %vm501_vm2, %v1974_v39, %v2007_v7  ;;  %v2908_v17 = vpop.permute.xlu0 %2907  ;;  %v2377_v39 = vld [vmem:[#allocation4 + $0x38] sm:$0xf] }
 0x363   : > { %v2171_v37 = vsel %vm464_vm6, %v2158_v8, %v2159_v50  ;;  %v2927_v12 = vrot.slane %v2908_v17, 4  ;;  %v3052_v50 = vmul.bf16 %v4941_v45, %v2978_v41  ;;  %v2374_v41 = vld [vmem:[#allocation4 + $0x24] sm:$0xf] }
 0x364   : > { %v1972_v44 = vpop.permute.xlu1 %1971  ;;  %2415 = vrot.lane.b32.xlu0 %v2380_v4, %s5958_s10  ;;  %v5461_v31 = vsel %vm617_vm1, %v2138_v26, %v2171_v37 }
 0x365   : > { %v1992_v11 = vrot.slane %v1972_v44, 4  ;;  %v2941_v3 = vsel %vm464_vm6, %v2927_v12, %v2928_v29 }
 0x366   : > { %2399 = vrot.lane.b32.xlu1 %v5134_v15, %s5958_s10  ;;  %v5472_v56 = vsel %vm1140_vm14, %v2908_v17, %v2941_v3  ;;  %v2738_v62 = vpop.permute.xlu0 %2737 }
 0x367   : > { %5962 = vst [vmem:[#allocation10_spill] sm:$0xff] %v5472_v56  ;;  %v2005_v59 = vsel %vm464_vm6, %v1992_v11, %v1993_v55  ;;  %v2757_v60 = vrot.slane %v2738_v62, 4  ;;  %v5503_v11 = vld [vmem:[%s5906_s3 + $0x4] ss:$12 sps:$4 sm:$0xff]  }
 0x368   : > { %v2906_v33 = vpop.permute.xlu1 %2905  ;;  %3087 = vrot.lane.b32.xlu0 %v3052_v50, %s4248_s14  ;;  %v5482_v15 = vsel %vm501_vm2, %v1972_v44, %v2005_v59  ;;  %v2972_v44 = vld [vmem:[#allocation4 + $0x24] sm:$0xf]  ;;  %3632 = vmatprep.mubr.bf16.mxu0 %v5503_v11 }
 0x369   : > { %v2926_v27 = vrot.slane %v2906_v33, 4  ;;  %v2771_v26 = vsel %vm464_vm6, %v2757_v60, %v2758_v53  ;;  %v3049_v53 = vmul.bf16 %v4941_v45, %v2975_v19 }
 0x36a   : > { %2409 = vrot.lane.b32.xlu1 %v2377_v39, %s5958_s10  ;;  %v5491_v7 = vsel %vm5963_vm5, %v2738_v62, %v2771_v26  ;;  %v5493_v29 = vpop.permute.xlu0 %3079  ;;  %v3046_v39 = vmul.bf16 %v4941_v45, %v2972_v44 }
 0x36b   : > { %5964 = vst [vmem:[#allocation11_spill] sm:$0xff] %v5491_v7  ;;  %5965 = vst [vmem:[#allocation12_spill] sm:$0xff] %v5493_v29  ;;  %v2939_v17 = vsel %vm464_vm6, %v2926_v27, %v2927_v12  ;;  %v5939_v22 = vrot.slane %v5493_v29, 4 }
 0x36c   : > { %v2736_v3 = vpop.permute.xlu1 %2735  ;;  %2403 = vrot.lane.b32.xlu0 %v2374_v41, %s5958_s10  ;;  %v5508_v12 = vsel %vm1140_vm14, %v2906_v33, %v2939_v17  ;;  %v2371_v17 = vld [vmem:[#allocation4 + $0x10] sm:$0xf] }
 0x36d   : > { %v2756_v62 = vrot.slane %v2736_v3, 4  ;;  %v2969_v41 = vld [vmem:[#allocation4 + $0x10] sm:$0xf] }
 0x36e   : > { %3081 = vrot.lane.b32.xlu1 %v3049_v53, %s4248_s14  ;;  %v5516_v27 = vpop.permute.xlu0 %2315 }
 0x36f   : > { %v2769_v19 = vsel %vm464_vm6, %v2756_v62, %v2757_v60  ;;  %v2332_v10 = vrot.slane %v5516_v27, 4 }
 0x370   : > { %v5520_v26 = vpop.permute.xlu1 %2317  ;;  %3075 = vrot.lane.b32.xlu0 %v3046_v39, %s4248_s14  ;;  %v5524_v33 = vsel %vm5966_vm7, %v2736_v3, %v2769_v19  ;;  %v3043_v3 = vmul.bf16 %v4941_v45, %v2969_v41  ;;  %v3209_v19 = vld [vmem:[%s5907_s4] sm:$0xff] }
 0x371   : > { %5967 = vst [vmem:[#allocation13_spill] sm:$0xff] %v5524_v33  ;;  %v2333_v40 = vrot.slane %v5520_v26, 4 }
 0x372   : > { %2397 = vrot.lane.b32.xlu1 %v2371_v17, %s5958_s10  ;;  %v5534_v60 = vpop.permute.xlu0 %2145 }
 0x373   : > { %v2347_v26 = vsel %vm464_vm6, %v2332_v10, %v2333_v40  ;;  %v5971_v40 = vcombine.high %v5416_v13, %v5421_v42 }
 0x374   : > { %v5536_v62 = vpop.permute.xlu1 %2147  ;;  %3218 = vperm.xlu0 %4148, %v3210_v14  }
 0x376   : > { %3069 = vrot.lane.b32.xlu1 %v3043_v3, %s4248_s14  ;;  %v5540_v39 = vpop.permute.xlu0 %1979 }
 0x378   : > { %v5545_v0 = vpop.permute.xlu1 %1981 }
 0x37a   : > { %3213 = vperm.xlu1 %4149, %v3209_v19   ;;  %v5547_v32 = vpop.permute.xlu0 %2913 }
 0x37b   : > { %v5927_v4 = vrot.slane %v5547_v32, 4 }
 0x37c   : > { %v2916_v17 = vpop.permute.xlu1 %2915 }
 0x37d   : > { %v2931_v37 = vrot.slane %v2916_v17, 4 }
 0x37e   : > { %v5550_v53 = vpop.permute.xlu0 %2743 }
 0x37f   : > { %v2945_v14 = vsel %vm464_vm6, %v5927_v4, %v2931_v37  ;;  %v5928_v19 = vrot.slane %v5550_v53, 4 }
 0x380   : > { %v2746_v45 = vpop.permute.xlu1 %2745  ;;  %v5557_v41 = vsel %vm1140_vm14, %v5547_v32, %v2945_v14 }
 0x381   : > { %v2761_v3 = vrot.slane %v2746_v45, 4 }
 0x382   : > { %v5560_v44 = vpop.permute.xlu0 %2577 }
 0x383   : > { %v2775_v17 = vsel %vm464_vm6, %v5928_v19, %v2761_v3 }
 0x384   : > { %v3078_v34 = vpop.permute.xlu1 %3077  ;;  %v5567_v24 = vsel %vm5968_vm9, %v5550_v53, %v2775_v17  ;;  %vm6014_vm9 = vmmov %vm6010_vm4 }
 0x385   : > { %5969 = vst [vmem:[#allocation14_spill] sm:$0xff] %v5567_v24  ;;  %v3095_v8 = vrot.slane %v3078_v34, 4 }
 0x386   : > { %v2324_v37 = vpop.permute.xlu0 %2323 }
 0x387   : > { %v3109_v18 = vsel %vm464_vm6, %v3095_v8, %v5939_v22  ;;  %v2336_v5 = vrot.slane %v2324_v37, 4 }
 0x388   : > { %v2314_v50 = vpop.permute.xlu1 %2313  ;;  %v3110_v47 = vsel %vm1256_vm15, %v3078_v34, %v3109_v18  ;;  %v1795_v18 = vld [vmem:[%s5908_s5] sm:$0x11] }
 0x389   : > { %v2331_v63 = vrot.slane %v2314_v50, 4 }
 0x38a   : > { %v5569_v59 = vpop.permute.xlu0 %2153 }
 0x38b   : > { %v2345_v29 = vsel %vm464_vm6, %v2331_v63, %v2332_v10 }
 0x38c   : > { %v5571_v14 = vpop.permute.xlu1 %2143 }
 0x38e   : > { %v5573_v45 = vpop.permute.xlu0 %1987 }
 0x390   : > { %v5575_v21 = vpop.permute.xlu1 %1977 }
 0x392   : > { %v5577_v4 = vpop.permute.xlu0 %2921 }
 0x394   : > { %v5579_v58 = vpop.permute.xlu1 %2911 }
 0x396   : > { %v5581_v3 = vpop.permute.xlu0 %2751 }
 0x398   : > { %v5583_v19 = vpop.permute.xlu1 %2741 }
 0x39a   : > { %v5585_v17 = vpop.permute.xlu0 %3085 }
 0x39b   : > { %v5948_v54 = vrot.slane %v5585_v17, 4 }
 0x39c   : > { %v5587_v55 = vpop.permute.xlu1 %2575 }
 0x39e   : > { %v2322_v25 = vpop.permute.xlu0 %2321 }
 0x39f   : > { %v2335_v36 = vrot.slane %v2322_v25, 4 }
 0x3a0   : > { %v3084_v61 = vpop.permute.xlu1 %3083 }
 0x3a1   : > { %v3098_v48 = vrot.slane %v3084_v61, 4  ;;  %v2351_v28 = vsel %vm464_vm6, %v2335_v36, %v2336_v5 }
 0x3a2   : > { %v5595_v49 = vpop.permute.xlu0 %2565  ;;  %v2352_v63 = vsel %vm737_vm3, %v2322_v25, %v2351_v28  ;;  %v3974_v28 = vcombine.low %v1795_v18, %v1795_v18  ;;  %v3975_v25 = vcombine.high %v1795_v18, %v1795_v18 }
 0x3a3   : > { %5970 = vst [vmem:[#allocation15_spill] sm:$0xff] %v5595_v49  ;;  %v3113_v7 = vsel %vm464_vm6, %v3098_v48, %v5948_v54  ;;  %v2346_v48 = vsel %vm737_vm3, %v2314_v50, %v2345_v29  ;;  %v2162_v29 = vrot.slane %v5534_v60, 4  ;;  %v2166_v50 = vrot.slane %v5569_v59, 4 }
 0x3a4   : > { %v2320_v8 = vpop.permute.xlu1 %2319  ;;  %v3114_v22 = vsel %vm1256_vm15, %v3084_v61, %v3113_v7  ;;  %v2163_v7 = vrot.slane %v5536_v62, 4  ;;  %v5973_v59 = vcombine.high %v5345_v38, %v5441_v9 }
 0x3a5   : > { %v2334_v33 = vrot.slane %v2320_v8, 4  ;;  %v4093_v24 = vcombine.low %v3110_v47, %v3114_v22  ;;  %v4094_v56 = vcombine.high %v3110_v47, %v3114_v22  ;;  %v2161_v47 = vrot.slane %v5571_v14, 4 }
 0x3a6   : > { %v2152_v49 = vpop.permute.xlu0 %2151 }
 0x3a7   : > { %v2349_v37 = vsel %vm464_vm6, %v2334_v33, %v2335_v36  ;;  %3655 = vmatprep.subr.bf16.mxu1 %v4094_v56  ;;  %v2165_v36 = vrot.slane %v2152_v49, 4  ;;  %v2348_v56 = vsel %vm737_vm3, %v5516_v27, %v2347_v26  ;;  %v5632_v27 = vld [vmem:[%s5906_s3 + $0x8] ss:$12 sps:$4 sm:$0xff]   ;;  %v5972_v26 = vcombine.low %v5416_v13, %v5421_v42 }
 0x3a8   : > { %v5612_v61 = vpop.permute.xlu1 %2563  ;;  %3656 = vmatpush1.bf16.msra.mxu1 %v4093_v24  ;;  %v2350_v5 = vsel %vm737_vm3, %v2320_v8, %v2349_v37  ;;  %v1796_v24 = vld [vmem:[%s5908_s5 + $0x8] sm:$0x11]  ;;  %v4056_v33 = vcombine.high %v2348_v56, %v2352_v63  ;;  %v2175_v37 = vsel %vm464_vm6, %v2161_v47, %v2162_v29  ;;  %v1995_v13 = vrot.slane %v5575_v21, 4 }
 0x3a9   : > { %3657 = vmatprep.subr.bf16.mxu1 %v5971_v40  ;;  %v4053_v10 = vcombine.low %v2346_v48, %v2350_v5  ;;  %v4054_v22 = vcombine.high %v2346_v48, %v2350_v5  ;;  %v2181_v18 = vsel %vm464_vm6, %v2165_v36, %v2166_v50  ;;  %v4055_v48 = vcombine.low %v2348_v56, %v2352_v63 }
 0x3aa   : > { %v5621_v34 = vpop.permute.xlu0 %2571  ;;  %v1808_v40 = vpack.i.b16 %v3974_v28, %v3974_v28  ;;  %v3976_v54 = vcombine.low %v1796_v24, %v1796_v24  ;;  %v3977_v47 = vcombine.high %v1796_v24, %v1796_v24  ;;  %v1996_v50 = vrot.slane %v5540_v39, 4 }
 0x3ab   : > { %3600 = vmatprep.subr.bf16.mxu0 %v4054_v22  ;;  %v1815_v22 = vpack.i.b16 %v3975_v25, %v3975_v25  ;;  %v2182_v63 = vsel %vm617_vm1, %v2152_v49, %v2181_v18  ;;  %v5974_v28 = vcombine.low %v5345_v38, %v5441_v9  ;;  %v1997_v49 = vrot.slane %v5545_v0, 4 }
 0x3ac   : > { %v2150_v8 = vpop.permute.xlu1 %2149  ;;  %3601 = vmatpush1.bf16.msra.mxu0 %v4053_v10  ;;  %3658 = vmatpush1.bf16.msra.mxu1 %v5972_v26  ;;  %v2177_v10 = vsel %vm464_vm6, %v2162_v29, %v2163_v7  ;;  %v5975_v7 = vcombine.high %v5273_v51, %v5403_v30  ;;  %v2009_v9 = vsel %vm464_vm6, %v1995_v13, %v1996_v50 }
 0x3ad   : > { %v2164_v62 = vrot.slane %v2150_v8, 4  ;;  %3602 = vmatprep.subr.bf16.mxu0 %v5973_v59  ;;  %3686 = vmatprep.subr.bf16.mxu1 %v4056_v33  ;;  %v2176_v33 = vsel %vm617_vm1, %v5571_v14, %v2175_v37  ;;  %v2178_v14 = vsel %vm617_vm1, %v5534_v60, %v2177_v10  ;;  %v1822_v60 = vpack.i.b16 %v3976_v54, %v3976_v54 }
 0x3ae   : > { %v1986_v5 = vpop.permute.xlu0 %1985  ;;  %v4048_v37 = vcombine.high %v2178_v14, %v2182_v63  ;;  %v1829_v59 = vpack.i.b16 %v3977_v47, %v3977_v47  ;;  %v1813_v10 = vrot.slane %v1808_v40, %v4372_v16  ;;  %v1820_v13 = vrot.slane %v1815_v22, %v4372_v16 }
 0x3af   : > { %v2179_v42 = vsel %vm464_vm6, %v2164_v62, %v2165_v36  ;;  %4097 = vmatmul.mubr.msk.bf16.vlgmr.msra.gmra.mxu1 %vm982_vm8, %v5632_v27  ;;  %v1999_v26 = vrot.slane %v1986_v5, 4  ;;  %v2011_v54 = vsel %vm464_vm6, %v1996_v50, %v1997_v49  ;;  %v1827_v40 = vrot.slane %v1822_v60, %v4372_v16 }
 0x3b0   : > { %v1984_v56 = vpop.permute.xlu1 %1983  ;;  %3603 = vmatpush1.bf16.msra.mxu0 %v5974_v28  ;;  %3687 = vmatpush1.bf16.msra.mxu1 %v4055_v48  ;;  %v2180_v25 = vsel %vm617_vm1, %v2150_v8, %v2179_v42  ;;  %v2000_v8 = vrot.slane %v5573_v45, 4  ;;  %v5977_v45 = vcombine.high %v5358_v1, %v5461_v31  ;;  %v2010_v42 = vsel %vm501_vm2, %v5575_v21, %v2009_v9  ;;  %v1787_v9 = vld [vmem:[#allocation4] sm:$0xff]  ;;  %vm6002_vm1 = vmmov %vm5996_vm13 }
 0x3b1   : > { %v1998_v36 = vrot.slane %v1984_v56, 4  ;;  %3688 = vmatprep.subr.bf16.mxu1 %v5975_v7  ;;  %v4045_v24 = vcombine.low %v2176_v33, %v2180_v25  ;;  %v4046_v29 = vcombine.high %v2176_v33, %v2180_v25  ;;  %3718 = vmatprep.mubr.bf16.mxu1 %v5503_v11  ;;  %v5976_v11 = vcombine.low %v5273_v51, %v5403_v30  ;;  %v1789_v7 = vld [vmem:[#allocation4 + $0x14] sm:$0xff]  ;;  %vm6004_vm3 = vmmov %vm6002_vm1 }
 0x3b2   : > { %v5662_v38 = vpop.permute.xlu0 %2585  ;;  %v2015_v48 = vsel %vm464_vm6, %v1999_v26, %v2000_v8  ;;  %v4047_v51 = vcombine.low %v2178_v14, %v2182_v63  ;;  %v5978_v28 = vcombine.low %v5358_v1, %v5461_v31  ;;  %v1834_v22 = vrot.slane %v1829_v59, %v4372_v16  ;;  %v1794_v16 = vld [vmem:[#allocation4 + $0x44] sm:$0xff]  ;;  %vm6006_vm0 = vmmov %vm6002_vm1 }
 0x3b3   : > { %3604 = vmatprep.subr.bf16.mxu0 %v4046_v29  ;;  %v2013_v62 = vsel %vm464_vm6, %v1998_v36, %v1999_v26  ;;  %v2016_v33 = vsel %vm501_vm2, %v1986_v5, %v2015_v48  ;;  %v5979_v21 = vcombine.high %v5287_v23, %v5431_v20  ;;  %v3978_v50 = vcombine.low %v1813_v10, %v1820_v13  ;;  %v1788_v13 = vld [vmem:[#allocation4 + $0x8] sm:$0xff]  ;;  %vm6011_vm5 = vmmov %vm6006_vm0 }
 0x3b4   : > { %v5667_v18 = vpop.permute.xlu1 %2917  ;;  %3605 = vmatpush1.bf16.msra.mxu0 %v4045_v24  ;;  %3689 = vmatpush1.bf16.msra.mxu1 %v5976_v11  ;;  %v2014_v0 = vsel %vm501_vm2, %v1984_v56, %v2013_v62  ;;  %v2012_v5 = vsel %vm501_vm2, %v5540_v39, %v2011_v54  ;;  %v1792_v24 = vld [vmem:[#allocation4 + $0x30] sm:$0xff]  ;;  %v5980_v26 = vcombine.low %v5287_v23, %v5431_v20  ;;  %v2929_v62 = vrot.slane %v5579_v58, 4  ;;  %v1790_v23 = vld [vmem:[#allocation4 + $0x1c] sm:$0xff]  ;;  %vm6003_vm2 = vmmov %vm6002_vm1 }
 0x3b5   : > { %3606 = vmatprep.subr.bf16.mxu0 %v5977_v45  ;;  %3690 = vmatprep.subr.bf16.mxu1 %v4048_v37  ;;  %v4038_v47 = vcombine.high %v2010_v42, %v2014_v0  ;;  %v4037_v63 = vcombine.low %v2010_v42, %v2014_v0  ;;  %v4040_v36 = vcombine.high %v2012_v5, %v2016_v33  ;;  %v2932_v11 = vrot.slane %v5667_v18, 4  ;;  %vm6013_vm7 = vmmov %vm6006_vm0 }
 0x3b6   : > { %v5681_v30 = vpop.permute.xlu0 %2407  ;;  %v1851_v1 = vmul.bf16 %v3978_v50, %v5207_v2  ;;  %v1853_v31 = vmul.bf16 %v3978_v50, %v5252_v46  ;;  %v3979_v49 = vcombine.low %v1827_v40, %v1834_v22  ;;  %v5981_v39 = vcombine.high %v5369_v52, %v5482_v15 }
 0x3b7   : > { %v4039_v14 = vcombine.low %v2012_v5, %v2016_v33  ;;  %v1849_v46 = vmul.bf16 %v3978_v50, %v1789_v7  ;;  %v5982_v59 = vcombine.low %v5369_v52, %v5482_v15  ;;  %v5983_v48 = vcombine.high %v5301_v6, %v5452_v35 }
 0x3b8   : > { %v5685_v56 = vpop.permute.xlu1 %2747  ;;  %3607 = vmatpush1.bf16.msra.mxu0 %v5978_v28  ;;  %3691 = vmatpush1.bf16.msra.mxu1 %v4047_v51  ;;  %v1852_v8 = vmul.bf16 %v3979_v49, %v1792_v24  ;;  %v1854_v37 = vmul.bf16 %v3979_v49, %v1794_v16  ;;  %v4030_v0 = vcombine.high %v1851_v1, %v1853_v31  ;;  %v2934_v52 = vrot.slane %v5577_v4, 4 }
 0x3b9   : > { %3692 = vmatprep.subr.bf16.mxu1 %v5979_v21  ;;  %3608 = vmatprep.subr.bf16.mxu0 %v4038_v47  ;;  %v1847_v10 = vmul.bf16 %v3978_v50, %v1787_v9  ;;  %v4029_v42 = vcombine.low %v1851_v1, %v1853_v31  ;;  %v1850_v54 = vmul.bf16 %v3979_v49, %v1790_v23  ;;  %v5984_v47 = vrot.slane %v5547_v32, 4 }
 0x3ba   : > { %v5697_v25 = vpop.permute.xlu0 %2413  ;;  %v4032_v28 = vcombine.high %v1852_v8, %v1854_v37  ;;  %v5985_v22 = vcombine.low %v5301_v6, %v5452_v35  ;;  %v1848_v21 = vmul.bf16 %v3979_v49, %v1788_v13  ;;  %v2759_v31 = vrot.slane %v5583_v19, 4 }
 0x3bb   : > { %v2943_v33 = vsel %vm464_vm6, %v2929_v62, %v5984_v47  ;;  %v4026_v15 = vcombine.high %v1847_v10, %v1849_v46  ;;  %v4025_v4 = vcombine.low %v1847_v10, %v1849_v46  ;;  %v2762_v6 = vrot.slane %v5685_v56, 4 }
 0x3bc   : > { %v5701_v29 = vpop.permute.xlu1 %2581  ;;  %3609 = vmatpush1.bf16.msra.mxu0 %v4037_v63  ;;  %3693 = vmatpush1.bf16.msra.mxu1 %v5980_v26  ;;  %v2944_v32 = vsel %vm1140_vm14, %v5579_v58, %v2943_v33  ;;  %v4031_v63 = vcombine.low %v1852_v8, %v1854_v37  ;;  %v4027_v26 = vcombine.low %v1848_v21, %v1850_v54  ;;  %v2764_v9 = vrot.slane %v5581_v3, 4 }
 0x3bd   : > { %3610 = vmatprep.subr.bf16.mxu0 %v5981_v39  ;;  %3694 = vmatprep.subr.bf16.mxu1 %v4040_v36  ;;  %v4028_v36 = vcombine.high %v1848_v21, %v1850_v54  ;;  %v5986_v39 = vrot.slane %v5550_v53, 4  ;;  %v2593_v37 = vrot.slane %v5587_v55, 4  ;;  %v5988_v53 = vcombine.high %v5380_v43, %v5508_v12  ;;  %v5992_v54 = vld [vmem:[#allocation10_spill] sm:$0xff] }
 0x3be   : > { %v2920_v2 = vpop.permute.xlu0 %2919  ;;  %v2594_v3 = vrot.slane %v5560_v44, 4  ;;  %v2596_v23 = vrot.slane %v5701_v29, 4  ;;  %v5991_v13 = vcombine.low %v5380_v43, %v5508_v12  ;;  %v5993_v47 = vcombine.high %v5315_v57, %v5992_v54 }
 0x3bf   : > { %v2933_v60 = vrot.slane %v2920_v2, 4 }
 0x3c0   : > { %v5711_v20 = vpop.permute.xlu1 %2569  ;;  %3611 = vmatpush1.bf16.msra.mxu0 %v5982_v59  ;;  %3695 = vmatpush1.bf16.msra.mxu1 %v4039_v14  ;;  %v2773_v14 = vsel %vm464_vm6, %v2759_v31, %v5986_v39  ;;  %v2427_v31 = vrot.slane %v5697_v25, 4 }
 0x3c1   : > { %3612 = vmatprep.subr.bf16.mxu0 %v4030_v0  ;;  %3696 = vmatprep.subr.bf16.mxu1 %v5983_v48  ;;  %v2947_v45 = vsel %vm464_vm6, %v2932_v11, %v2933_v60  ;;  %v2949_v5 = vsel %vm464_vm6, %v2933_v60, %v2934_v52  ;;  %v2774_v11 = vsel %vm5989_vm11, %v5583_v19, %v2773_v14  ;;  %v2587_v19 = vrot.slane %v5612_v61, 4  ;;  %v5994_v52 = vld [vmem:[#allocation15_spill] sm:$0xff]  ;;  %vm6016_vm11 = vmmov %vm6010_vm4 }
 0x3c2   : > { %v5720_v51 = vpop.permute.xlu0 %2573  ;;  %v2948_v50 = vsel %vm1140_vm14, %v5667_v18, %v2947_v45  ;;  %v2950_v24 = vsel %vm1140_vm14, %v2920_v2, %v2949_v5  ;;  %v5995_v5 = vld [vmem:[#allocation14_spill] sm:$0xff]  ;;  %vm5998_vm14 = vmmov %vm5996_vm13  ;;  %v2424_v14 = vrot.slane %v5681_v30, 4 }
 0x3c3   : > { %v4086_v35 = vcombine.high %v2944_v32, %v2948_v50  ;;  %v4085_v16 = vcombine.low %v2944_v32, %v2948_v50  ;;  %v4088_v2 = vcombine.high %v5557_v41, %v2950_v24  ;;  %v4087_v0 = vcombine.low %v5557_v41, %v2950_v24 }
 0x3c4   : > { %v5726_v40 = vpop.permute.xlu1 %2579  ;;  %3613 = vmatpush1.bf16.msra.mxu0 %v4029_v42  ;;  %3697 = vmatpush1.bf16.msra.mxu1 %v5985_v22  ;;  %v2607_v42 = vsel %vm464_vm6, %v2593_v37, %v2594_v3  ;;  %v2591_v41 = vrot.slane %v5621_v34, 4  ;;  %v2598_v22 = vrot.slane %v5662_v38, 4 }
 0x3c5   : > { %3614 = vmatprep.subr.bf16.mxu0 %v4026_v15  ;;  %3698 = vmatprep.subr.bf16.mxu1 %v4032_v28  ;;  %v2588_v15 = vrot.slane %v5994_v52, 4  ;;  %v2595_v28 = vrot.slane %v5726_v40, 4  ;;  %v5997_v40 = vcombine.low %v5315_v57, %v5992_v54 }
 0x3c6   : > { %v2750_v1 = vpop.permute.xlu0 %2749 }
 0x3c7   : > { %v2763_v7 = vrot.slane %v2750_v1, 4 }
 0x3c8   : > { %v5739_v18 = vpop.permute.xlu1 %2405  ;;  %3615 = vmatpush1.bf16.msra.mxu0 %v4025_v4  ;;  %3699 = vmatpush1.bf16.msra.mxu1 %v4031_v63  ;;  %v2608_v4 = vsel %vm5996_vm13, %v5587_v55, %v2607_v42  ;;  %v5999_v55 = vld [vmem:[#allocation9_spill] sm:$0xff]  ;;  %vm6018_vm13 = vmmov %vm6010_vm4 }
 0x3c9   : > { %3700 = vmatprep.subr.bf16.mxu1 %v4028_v36  ;;  %3616 = vmatprep.subr.bf16.mxu0 %v4086_v35  ;;  %v2777_v58 = vsel %vm464_vm6, %v2762_v6, %v2763_v7  ;;  %v2779_v62 = vsel %vm464_vm6, %v2763_v7, %v2764_v9  ;;  %v2592_v6 = vrot.slane %v5720_v51, 4  ;;  %v6000_v7 = vld [vmem:[#allocation13_spill] sm:$0xff] }
 0x3ca   : > { %v5742_v49 = vpop.permute.xlu0 %2395  ;;  %v2778_v8 = vsel %vm5987_vm10, %v5685_v56, %v2777_v58  ;;  %v2590_v56 = vrot.slane %v5711_v20, 4  ;;  %v2780_v45 = vsel %vm5990_vm12, %v2750_v1, %v2779_v62  ;;  %v2599_v1 = vsel %vm464_vm6, %v2587_v19, %v2588_v15  ;;  %vm6015_vm10 = vmmov %vm6010_vm4 }
 0x3cb   : > { %v4078_v59 = vcombine.high %v2774_v11, %v2778_v8  ;;  %v4077_v43 = vcombine.low %v2774_v11, %v2778_v8  ;;  %v4080_v32 = vcombine.high %v5995_v5, %v2780_v45  ;;  %v6001_v24 = vcombine.high %v5999_v55, %v6000_v7  ;;  %vm6017_vm12 = vmmov %vm6010_vm4 }
 0x3cc   : > { %v5749_v46 = vpop.permute.xlu1 %2411  ;;  %3617 = vmatpush2.bf16.msra.mxu0 %v4085_v16  ;;  %3701 = vmatpush1.bf16.msra.mxu1 %v4027_v26  ;;  %v2603_v21 = vsel %vm464_vm6, %v2590_v56, %v2591_v41  ;;  %v2609_v58 = vsel %vm464_vm6, %v2594_v3, %v2595_v28  ;;  %v4079_v16 = vcombine.low %v5995_v5, %v2780_v45 }
 0x3cd   : > { %3618 = vmatprep.subr.bf16.mxu0 %v5988_v53  ;;  %3702 = vmatprep.subr.bf16.mxu1 %v4088_v2  ;;  %v2426_v50 = vrot.slane %v5749_v46, 4  ;;  %v2604_v57 = vsel %vm6002_vm1, %v5711_v20, %v2603_v21  ;;  %v2600_v9 = vsel %vm6003_vm2, %v5612_v61, %v2599_v1  ;;  %v6005_v37 = vcombine.low %v5999_v55, %v6000_v7  ;;  %v6019_v7 = vld [vmem:[#allocation12_spill] sm:$0xff]  ;;  %vm6023_vm1 = vmmov %vm6010_vm4 }
 0x3ce   : > { %v2584_v60 = vpop.permute.xlu0 %2583  ;;  %v4066_v62 = vcombine.high %v2600_v9, %v2604_v57  ;;  %v2605_v53 = vsel %vm464_vm6, %v2591_v41, %v2592_v6  ;;  %v2610_v3 = vsel %vm6006_vm0, %v5560_v44, %v2609_v58  ;;  %v6021_v58 = vrot.slane %v5585_v17, 4 }
 0x3cf   : > { %v2597_v48 = vrot.slane %v2584_v60, 4  ;;  %v2441_v39 = vsel %vm464_vm6, %v2426_v50, %v2427_v31 }
 0x3d0   : > { %v2568_v10 = vpop.permute.xlu1 %2567  ;;  %3619 = vmatpush2.bf16.msra.mxu0 %v5991_v13  ;;  %3703 = vmatpush2.bf16.msra.mxu1 %v4087_v0  ;;  %v6007_v0 = vld [vmem:[#allocation7_spill] sm:$0xff]  ;;  %v2442_v56 = vsel %vm6010_vm4, %v5749_v46, %v2441_v39  ;;  %v2606_v46 = vsel %vm6013_vm7, %v5621_v34, %v2605_v53 }
 0x3d1   : > { %3704 = vmatprep.subr.bf16.mxu1 %v5993_v47  ;;  %3620 = vmatprep.subr.bf16.mxu0 %v4078_v59  ;;  %v2611_v33 = vsel %vm464_vm6, %v2596_v23, %v2597_v48  ;;  %v2589_v63 = vrot.slane %v2568_v10, 4  ;;  %v2613_v35 = vsel %vm464_vm6, %v2597_v48, %v2598_v22  ;;  %v6008_v23 = vld [vmem:[#allocation11_spill] sm:$0xff]  ;;  %v2418_v47 = vrot.slane %v5742_v49, 4 }
 0x3d2   : > { %v5777_v12 = vpop.permute.xlu0 %2401  ;;  %v2612_v38 = vsel %vm5998_vm14, %v5701_v29, %v2611_v33  ;;  %v2423_v29 = vrot.slane %v5739_v18, 4  ;;  %v2614_v8 = vsel %vm6004_vm3, %v2584_v60, %v2613_v35  ;;  %v6009_v61 = vcombine.high %v6007_v0, %v6008_v23  ;;  %vm6022_vm14 = vmmov %vm6010_vm4 }
 0x3d3   : > { %v4070_v51 = vcombine.high %v2608_v4, %v2612_v38  ;;  %v2601_v2 = vsel %vm464_vm6, %v2588_v15, %v2589_v63  ;;  %v2421_v59 = vrot.slane %v5777_v12, 4  ;;  %v4069_v48 = vcombine.low %v2608_v4, %v2612_v38 }
 0x3d4   : > { %v5785_v36 = vpop.permute.xlu1 %2393  ;;  %3621 = vmatpush2.bf16.msra.mxu0 %v4077_v43  ;;  %3705 = vmatpush2.bf16.msra.mxu1 %v5997_v40  ;;  %v2437_v60 = vsel %vm464_vm6, %v2423_v29, %v2424_v14  ;;  %v4072_v13 = vcombine.high %v2610_v3, %v2614_v8  ;;  %v2602_v44 = vsel %vm6011_vm5, %v5994_v52, %v2601_v2 }
 0x3d5   : > { %3622 = vmatprep.subr.bf16.mxu0 %v6001_v24  ;;  %3706 = vmatprep.subr.bf16.mxu1 %v4080_v32  ;;  %v2417_v10 = vrot.slane %v5785_v36, 4  ;;  %v6012_v41 = vcombine.low %v6007_v0, %v6008_v23  ;;  %v2438_v54 = vsel %vm6014_vm9, %v5739_v18, %v2437_v60  ;;  %v4065_v52 = vcombine.low %v2600_v9, %v2604_v57  ;;  %v6024_v0 = vld [vmem:[#allocation8_spill] sm:$0xff] }
 0x3d6   : > { %v2416_v26 = vpop.permute.xlu0 %2415  ;;  %v4062_v28 = vcombine.high %v2438_v54, %v2442_v56  ;;  %v4071_v43 = vcombine.low %v2610_v3, %v2614_v8  ;;  %v4068_v22 = vcombine.high %v2602_v44, %v2606_v46  ;;  %v4061_v1 = vcombine.low %v2438_v54, %v2442_v56 }
 0x3d7   : > { %v2428_v42 = vrot.slane %v2416_v26, 4  ;;  %v2429_v50 = vsel %vm464_vm6, %v2417_v10, %v2418_v47  ;;  %v4067_v35 = vcombine.low %v2602_v44, %v2606_v46  ;;  %v6020_v24 = vrot.slane %v6019_v7, 4 }
 0x3d8   : > { %v2400_v20 = vpop.permute.xlu1 %2399  ;;  %3623 = vmatpush2.bf16.msra.mxu0 %v6005_v37  ;;  %3707 = vmatpush2.bf16.msra.mxu1 %v4079_v16  ;;  %v2430_v6 = vsel %vm6017_vm12, %v5785_v36, %v2429_v50  ;;  %v4221_v37 = vld [vmem:[%s5906_s3] ss:$12 sps:$4 sm:$0xff]   ;;  %v6025_v23 = vrot.slane %v6024_v0, 4 }
 0x3d9   : > { %v2420_v11 = vrot.slane %v2400_v20, 4  ;;  %3708 = vmatprep.subr.bf16.mxu1 %v6009_v61  ;;  %3624 = vmatprep.subr.bf16.mxu0 %v4070_v51  ;;  %v2443_v34 = vsel %vm464_vm6, %v2427_v31, %v2428_v42  ;;  %v6028_v42 = vmov 0  }
 0x3da   : > { %v3088_v45 = vpop.permute.xlu0 %3087  ;;  %v2444_v31 = vsel %vm6018_vm13, %v5697_v25, %v2443_v34 }
 0x3db   : > { %v2433_v33 = vsel %vm464_vm6, %v2420_v11, %v2421_v59  ;;  %v3100_v32 = vrot.slane %v3088_v45, 4 }
 0x3dc   : > { %v2410_v19 = vpop.permute.xlu1 %2409  ;;  %3625 = vmatpush2.bf16.msra.mxu0 %v4069_v48  ;;  %3709 = vmatpush2.bf16.msra.mxu1 %v6012_v41  ;;  %v2434_v4 = vsel %vm6015_vm10, %v2400_v20, %v2433_v33 }
 0x3dd   : > { %v2425_v15 = vrot.slane %v2410_v19, 4  ;;  %3626 = vmatprep.subr.bf16.mxu0 %v4066_v62  ;;  %3710 = vmatprep.subr.bf16.mxu1 %v4072_v13  ;;  %v4058_v29 = vcombine.high %v2430_v6, %v2434_v4 }
 0x3de   : > { %v2404_v21 = vpop.permute.xlu0 %2403 }
 0x3df   : > { %v2439_v5 = vsel %vm464_vm6, %v2424_v14, %v2425_v15  ;;  %v2422_v38 = vrot.slane %v2404_v21, 4  ;;  %v4057_v14 = vcombine.low %v2430_v6, %v2434_v4  ;;  %v3772_v15 = vld [vmem:[%s4317_s11] sm:$0xff] }
 0x3e0   : > { %v3082_v18 = vpop.permute.xlu1 %3081  ;;  %3627 = vmatpush2.bf16.msra.mxu0 %v4065_v52  ;;  %3711 = vmatpush2.bf16.msra.mxu1 %v4071_v43  ;;  %v2440_v63 = vsel %vm6016_vm11, %v5681_v30, %v2439_v5  ;;  %v3115_v30 = vsel %vm464_vm6, %v6021_v58, %v3100_v32 }
 0x3e1   : > { %v3097_v40 = vrot.slane %v3082_v18, 4  ;;  %3628 = vmatprep.subr.bf16.mxu0 %v4062_v28  ;;  %3712 = vmatprep.subr.bf16.mxu1 %v4068_v22  ;;  %v4064_v16 = vcombine.high %v2440_v63, %v2444_v31  ;;  %v2435_v25 = vsel %vm464_vm6, %v2421_v59, %v2422_v38  ;;  %v4063_v9 = vcombine.low %v2440_v63, %v2444_v31  ;;  %v6026_v59 = vld [vmem:[#allocation6_spill] sm:$0xff]  ;;  %v3774_v18 = vld [vmem:[%s4317_s11 + $0x10] sm:$0xff] }
 0x3e2   : > { %v3076_v55 = vpop.permute.xlu0 %3075  ;;  %v3116_v2 = vsel %vm1256_vm15, %v5585_v17, %v3115_v30  ;;  %v2436_v3 = vsel %vm6023_vm1, %v5777_v12, %v2435_v25  ;;  %v6027_v48 = vrot.slane %v6026_v59, 4 }
 0x3e3   : > { %v3111_v57 = vsel %vm464_vm6, %v6020_v24, %v3097_v40  ;;  %v3094_v51 = vrot.slane %v3076_v55, 4 }
 0x3e4   : > { %v2398_v26 = vpop.permute.xlu1 %2397  ;;  %3629 = vmatpush2.bf16.msra.mxu0 %v4061_v1  ;;  %3713 = vmatpush2.bf16.msra.mxu1 %v4067_v35  ;;  %v3112_v36 = vsel %vm1256_vm15, %v6019_v7, %v3111_v57  ;;  %v3775_v35 = vld [vmem:[%s4317_s11 + $0x18] sm:$0xff]  ;;  %v4099_v7 = vld [vmem:[%s4317_s11 + $0x20] sm:$0xff] }
 0x3e5   : > { %v2419_v39 = vrot.slane %v2398_v26, 4  ;;  %3630 = vmatprep.subr.bf16.mxu0 %v4058_v29  ;;  %3714 = vmatprep.subr.bf16.mxu1 %v4064_v16  ;;  %v4096_v20 = vcombine.high %v3112_v36, %v3116_v2  ;;  %v3107_v17 = vsel %vm464_vm6, %v6025_v23, %v3094_v51  ;;  %v4095_v56 = vcombine.low %v3112_v36, %v3116_v2  ;;  %v4100_v26 = vld [vmem:[%s4317_s11 + $0x28] sm:$0xff] }
 0x3e6   : > { %v3108_v12 = vsel %vm1256_vm15, %v6024_v0, %v3107_v17 }
 0x3e7   : > { %v2431_v8 = vsel %vm464_vm6, %v2418_v47, %v2419_v39 }
 0x3e8   : > { %v3070_v62 = vpop.permute.xlu1 %3069  ;;  %3631 = vmatpush2.bf16.msra.mxu0 %v4057_v14  ;;  %3715 = vmatpush2.bf16.msra.mxu1 %v4063_v9  ;;  %v2432_v53 = vsel %vm6022_vm14, %v5742_v49, %v2431_v8  ;;  %v4101_v9 = vld [vmem:[%s4317_s11 + $0x30] sm:$0xff] }
 0x3e9   : > { %v3091_v11 = vrot.slane %v3070_v62, 4  ;;  %3741 = vmatprep.subr.bf16.mxu0 %v4096_v20  ;;  %v4059_v61 = vcombine.low %v2432_v53, %v2436_v3  ;;  %v4060_v60 = vcombine.high %v2432_v53, %v2436_v3  ;;  %v4102_v62 = vld [vmem:[%s4317_s11 + $0x38] sm:$0xff] }
 0x3eb   : > { %v3103_v45 = vsel %vm464_vm6, %v6027_v48, %v3091_v11  ;;  %3633 = vmatmul.mubr.bf16.vlgmr.msra.gmra.mxu0 %v4221_v37  ;;  %3716 = vmatprep.subr.bf16.mxu1 %v4060_v60 }
 0x3ec   : > { %3717 = vmatpush2.bf16.msra.mxu1 %v4059_v61  ;;  %3742 = vmatpush1.bf16.msra.mxu0 %v4095_v56  ;;  %v3104_v49 = vsel %vm1256_vm15, %v6026_v59, %v3103_v45 }
 0x3ed   : > { %v4091_v10 = vcombine.low %v3104_v49, %v3108_v12  ;;  %v4092_v13 = vcombine.high %v3104_v49, %v3108_v12  ;;  %3761 = vmatprep.mubr.bf16.mxu0 %v6028_v42 }
 0x3ef   : > { %3719 = vmatmul.mubr.bf16.vlgmr.msra.gmra.mxu1 %v4221_v37  ;;  %3743 = vmatprep.subr.bf16.mxu0 %v4092_v13  ;;  %v3219_v28 = vpop.permute.xlu0 %3218 }
 0x3f0   : > { %3744 = vmatpush1.bf16.msra.mxu0 %v4091_v10 }
 0x3f3   : > { %4098 = vmatmul.mubr.msk.bf16.vlgmr.msra.gmra.mxu0 %vm982_vm8, %v5632_v27  ;;  %v3773_v27 = vld [vmem:[%s4317_s11 + $0x8] sm:$0xff] }
 0x3f5   : > { %v3214_v46 = vpop.permute.xlu1 %3213 }
 0x46f   : > { %v3677_v44 = vpop.f32.mrf.mxu1 }
 0x471   : > { %v3679_v19 = vpop.f32.mrf.mxu1 }
 0x473   : > { %v3681_v41 = vpop.f32.mrf.mxu1 }
 0x475   : > { %v3683_v33 = vpop.f32.mrf.mxu1 }
 0x4ab   : > { %v3634_v54 = vpop.f32.mrf.mxu0 }
 0x4ac   : > { %v3635_v47 = vadd.f32 %v3634_v54, %v3214_v46 }
 0x4ad   : > { %v3636_v52 = vpop.f32.mrf.mxu0 }
 0x4ae   : > { %v3678_v43 = vadd.f32 %v3677_v44, %v3635_v47  ;;  %v3637_v22 = vadd.f32 %v3636_v52, %v3214_v46 }
 0x4af   : > { %v3638_v21 = vpop.f32.mrf.mxu0  ;;  %v3720_v50 = vpop.f32.mrf.mxu1 }
 0x4b0   : > { %v3776_v5 = vadd.f32 %v3772_v15, %v3678_v43  ;;  %v3680_v34 = vadd.f32 %v3679_v19, %v3637_v22  ;;  %v3639_v32 = vadd.f32 %v3638_v21, %v3219_v28  ;;  %v3721_v1 = vadd.f32 %v3720_v50, %v3214_v46 }
 0x4b1   : > { %v3640_v4 = vpop.f32.mrf.mxu0  ;;  %v3722_v63 = vpop.f32.mrf.mxu1 }
 0x4b2   : > { %3780 = vst [vmem:[%s5883_s9] sm:$0xff] %v3776_v5  ;;  %v3777_v40 = vadd.f32 %v3773_v27, %v3680_v34  ;;  %v3682_v38 = vadd.f32 %v3681_v41, %v3639_v32  ;;  %v3641_v6 = vadd.f32 %v3640_v4, %v3219_v28  ;;  %v3723_v58 = vadd.f32 %v3722_v63, %v3214_v46 }
 0x4b3   : > { %v3724_v31 = vpop.f32.mrf.mxu1  ;;  %v3763_v55 = vpop.f32.mrf.mxu0 }
 0x4b4   : > { %3781 = vst [vmem:[%s5883_s9 + $0x8] sm:$0xff] %v3777_v40  ;;  %v3778_v24 = vadd.f32 %v3774_v18, %v3682_v38  ;;  %v3684_v57 = vadd.f32 %v3683_v33, %v3641_v6  ;;  %v3764_v30 = vadd.f32 %v3763_v55, %v3721_v1  ;;  %v3725_v39 = vadd.f32 %v3724_v31, %v3219_v28 }
 0x4b5   : > { %v3726_v29 = vpop.f32.mrf.mxu1  ;;  %v3765_v16 = vpop.f32.mrf.mxu0 }
 0x4b6   : > { %3782 = vst [vmem:[%s5883_s9 + $0x10] sm:$0xff] %v3778_v24  ;;  %v3779_v36 = vadd.f32 %v3775_v35, %v3684_v57  ;;  %v3788_v25 = vadd.f32 %v4099_v7, %v3764_v30  ;;  %v3766_v51 = vadd.f32 %v3765_v16, %v3723_v58  ;;  %v3727_v2 = vadd.f32 %v3726_v29, %v3219_v28 }
 0x4b7   : > { %v3767_v14 = vpop.f32.mrf.mxu0 }
 0x4b8   : > { %3783 = vst [vmem:[%s5883_s9 + $0x18] sm:$0xff] %v3779_v36  ;;  %4103 = vst [vmem:[%s5883_s9 + $0x20] sm:$0xff] %v3788_v25  ;;  %v3789_v8 = vadd.f32 %v4100_v26, %v3766_v51  ;;  %v3768_v20 = vadd.f32 %v3767_v14, %v3725_v39 }
 0x4b9   : > { %v3769_v37 = vpop.f32.mrf.mxu0 }
 0x4ba   : > { %4104 = vst [vmem:[%s5883_s9 + $0x28] sm:$0xff] %v3789_v8  ;;  %v3790_v53 = vadd.f32 %v4101_v9, %v3768_v20  ;;  %v3770_v3 = vadd.f32 %v3769_v37, %v3727_v2 }
 0x4bc   : > { %4105 = vst [vmem:[%s5883_s9 + $0x30] sm:$0xff] %v3790_v53  ;;  %v3791_v11 = vadd.f32 %v4102_v62, %v3770_v3 }
 0x4be   : > { %4106 = vst [vmem:[%s5883_s9 + $0x38] sm:$0xff] %v3791_v11 }
 0x4bf PF: > { %s16_s21 = sadd.s32 1, %s4230_s21  }
 0x4c0   : > { %p13_p4 = scmp.ge.s32.totalorder %s16_s21, 4  }
 0x4c2   :  { %15 = sbr.rel (!%p13_p4) target bundleno = 1 (0x1), region = 76 }

</bundles_post_ra>
